<compile_context>
chip_gen: v7x
topology: tpu7x:2x2x1
jax: 0.10.0
libtpu: 0.0.40
codegen_flags: <defaults>
</compile_context>

<pallas_src>
import functools

import jax
import jax.numpy as jnp
import numpy as np
from jax.experimental import pallas as pl
from jax.experimental.pallas import tpu as pltpu

EPS = 1e-5          # torch.nn.LayerNorm default eps
NEG_LARGE = -1e30   # finite "minus infinity" for causal masking


def _layernorm(x, w, b):
    mu = jnp.mean(x, axis=-1, keepdims=True)
    var = jnp.mean((x - mu) ** 2, axis=-1, keepdims=True)
    return (x - mu) * jax.lax.rsqrt(var + EPS) * w + b


# ---------------------------------------------------------------------------
# Fused forward kernel: embedding combine + all transformer blocks + final LN.
# ---------------------------------------------------------------------------
def sasrec_fused_kernel(seq_ref, pos_ref, mask_ref,
                        ln1_w_ref, ln1_b_ref,
                        wq_ref, bq_ref, wkv_ref, bkv_ref,
                        wo_ref, bo_ref,
                        ln2_w_ref, ln2_b_ref,
                        w1_ref, b1_ref, w2_ref, b2_ref,
                        fin_w_ref, fin_b_ref,
                        out_ref, attn_ref,
                        *, num_heads):
    Bt, S, D = seq_ref.shape            # batch tile
    BS = Bt * S
    hd = D // num_heads
    num_blocks = wq_ref.shape[0]
    mm = wq_ref.dtype                   # matmul operand dtype (bf16 on v6e/v7x)
    inv_heads = 1.0 / float(num_heads)

    # --- embedding combine: (item + pos) * mask   (dropout = identity, eval) ---
    mask = mask_ref[...]                                          # (BS, 1) f32
    x = (seq_ref[...] + pos_ref[...][None, :, :]).reshape(BS, D) * mask

    # causal mask, shared by every block / head (hoisted out of the loops)
    row = jax.lax.broadcasted_iota(jnp.int32, (S, S), 0)
    col = jax.lax.broadcasted_iota(jnp.int32, (S, S), 1)
    causal = (col <= row)[None, :, :]                             # (1, S, S)

    for li in range(num_blocks):        # static unroll; weights resident in VMEM
        # ---- multi-head causal self-attention (queries are pre-normed) ----
        xq = _layernorm(x, ln1_w_ref[li], ln1_b_ref[li])          # (BS, D)
        # Q projection (scale already folded into wq/bq at pack time);
        # fused K|V projection from the raw (un-normed) input.
        q = jnp.dot(xq.astype(mm), wq_ref[li],
                    preferred_element_type=jnp.float32) + bq_ref[li]
        kv = jnp.dot(x.astype(mm), wkv_ref[li],
                     preferred_element_type=jnp.float32) + bkv_ref[li]

        q3 = q.reshape(Bt, S, D)
        kv3 = kv.reshape(Bt, S, 2 * D)
        wo = wo_ref[li]                                           # (D, D)

        attn_acc = jnp.zeros((Bt, S, S), jnp.float32)
        attn_out = jnp.zeros((BS, D), jnp.float32)
        for h in range(num_heads):      # static unroll over heads
            qh = q3[:, :, h * hd:(h + 1) * hd]                    # (Bt, S, hd)
            kh = kv3[:, :, h * hd:(h + 1) * hd]
            vh = kv3[:, :, D + h * hd:D + (h + 1) * hd]
            # batched contraction on the last dim -- no explicit transpose
            s = jnp.einsum("bqd,bkd->bqk", qh.astype(mm), kh.astype(mm),
                           preferred_element_type=jnp.float32)    # (Bt, S, S)
            s = jnp.where(causal, s, NEG_LARGE)
            m = jnp.max(s, axis=-1, keepdims=True)
            e = jnp.exp(s - m)
            p = e * pl.reciprocal(jnp.sum(e, axis=-1, keepdims=True), approx=True)
            attn_acc = attn_acc + p
            ctx = jnp.einsum("bqk,bkd->bqd", p.astype(mm), vh.astype(mm),
                             preferred_element_type=jnp.float32)  # (Bt, S, hd)
            # fold the head straight into the output projection: no ctx scratch,
            # no partial-lane stores.
            attn_out = attn_out + jnp.dot(
                ctx.reshape(BS, hd).astype(mm), wo[h * hd:(h + 1) * hd, :],
                preferred_element_type=jnp.float32)
        attn_out = attn_out + bo_ref[li]
        # nn.MultiheadAttention default: average attention weights over heads
        attn_ref[li] = (attn_acc * inv_heads).astype(attn_ref.dtype)

        # ---- residual + LayerNorm + position-wise FFN ----
        x = xq + attn_out
        x = _layernorm(x, ln2_w_ref[li], ln2_b_ref[li])
        resid = x
        h1 = jnp.maximum(
            jnp.dot(x.astype(mm), w1_ref[li],
                    preferred_element_type=jnp.float32) + b1_ref[li], 0.0)
        x = jnp.dot(h1.astype(mm), w2_ref[li],
                    preferred_element_type=jnp.float32) + b2_ref[li]
        x = (x + resid) * mask

    out = _layernorm(x, fin_w_ref[...], fin_b_ref[...])
    out_ref[...] = out.reshape(Bt, S, D).astype(out_ref.dtype)


# ---------------------------------------------------------------------------
# Wrappers
# ---------------------------------------------------------------------------
def pack_params(params, *, num_heads, matmul_dtype=jnp.bfloat16):
    """Stack per-block weights along a leading axis, fuse K|V, fold the
    1/sqrt(head_dim) attention scale into Wq/bq (in f32), and cast matmul
    operands to `matmul_dtype` (bf16 recommended on v6e/v7x; pass jnp.float32
    for exact-f32 matmuls). LayerNorm weights and all biases stay f32."""
    blocks = params["blocks"]
    dim = params["item_embedding"].shape[-1]
    scale = 1.0 / float(dim // num_heads) ** 0.5

    def stack(name):
        return jnp.stack([blk[name] for blk in blocks], axis=0)

    return {
        "item_emb": params["item_embedding"],
        "pos": params["position_embedding"],
        "ln1_w": stack("ln1_w"), "ln1_b": stack("ln1_b"),
        "wq": (stack("wq") * scale).astype(matmul_dtype),
        "bq": stack("bq") * scale,
        "wkv": jnp.concatenate([stack("wk"), stack("wv")],
                               axis=-1).astype(matmul_dtype),
        "bkv": jnp.concatenate([stack("bk"), stack("bv")], axis=-1),
        "wo": stack("wo").astype(matmul_dtype), "bo": stack("bo"),
        "ln2_w": stack("ln2_w"), "ln2_b": stack("ln2_b"),
        "w1": stack("w1").astype(matmul_dtype), "b1": stack("b1"),
        "w2": stack("w2").astype(matmul_dtype), "b2": stack("b2"),
        "fin_w": params["seq_norm_w"], "fin_b": params["seq_norm_b"],
    }


_WEIGHT_ORDER = ("ln1_w", "ln1_b", "wq", "bq", "wkv", "bkv", "wo", "bo",
                 "ln2_w", "ln2_b", "w1", "b1", "w2", "b2", "fin_w", "fin_b")


def sasrec_forward(packed, input_ids, *, num_items, num_heads, batch_tile=None):
    """Returns (seq_emb, attentions) exactly like SASRec.forward."""
    item_emb = packed["item_emb"]
    B, S = input_ids.shape
    D = item_emb.shape[-1]
    L = packed["wq"].shape[0]
    Bt = B if batch_tile is None else batch_tile
    assert B % Bt == 0, "batch_tile must divide the batch size"

    # embedding gather stays in plain JAX (glue); everything else is one kernel.
    seq_items = jnp.take(item_emb, input_ids.astype(jnp.int32), axis=0)  # (B,S,D)
    mask_flat = (input_ids != num_items).astype(jnp.float32).reshape(B * S, 1)

    weights = [packed[n] for n in _WEIGHT_ORDER]

    def resident(shape):   # whole array, same block every grid step
        nd = len(shape)
        return pl.BlockSpec(shape, lambda i, _nd=nd: (0,) * _nd)

    in_specs = [pl.BlockSpec((Bt, S, D), lambda i: (i, 0, 0)),
                resident(packed["pos"].shape),
                pl.BlockSpec((Bt * S, 1), lambda i: (i, 0))]
    in_specs += [resident(w.shape) for w in weights]

    out_specs = (pl.BlockSpec((Bt, S, D), lambda i: (i, 0, 0)),
                 pl.BlockSpec((L, Bt, S, S), lambda i: (0, i, 0, 0)))

    seq_emb, attn = pl.pallas_call(
        functools.partial(sasrec_fused_kernel, num_heads=num_heads),
        out_shape=(jax.ShapeDtypeStruct((B, S, D), jnp.float32),
                   jax.ShapeDtypeStruct((L, B, S, S), jnp.float32)),
        grid=(B // Bt,),
        in_specs=in_specs,
        out_specs=out_specs,
        compiler_params=pltpu.CompilerParams(
            dimension_semantics=("parallel",)),
    )(seq_items, packed["pos"], mask_flat, *weights)

    return seq_emb, [attn[li] for li in range(L)]


# ---------------------------------------------------------------------------
# Pure-JAX f32 reference (for validation)
# ---------------------------------------------------------------------------
def sasrec_reference(params, input_ids, *, num_items, num_heads):
    x = jnp.take(params["item_embedding"], input_ids.astype(jnp.int32), axis=0)
    mask = (input_ids != num_items).astype(jnp.float32)[..., None]
    x = (x + params["position_embedding"][None]) * mask
    B, S, D = x.shape
    hd = D // num_heads
    causal = jnp.arange(S)[None, :] <= jnp.arange(S)[:, None]

    def ln(v, w, b):
        mu = v.mean(-1, keepdims=True)
        var = ((v - mu) ** 2).mean(-1, keepdims=True)
        return (v - mu) / jnp.sqrt(var + EPS) * w + b

    def split_heads(t):
        return t.reshape(B, S, num_heads, hd).transpose(0, 2, 1, 3)

    attns = []
    for blk in params["blocks"]:
        xq = ln(x, blk["ln1_w"], blk["ln1_b"])
        q = split_heads(xq @ blk["wq"] + blk["bq"])
        k = split_heads(x @ blk["wk"] + blk["bk"])
        v = split_heads(x @ blk["wv"] + blk["bv"])
        s = jnp.einsum("bhqd,bhkd->bhqk", q, k) / jnp.sqrt(float(hd))
        s = jnp.where(causal[None, None], s, -jnp.inf)
        p = jax.nn.softmax(s, axis=-1)
        attns.append(p.mean(axis=1))
        ctx = jnp.einsum("bhqk,bhkd->bhqd", p, v).transpose(0, 2, 1, 3).reshape(B, S, D)
        y = xq + ctx @ blk["wo"] + blk["bo"]
        y = ln(y, blk["ln2_w"], blk["ln2_b"])
        r = y
        y = jnp.maximum(y @ blk["w1"] + blk["b1"], 0.0) @ blk["w2"] + blk["b2"]
        x = (y + r) * mask
    return ln(x, params["seq_norm_w"], params["seq_norm_b"]), attns


# ---------------------------------------------------------------------------
# Deterministic parameter init (synthetic, no checkpoint)
# ---------------------------------------------------------------------------
def init_params(key, *, num_items, seq_len, dim, num_blocks):
    ff = dim  # TransformerBlock(dim, heads, dim_feedforward=dim, ...)
    keys = jax.random.split(key, 2 + num_blocks)

    def nrm(k, shape, scale=0.05):
        return (scale * jax.random.normal(k, shape)).astype(jnp.float32)

    params = {
        "item_embedding": nrm(keys[0], (num_items + 2, dim)),
        "position_embedding": nrm(keys[1], (seq_len, dim)),
        "seq_norm_w": jnp.ones((1, dim), jnp.float32),
        "seq_norm_b": jnp.zeros((1, dim), jnp.float32),
        "blocks": [],
    }
    for i in range(num_blocks):
        bk = jax.random.split(keys[2 + i], 6)
        blk = {
            "ln1_w": jnp.ones((1, dim), jnp.float32),
            "ln1_b": jnp.zeros((1, dim), jnp.float32),
            "wq": nrm(bk[0], (dim, dim)), "bq": jnp.zeros((1, dim), jnp.float32),
            "wk": nrm(bk[1], (dim, dim)), "bk": jnp.zeros((1, dim), jnp.float32),
            "wv": nrm(bk[2], (dim, dim)), "bv": jnp.zeros((1, dim), jnp.float32),
            "wo": nrm(bk[3], (dim, dim)), "bo": jnp.zeros((1, dim), jnp.float32),
            "ln2_w": jnp.ones((1, dim), jnp.float32),
            "ln2_b": jnp.zeros((1, dim), jnp.float32),
            "w1": nrm(bk[4], (dim, ff)), "b1": jnp.zeros((1, ff), jnp.float32),
            "w2": nrm(bk[5], (ff, dim)), "b2": jnp.zeros((1, dim), jnp.float32),
        }
        params["blocks"].append(blk)
    return params


if __name__ == "__main__":
    # small config consistent with the module
    B = 2
    NUM_ITEMS = 20
    SEQ_LEN = 16
    DIM = 64
    NUM_HEADS = 2
    NUM_BLOCKS = 2

    key = jax.random.PRNGKey(0)
    pkey, ikey = jax.random.split(key)
    params = init_params(pkey, num_items=NUM_ITEMS, seq_len=SEQ_LEN,
                         dim=DIM, num_blocks=NUM_BLOCKS)

    input_ids = jax.random.randint(ikey, (B, SEQ_LEN), 0, NUM_ITEMS)
    # mark a few leading positions as padding (id == num_items) to exercise the mask
    input_ids = input_ids.at[:, :3].set(NUM_ITEMS)

    # bf16 matmul operands (v6e/v7x MXU path); elementwise math stays f32.
    packed = pack_params(params, num_heads=NUM_HEADS, matmul_dtype=jnp.bfloat16)
    seq_emb, attentions = sasrec_forward(packed, input_ids,
                                         num_items=NUM_ITEMS, num_heads=NUM_HEADS)
    jax.block_until_ready(seq_emb)
    for a in attentions:
        jax.block_until_ready(a)

    assert seq_emb.shape == (B, SEQ_LEN, DIM)
    assert len(attentions) == NUM_BLOCKS
    assert all(a.shape == (B, SEQ_LEN, SEQ_LEN) for a in attentions)

    # sanity check against a pure-JAX f32 reference (loose tolerance: the kernel
    # uses bf16 matmul operands and the EUP approximate reciprocal for softmax).
    ref_emb, ref_attn = sasrec_reference(params, input_ids,
                                         num_items=NUM_ITEMS, num_heads=NUM_HEADS)
    np.testing.assert_allclose(np.asarray(seq_emb), np.asarray(ref_emb),
                               atol=5e-2, rtol=5e-2)
    for a, ra in zip(attentions, ref_attn):
        np.testing.assert_allclose(np.asarray(a), np.asarray(ra), atol=2e-2, rtol=0)

    print("KERNEL_OK")
</pallas_src>

<mosaic_0001>
module attributes {stable_mosaic.version = 11 : i64} {
  func.func @sasrec_fused_kernel(%arg0: i32, %arg1: memref<2x16x64xf32, #tpu.memory_space<vmem>>, %arg2: memref<16x64xf32, #tpu.memory_space<vmem>>, %arg3: memref<32x1xf32, #tpu.memory_space<vmem>>, %arg4: memref<2x1x64xf32, #tpu.memory_space<vmem>>, %arg5: memref<2x1x64xf32, #tpu.memory_space<vmem>>, %arg6: memref<2x64x64xbf16, #tpu.memory_space<vmem>>, %arg7: memref<2x1x64xf32, #tpu.memory_space<vmem>>, %arg8: memref<2x64x128xbf16, #tpu.memory_space<vmem>>, %arg9: memref<2x1x128xf32, #tpu.memory_space<vmem>>, %arg10: memref<2x64x64xbf16, #tpu.memory_space<vmem>>, %arg11: memref<2x1x64xf32, #tpu.memory_space<vmem>>, %arg12: memref<2x1x64xf32, #tpu.memory_space<vmem>>, %arg13: memref<2x1x64xf32, #tpu.memory_space<vmem>>, %arg14: memref<2x64x64xbf16, #tpu.memory_space<vmem>>, %arg15: memref<2x1x64xf32, #tpu.memory_space<vmem>>, %arg16: memref<2x64x64xbf16, #tpu.memory_space<vmem>>, %arg17: memref<2x1x64xf32, #tpu.memory_space<vmem>>, %arg18: memref<1x64xf32, #tpu.memory_space<vmem>>, %arg19: memref<1x64xf32, #tpu.memory_space<vmem>>, %arg20: memref<2x16x64xf32, #tpu.memory_space<vmem>>, %arg21: memref<2x2x16x16xf32, #tpu.memory_space<vmem>>) attributes {dimension_semantics = [#tpu.dimension_semantics<parallel>], iteration_bounds = array<i64: 1>, scalar_prefetch = 0 : i64, scratch_operands = 0 : i64, tpu.core_type = #tpu.core_type<tc>, window_params = [{transform_indices = @transform_0, window_bounds = array<i64: 2, 16, 64>}, {pipeline_mode = #tpu.pipeline_mode<synchronous>, transform_indices = @transform_1, window_bounds = array<i64: 16, 64>}, {transform_indices = @transform_2, window_bounds = array<i64: 32, 1>}, {pipeline_mode = #tpu.pipeline_mode<synchronous>, transform_indices = @transform_3, window_bounds = array<i64: 2, 1, 64>}, {pipeline_mode = #tpu.pipeline_mode<synchronous>, transform_indices = @transform_4, window_bounds = array<i64: 2, 1, 64>}, {pipeline_mode = #tpu.pipeline_mode<synchronous>, transform_indices = @transform_5, window_bounds = array<i64: 2, 64, 64>}, {pipeline_mode = #tpu.pipeline_mode<synchronous>, transform_indices = @transform_6, window_bounds = array<i64: 2, 1, 64>}, {pipeline_mode = #tpu.pipeline_mode<synchronous>, transform_indices = @transform_7, window_bounds = array<i64: 2, 64, 128>}, {pipeline_mode = #tpu.pipeline_mode<synchronous>, transform_indices = @transform_8, window_bounds = array<i64: 2, 1, 128>}, {pipeline_mode = #tpu.pipeline_mode<synchronous>, transform_indices = @transform_9, window_bounds = array<i64: 2, 64, 64>}, {pipeline_mode = #tpu.pipeline_mode<synchronous>, transform_indices = @transform_10, window_bounds = array<i64: 2, 1, 64>}, {pipeline_mode = #tpu.pipeline_mode<synchronous>, transform_indices = @transform_11, window_bounds = array<i64: 2, 1, 64>}, {pipeline_mode = #tpu.pipeline_mode<synchronous>, transform_indices = @transform_12, window_bounds = array<i64: 2, 1, 64>}, {pipeline_mode = #tpu.pipeline_mode<synchronous>, transform_indices = @transform_13, window_bounds = array<i64: 2, 64, 64>}, {pipeline_mode = #tpu.pipeline_mode<synchronous>, transform_indices = @transform_14, window_bounds = array<i64: 2, 1, 64>}, {pipeline_mode = #tpu.pipeline_mode<synchronous>, transform_indices = @transform_15, window_bounds = array<i64: 2, 64, 64>}, {pipeline_mode = #tpu.pipeline_mode<synchronous>, transform_indices = @transform_16, window_bounds = array<i64: 2, 1, 64>}, {pipeline_mode = #tpu.pipeline_mode<synchronous>, transform_indices = @transform_17, window_bounds = array<i64: 1, 64>}, {pipeline_mode = #tpu.pipeline_mode<synchronous>, transform_indices = @transform_18, window_bounds = array<i64: 1, 64>}, {transform_indices = @transform_19, window_bounds = array<i64: 2, 16, 64>}, {transform_indices = @transform_20, window_bounds = array<i64: 2, 2, 16, 16>}]} {
    %c0 = arith.constant 0 : index
    %c0_0 = arith.constant 0 : index
    %0 = vector.load %arg3[%c0, %c0_0] : memref<32x1xf32, #tpu.memory_space<vmem>>, vector<32x1xf32>
    %c0_1 = arith.constant 0 : index
    %c0_2 = arith.constant 0 : index
    %c0_3 = arith.constant 0 : index
    %1 = vector.load %arg1[%c0_1, %c0_2, %c0_3] : memref<2x16x64xf32, #tpu.memory_space<vmem>>, vector<2x16x64xf32>
    %c0_4 = arith.constant 0 : index
    %c0_5 = arith.constant 0 : index
    %2 = vector.load %arg2[%c0_4, %c0_5] : memref<16x64xf32, #tpu.memory_space<vmem>>, vector<16x64xf32>
    %3 = vector.shape_cast %2 : vector<16x64xf32> to vector<1x16x64xf32>
    %4 = vector.broadcast %3 : vector<1x16x64xf32> to vector<2x16x64xf32>
    %5 = arith.addf %1, %4 : vector<2x16x64xf32>
    %6 = vector.shape_cast %5 : vector<2x16x64xf32> to vector<32x64xf32>
    %7 = vector.broadcast %0 : vector<32x1xf32> to vector<32x64xf32>
    %8 = arith.mulf %6, %7 : vector<32x64xf32>
    %9 = tpu.iota {dimensions = array<i32: 0>} : vector<16x16xi32>
    %10 = tpu.iota {dimensions = array<i32: 1>} : vector<16x16xi32>
    %11 = arith.cmpi sle, %10, %9 : vector<16x16xi32>
    %12 = vector.shape_cast %11 : vector<16x16xi1> to vector<1x16x16xi1>
    %c0_6 = arith.constant 0 : index
    %c0_7 = arith.constant 0 : index
    %c0_8 = arith.constant 0 : index
    %13 = vector.load %arg4[%c0_6, %c0_7, %c0_8] : memref<2x1x64xf32, #tpu.memory_space<vmem>>, vector<1x1x64xf32>
    %14 = vector.shape_cast %13 : vector<1x1x64xf32> to vector<1x64xf32>
    %c0_9 = arith.constant 0 : index
    %c0_10 = arith.constant 0 : index
    %c0_11 = arith.constant 0 : index
    %15 = vector.load %arg5[%c0_9, %c0_10, %c0_11] : memref<2x1x64xf32, #tpu.memory_space<vmem>>, vector<1x1x64xf32>
    %16 = vector.shape_cast %15 : vector<1x1x64xf32> to vector<1x64xf32>
    %cst = arith.constant dense<0.000000e+00> : vector<32xf32>
    %17 = vector.multi_reduction <add>, %8, %cst [1] : vector<32x64xf32> to vector<32xf32>
    %18 = vector.shape_cast %17 : vector<32xf32> to vector<32x1xf32>
    %cst_12 = arith.constant 6.400000e+01 : f32
    %19 = vector.broadcast %cst_12 : f32 to vector<32x1xf32>
    %20 = arith.divf %18, %19 : vector<32x1xf32>
    %21 = vector.broadcast %20 : vector<32x1xf32> to vector<32x64xf32>
    %22 = arith.subf %8, %21 : vector<32x64xf32>
    %23 = arith.mulf %22, %22 : vector<32x64xf32>
    %cst_13 = arith.constant dense<0.000000e+00> : vector<32xf32>
    %24 = vector.multi_reduction <add>, %23, %cst_13 [1] : vector<32x64xf32> to vector<32xf32>
    %25 = vector.shape_cast %24 : vector<32xf32> to vector<32x1xf32>
    %cst_14 = arith.constant 6.400000e+01 : f32
    %26 = vector.broadcast %cst_14 : f32 to vector<32x1xf32>
    %27 = arith.divf %25, %26 : vector<32x1xf32>
    %28 = vector.broadcast %20 : vector<32x1xf32> to vector<32x64xf32>
    %29 = arith.subf %8, %28 : vector<32x64xf32>
    %cst_15 = arith.constant 9.99999974E-6 : f32
    %30 = vector.broadcast %cst_15 : f32 to vector<32x1xf32>
    %31 = arith.addf %27, %30 : vector<32x1xf32>
    %32 = math.rsqrt %31 : vector<32x1xf32>
    %33 = vector.broadcast %32 : vector<32x1xf32> to vector<32x64xf32>
    %34 = arith.mulf %29, %33 : vector<32x64xf32>
    %35 = vector.broadcast %14 : vector<1x64xf32> to vector<32x64xf32>
    %36 = arith.mulf %34, %35 : vector<32x64xf32>
    %37 = vector.broadcast %16 : vector<1x64xf32> to vector<32x64xf32>
    %38 = arith.addf %36, %37 : vector<32x64xf32>
    %39 = arith.truncf %38 : vector<32x64xf32> to vector<32x64xbf16>
    %c0_16 = arith.constant 0 : index
    %c0_17 = arith.constant 0 : index
    %c0_18 = arith.constant 0 : index
    %40 = vector.load %arg6[%c0_16, %c0_17, %c0_18] : memref<2x64x64xbf16, #tpu.memory_space<vmem>>, vector<1x64x64xbf16>
    %41 = vector.shape_cast %40 : vector<1x64x64xbf16> to vector<64x64xbf16>
    %cst_19 = arith.constant dense<0.000000e+00> : vector<32x64xf32>
    %42 = tpu.matmul %39, %41, %cst_19 {dimension_numbers = #tpu.dot_dimension_numbers<[1], [0], [0], [1], [0, 0, 1, 1], [], []>} : vector<32x64xbf16>, vector<64x64xbf16>, vector<32x64xf32> -> vector<32x64xf32>
    %c0_20 = arith.constant 0 : index
    %c0_21 = arith.constant 0 : index
    %c0_22 = arith.constant 0 : index
    %43 = vector.load %arg7[%c0_20, %c0_21, %c0_22] : memref<2x1x64xf32, #tpu.memory_space<vmem>>, vector<1x1x64xf32>
    %44 = vector.shape_cast %43 : vector<1x1x64xf32> to vector<1x64xf32>
    %45 = vector.broadcast %44 : vector<1x64xf32> to vector<32x64xf32>
    %46 = arith.addf %42, %45 : vector<32x64xf32>
    %47 = arith.truncf %8 : vector<32x64xf32> to vector<32x64xbf16>
    %c0_23 = arith.constant 0 : index
    %c0_24 = arith.constant 0 : index
    %c0_25 = arith.constant 0 : index
    %48 = vector.load %arg8[%c0_23, %c0_24, %c0_25] : memref<2x64x128xbf16, #tpu.memory_space<vmem>>, vector<1x64x128xbf16>
    %49 = vector.shape_cast %48 : vector<1x64x128xbf16> to vector<64x128xbf16>
    %cst_26 = arith.constant dense<0.000000e+00> : vector<32x128xf32>
    %50 = tpu.matmul %47, %49, %cst_26 {dimension_numbers = #tpu.dot_dimension_numbers<[1], [0], [0], [1], [0, 0, 1, 1], [], []>} : vector<32x64xbf16>, vector<64x128xbf16>, vector<32x128xf32> -> vector<32x128xf32>
    %c0_27 = arith.constant 0 : index
    %c0_28 = arith.constant 0 : index
    %c0_29 = arith.constant 0 : index
    %51 = vector.load %arg9[%c0_27, %c0_28, %c0_29] : memref<2x1x128xf32, #tpu.memory_space<vmem>>, vector<1x1x128xf32>
    %52 = vector.shape_cast %51 : vector<1x1x128xf32> to vector<1x128xf32>
    %53 = vector.broadcast %52 : vector<1x128xf32> to vector<32x128xf32>
    %54 = arith.addf %50, %53 : vector<32x128xf32>
    %55 = vector.shape_cast %46 : vector<32x64xf32> to vector<2x16x64xf32>
    %56 = vector.shape_cast %54 : vector<32x128xf32> to vector<2x16x128xf32>
    %c0_30 = arith.constant 0 : index
    %c0_31 = arith.constant 0 : index
    %c0_32 = arith.constant 0 : index
    %57 = vector.load %arg10[%c0_30, %c0_31, %c0_32] : memref<2x64x64xbf16, #tpu.memory_space<vmem>>, vector<1x64x64xbf16>
    %58 = vector.shape_cast %57 : vector<1x64x64xbf16> to vector<64x64xbf16>
    %cst_33 = arith.constant 0.000000e+00 : f32
    %59 = vector.broadcast %cst_33 : f32 to vector<2x16x16xf32>
    %cst_34 = arith.constant 0.000000e+00 : f32
    %60 = vector.broadcast %cst_34 : f32 to vector<32x64xf32>
    %61 = vector.extract_strided_slice %55 {offsets = [0, 0, 0], sizes = [2, 16, 32], strides = [1, 1, 1]} : vector<2x16x64xf32> to vector<2x16x32xf32>
    %62 = vector.extract_strided_slice %56 {offsets = [0, 0, 0], sizes = [2, 16, 32], strides = [1, 1, 1]} : vector<2x16x128xf32> to vector<2x16x32xf32>
    %63 = vector.extract_strided_slice %56 {offsets = [0, 0, 64], sizes = [2, 16, 32], strides = [1, 1, 1]} : vector<2x16x128xf32> to vector<2x16x32xf32>
    %64 = arith.truncf %61 : vector<2x16x32xf32> to vector<2x16x32xbf16>
    %65 = arith.truncf %62 : vector<2x16x32xf32> to vector<2x16x32xbf16>
    "tpu.trace_start"() <{level = 10 : i32, message = "bqd,bkd->bqk"}> : () -> ()
    %cst_35 = arith.constant dense<0.000000e+00> : vector<2x16x16xf32>
    %66 = tpu.matmul %64, %65, %cst_35 {dimension_numbers = #tpu.dot_dimension_numbers<[2], [2], [1], [1], [0, 0, 0, 1, 1, 1], [0], [0]>} : vector<2x16x32xbf16>, vector<2x16x32xbf16>, vector<2x16x16xf32> -> vector<2x16x16xf32>
    %cst_36 = arith.constant -1.000000e+30 : f32
    "tpu.trace_stop"() : () -> ()
    %67 = vector.shape_cast %12 : vector<1x16x16xi1> to vector<1x16x16xi1>
    %68 = vector.broadcast %67 : vector<1x16x16xi1> to vector<2x16x16xi1>
    %69 = vector.broadcast %cst_36 : f32 to vector<2x16x16xf32>
    %70 = arith.select %68, %66, %69 : vector<2x16x16xi1>, vector<2x16x16xf32>
    %cst_37 = arith.constant dense<0xFF800000> : vector<2x16xf32>
    %71 = vector.multi_reduction <maximumf>, %70, %cst_37 [2] : vector<2x16x16xf32> to vector<2x16xf32>
    %72 = vector.shape_cast %71 : vector<2x16xf32> to vector<2x16x1xf32>
    %73 = vector.broadcast %72 : vector<2x16x1xf32> to vector<2x16x16xf32>
    %74 = arith.subf %70, %73 : vector<2x16x16xf32>
    %75 = math.exp %74 : vector<2x16x16xf32>
    %cst_38 = arith.constant dense<0.000000e+00> : vector<2x16xf32>
    %76 = vector.multi_reduction <add>, %75, %cst_38 [2] : vector<2x16x16xf32> to vector<2x16xf32>
    %77 = vector.shape_cast %76 : vector<2x16xf32> to vector<2x16x1xf32>
    %78 = tpu.reciprocal %77 {approx = true} : vector<2x16x1xf32> -> vector<2x16x1xf32>
    %79 = vector.broadcast %78 : vector<2x16x1xf32> to vector<2x16x16xf32>
    %80 = arith.mulf %75, %79 : vector<2x16x16xf32>
    %81 = arith.addf %59, %80 : vector<2x16x16xf32>
    %82 = arith.truncf %80 : vector<2x16x16xf32> to vector<2x16x16xbf16>
    %83 = arith.truncf %63 : vector<2x16x32xf32> to vector<2x16x32xbf16>
    "tpu.trace_start"() <{level = 10 : i32, message = "bqk,bkd->bqd"}> : () -> ()
    %cst_39 = arith.constant dense<0.000000e+00> : vector<2x16x32xf32>
    %84 = tpu.matmul %82, %83, %cst_39 {dimension_numbers = #tpu.dot_dimension_numbers<[2], [1], [1], [2], [0, 0, 0, 1, 1, 2], [0], [0]>} : vector<2x16x16xbf16>, vector<2x16x32xbf16>, vector<2x16x32xf32> -> vector<2x16x32xf32>
    "tpu.trace_stop"() : () -> ()
    %85 = vector.shape_cast %84 : vector<2x16x32xf32> to vector<32x32xf32>
    %86 = arith.truncf %85 : vector<32x32xf32> to vector<32x32xbf16>
    %87 = vector.extract_strided_slice %58 {offsets = [0, 0], sizes = [32, 64], strides = [1, 1]} : vector<64x64xbf16> to vector<32x64xbf16>
    %cst_40 = arith.constant dense<0.000000e+00> : vector<32x64xf32>
    %88 = tpu.matmul %86, %87, %cst_40 {dimension_numbers = #tpu.dot_dimension_numbers<[1], [0], [0], [1], [0, 0, 1, 1], [], []>} : vector<32x32xbf16>, vector<32x64xbf16>, vector<32x64xf32> -> vector<32x64xf32>
    %89 = arith.addf %60, %88 : vector<32x64xf32>
    %90 = vector.extract_strided_slice %55 {offsets = [0, 0, 32], sizes = [2, 16, 32], strides = [1, 1, 1]} : vector<2x16x64xf32> to vector<2x16x32xf32>
    %91 = vector.extract_strided_slice %56 {offsets = [0, 0, 32], sizes = [2, 16, 32], strides = [1, 1, 1]} : vector<2x16x128xf32> to vector<2x16x32xf32>
    %92 = vector.extract_strided_slice %56 {offsets = [0, 0, 96], sizes = [2, 16, 32], strides = [1, 1, 1]} : vector<2x16x128xf32> to vector<2x16x32xf32>
    %93 = arith.truncf %90 : vector<2x16x32xf32> to vector<2x16x32xbf16>
    %94 = arith.truncf %91 : vector<2x16x32xf32> to vector<2x16x32xbf16>
    "tpu.trace_start"() <{level = 10 : i32, message = "bqd,bkd->bqk"}> : () -> ()
    %cst_41 = arith.constant dense<0.000000e+00> : vector<2x16x16xf32>
    %95 = tpu.matmul %93, %94, %cst_41 {dimension_numbers = #tpu.dot_dimension_numbers<[2], [2], [1], [1], [0, 0, 0, 1, 1, 1], [0], [0]>} : vector<2x16x32xbf16>, vector<2x16x32xbf16>, vector<2x16x16xf32> -> vector<2x16x16xf32>
    %cst_42 = arith.constant -1.000000e+30 : f32
    "tpu.trace_stop"() : () -> ()
    %96 = vector.shape_cast %12 : vector<1x16x16xi1> to vector<1x16x16xi1>
    %97 = vector.broadcast %96 : vector<1x16x16xi1> to vector<2x16x16xi1>
    %98 = vector.broadcast %cst_42 : f32 to vector<2x16x16xf32>
    %99 = arith.select %97, %95, %98 : vector<2x16x16xi1>, vector<2x16x16xf32>
    %cst_43 = arith.constant dense<0xFF800000> : vector<2x16xf32>
    %100 = vector.multi_reduction <maximumf>, %99, %cst_43 [2] : vector<2x16x16xf32> to vector<2x16xf32>
    %101 = vector.shape_cast %100 : vector<2x16xf32> to vector<2x16x1xf32>
    %102 = vector.broadcast %101 : vector<2x16x1xf32> to vector<2x16x16xf32>
    %103 = arith.subf %99, %102 : vector<2x16x16xf32>
    %104 = math.exp %103 : vector<2x16x16xf32>
    %cst_44 = arith.constant dense<0.000000e+00> : vector<2x16xf32>
    %105 = vector.multi_reduction <add>, %104, %cst_44 [2] : vector<2x16x16xf32> to vector<2x16xf32>
    %106 = vector.shape_cast %105 : vector<2x16xf32> to vector<2x16x1xf32>
    %107 = tpu.reciprocal %106 {approx = true} : vector<2x16x1xf32> -> vector<2x16x1xf32>
    %108 = vector.broadcast %107 : vector<2x16x1xf32> to vector<2x16x16xf32>
    %109 = arith.mulf %104, %108 : vector<2x16x16xf32>
    %110 = arith.addf %81, %109 : vector<2x16x16xf32>
    %111 = arith.truncf %109 : vector<2x16x16xf32> to vector<2x16x16xbf16>
    %112 = arith.truncf %92 : vector<2x16x32xf32> to vector<2x16x32xbf16>
    "tpu.trace_start"() <{level = 10 : i32, message = "bqk,bkd->bqd"}> : () -> ()
    %cst_45 = arith.constant dense<0.000000e+00> : vector<2x16x32xf32>
    %113 = tpu.matmul %111, %112, %cst_45 {dimension_numbers = #tpu.dot_dimension_numbers<[2], [1], [1], [2], [0, 0, 0, 1, 1, 2], [0], [0]>} : vector<2x16x16xbf16>, vector<2x16x32xbf16>, vector<2x16x32xf32> -> vector<2x16x32xf32>
    "tpu.trace_stop"() : () -> ()
    %114 = vector.shape_cast %113 : vector<2x16x32xf32> to vector<32x32xf32>
    %115 = arith.truncf %114 : vector<32x32xf32> to vector<32x32xbf16>
    %116 = vector.extract_strided_slice %58 {offsets = [32, 0], sizes = [32, 64], strides = [1, 1]} : vector<64x64xbf16> to vector<32x64xbf16>
    %cst_46 = arith.constant dense<0.000000e+00> : vector<32x64xf32>
    %117 = tpu.matmul %115, %116, %cst_46 {dimension_numbers = #tpu.dot_dimension_numbers<[1], [0], [0], [1], [0, 0, 1, 1], [], []>} : vector<32x32xbf16>, vector<32x64xbf16>, vector<32x64xf32> -> vector<32x64xf32>
    %118 = arith.addf %89, %117 : vector<32x64xf32>
    %c0_47 = arith.constant 0 : index
    %c0_48 = arith.constant 0 : index
    %c0_49 = arith.constant 0 : index
    %119 = vector.load %arg11[%c0_47, %c0_48, %c0_49] : memref<2x1x64xf32, #tpu.memory_space<vmem>>, vector<1x1x64xf32>
    %120 = vector.shape_cast %119 : vector<1x1x64xf32> to vector<1x64xf32>
    %121 = vector.broadcast %120 : vector<1x64xf32> to vector<32x64xf32>
    %122 = arith.addf %118, %121 : vector<32x64xf32>
    %cst_50 = arith.constant 5.000000e-01 : f32
    %123 = vector.broadcast %cst_50 : f32 to vector<2x16x16xf32>
    %124 = arith.mulf %110, %123 : vector<2x16x16xf32>
    %c0_51 = arith.constant 0 : index
    %c0_52 = arith.constant 0 : index
    %c0_53 = arith.constant 0 : index
    %c0_54 = arith.constant 0 : index
    %125 = vector.load %arg21[%c0_51, %c0_52, %c0_53, %c0_54] : memref<2x2x16x16xf32, #tpu.memory_space<vmem>>, vector<1x2x16x16xf32>
    %126 = vector.shape_cast %125 : vector<1x2x16x16xf32> to vector<2x16x16xf32>
    %127 = vector.shape_cast %124 : vector<2x16x16xf32> to vector<1x2x16x16xf32>
    tpu.vector_store %arg21[%c0_51, %c0_52, %c0_53, %c0_54], %127 {strides = array<i32>} : memref<2x2x16x16xf32, #tpu.memory_space<vmem>>, vector<1x2x16x16xf32>,
    %128 = arith.addf %38, %122 : vector<32x64xf32>
    %c0_55 = arith.constant 0 : index
    %c0_56 = arith.constant 0 : index
    %c0_57 = arith.constant 0 : index
    %129 = vector.load %arg12[%c0_55, %c0_56, %c0_57] : memref<2x1x64xf32, #tpu.memory_space<vmem>>, vector<1x1x64xf32>
    %130 = vector.shape_cast %129 : vector<1x1x64xf32> to vector<1x64xf32>
    %c0_58 = arith.constant 0 : index
    %c0_59 = arith.constant 0 : index
    %c0_60 = arith.constant 0 : index
    %131 = vector.load %arg13[%c0_58, %c0_59, %c0_60] : memref<2x1x64xf32, #tpu.memory_space<vmem>>, vector<1x1x64xf32>
    %132 = vector.shape_cast %131 : vector<1x1x64xf32> to vector<1x64xf32>
    %cst_61 = arith.constant dense<0.000000e+00> : vector<32xf32>
    %133 = vector.multi_reduction <add>, %128, %cst_61 [1] : vector<32x64xf32> to vector<32xf32>
    %134 = vector.shape_cast %133 : vector<32xf32> to vector<32x1xf32>
    %cst_62 = arith.constant 6.400000e+01 : f32
    %135 = vector.broadcast %cst_62 : f32 to vector<32x1xf32>
    %136 = arith.divf %134, %135 : vector<32x1xf32>
    %137 = vector.broadcast %136 : vector<32x1xf32> to vector<32x64xf32>
    %138 = arith.subf %128, %137 : vector<32x64xf32>
    %139 = arith.mulf %138, %138 : vector<32x64xf32>
    %cst_63 = arith.constant dense<0.000000e+00> : vector<32xf32>
    %140 = vector.multi_reduction <add>, %139, %cst_63 [1] : vector<32x64xf32> to vector<32xf32>
    %141 = vector.shape_cast %140 : vector<32xf32> to vector<32x1xf32>
    %cst_64 = arith.constant 6.400000e+01 : f32
    %142 = vector.broadcast %cst_64 : f32 to vector<32x1xf32>
    %143 = arith.divf %141, %142 : vector<32x1xf32>
    %144 = vector.broadcast %136 : vector<32x1xf32> to vector<32x64xf32>
    %145 = arith.subf %128, %144 : vector<32x64xf32>
    %cst_65 = arith.constant 9.99999974E-6 : f32
    %146 = vector.broadcast %cst_65 : f32 to vector<32x1xf32>
    %147 = arith.addf %143, %146 : vector<32x1xf32>
    %148 = math.rsqrt %147 : vector<32x1xf32>
    %149 = vector.broadcast %148 : vector<32x1xf32> to vector<32x64xf32>
    %150 = arith.mulf %145, %149 : vector<32x64xf32>
    %151 = vector.broadcast %130 : vector<1x64xf32> to vector<32x64xf32>
    %152 = arith.mulf %150, %151 : vector<32x64xf32>
    %153 = vector.broadcast %132 : vector<1x64xf32> to vector<32x64xf32>
    %154 = arith.addf %152, %153 : vector<32x64xf32>
    %155 = arith.truncf %154 : vector<32x64xf32> to vector<32x64xbf16>
    %c0_66 = arith.constant 0 : index
    %c0_67 = arith.constant 0 : index
    %c0_68 = arith.constant 0 : index
    %156 = vector.load %arg14[%c0_66, %c0_67, %c0_68] : memref<2x64x64xbf16, #tpu.memory_space<vmem>>, vector<1x64x64xbf16>
    %157 = vector.shape_cast %156 : vector<1x64x64xbf16> to vector<64x64xbf16>
    %cst_69 = arith.constant dense<0.000000e+00> : vector<32x64xf32>
    %158 = tpu.matmul %155, %157, %cst_69 {dimension_numbers = #tpu.dot_dimension_numbers<[1], [0], [0], [1], [0, 0, 1, 1], [], []>} : vector<32x64xbf16>, vector<64x64xbf16>, vector<32x64xf32> -> vector<32x64xf32>
    %c0_70 = arith.constant 0 : index
    %c0_71 = arith.constant 0 : index
    %c0_72 = arith.constant 0 : index
    %159 = vector.load %arg15[%c0_70, %c0_71, %c0_72] : memref<2x1x64xf32, #tpu.memory_space<vmem>>, vector<1x1x64xf32>
    %160 = vector.shape_cast %159 : vector<1x1x64xf32> to vector<1x64xf32>
    %161 = vector.broadcast %160 : vector<1x64xf32> to vector<32x64xf32>
    %162 = arith.addf %158, %161 : vector<32x64xf32>
    %cst_73 = arith.constant 0.000000e+00 : f32
    %163 = vector.broadcast %cst_73 : f32 to vector<32x64xf32>
    %164 = arith.maximumf %162, %163 : vector<32x64xf32>
    %165 = arith.truncf %164 : vector<32x64xf32> to vector<32x64xbf16>
    %c0_74 = arith.constant 0 : index
    %c0_75 = arith.constant 0 : index
    %c0_76 = arith.constant 0 : index
    %166 = vector.load %arg16[%c0_74, %c0_75, %c0_76] : memref<2x64x64xbf16, #tpu.memory_space<vmem>>, vector<1x64x64xbf16>
    %167 = vector.shape_cast %166 : vector<1x64x64xbf16> to vector<64x64xbf16>
    %cst_77 = arith.constant dense<0.000000e+00> : vector<32x64xf32>
    %168 = tpu.matmul %165, %167, %cst_77 {dimension_numbers = #tpu.dot_dimension_numbers<[1], [0], [0], [1], [0, 0, 1, 1], [], []>} : vector<32x64xbf16>, vector<64x64xbf16>, vector<32x64xf32> -> vector<32x64xf32>
    %c0_78 = arith.constant 0 : index
    %c0_79 = arith.constant 0 : index
    %c0_80 = arith.constant 0 : index
    %169 = vector.load %arg17[%c0_78, %c0_79, %c0_80] : memref<2x1x64xf32, #tpu.memory_space<vmem>>, vector<1x1x64xf32>
    %170 = vector.shape_cast %169 : vector<1x1x64xf32> to vector<1x64xf32>
    %171 = vector.broadcast %170 : vector<1x64xf32> to vector<32x64xf32>
    %172 = arith.addf %168, %171 : vector<32x64xf32>
    %173 = arith.addf %172, %154 : vector<32x64xf32>
    %174 = vector.broadcast %0 : vector<32x1xf32> to vector<32x64xf32>
    %175 = arith.mulf %173, %174 : vector<32x64xf32>
    %c1 = arith.constant 1 : index
    %c0_81 = arith.constant 0 : index
    %c0_82 = arith.constant 0 : index
    %176 = vector.load %arg4[%c1, %c0_81, %c0_82] : memref<2x1x64xf32, #tpu.memory_space<vmem>>, vector<1x1x64xf32>
    %177 = vector.shape_cast %176 : vector<1x1x64xf32> to vector<1x64xf32>
    %c1_83 = arith.constant 1 : index
    %c0_84 = arith.constant 0 : index
    %c0_85 = arith.constant 0 : index
    %178 = vector.load %arg5[%c1_83, %c0_84, %c0_85] : memref<2x1x64xf32, #tpu.memory_space<vmem>>, vector<1x1x64xf32>
    %179 = vector.shape_cast %178 : vector<1x1x64xf32> to vector<1x64xf32>
    %cst_86 = arith.constant dense<0.000000e+00> : vector<32xf32>
    %180 = vector.multi_reduction <add>, %175, %cst_86 [1] : vector<32x64xf32> to vector<32xf32>
    %181 = vector.shape_cast %180 : vector<32xf32> to vector<32x1xf32>
    %cst_87 = arith.constant 6.400000e+01 : f32
    %182 = vector.broadcast %cst_87 : f32 to vector<32x1xf32>
    %183 = arith.divf %181, %182 : vector<32x1xf32>
    %184 = vector.broadcast %183 : vector<32x1xf32> to vector<32x64xf32>
    %185 = arith.subf %175, %184 : vector<32x64xf32>
    %186 = arith.mulf %185, %185 : vector<32x64xf32>
    %cst_88 = arith.constant dense<0.000000e+00> : vector<32xf32>
    %187 = vector.multi_reduction <add>, %186, %cst_88 [1] : vector<32x64xf32> to vector<32xf32>
    %188 = vector.shape_cast %187 : vector<32xf32> to vector<32x1xf32>
    %cst_89 = arith.constant 6.400000e+01 : f32
    %189 = vector.broadcast %cst_89 : f32 to vector<32x1xf32>
    %190 = arith.divf %188, %189 : vector<32x1xf32>
    %191 = vector.broadcast %183 : vector<32x1xf32> to vector<32x64xf32>
    %192 = arith.subf %175, %191 : vector<32x64xf32>
    %cst_90 = arith.constant 9.99999974E-6 : f32
    %193 = vector.broadcast %cst_90 : f32 to vector<32x1xf32>
    %194 = arith.addf %190, %193 : vector<32x1xf32>
    %195 = math.rsqrt %194 : vector<32x1xf32>
    %196 = vector.broadcast %195 : vector<32x1xf32> to vector<32x64xf32>
    %197 = arith.mulf %192, %196 : vector<32x64xf32>
    %198 = vector.broadcast %177 : vector<1x64xf32> to vector<32x64xf32>
    %199 = arith.mulf %197, %198 : vector<32x64xf32>
    %200 = vector.broadcast %179 : vector<1x64xf32> to vector<32x64xf32>
    %201 = arith.addf %199, %200 : vector<32x64xf32>
    %202 = arith.truncf %201 : vector<32x64xf32> to vector<32x64xbf16>
    %c1_91 = arith.constant 1 : index
    %c0_92 = arith.constant 0 : index
    %c0_93 = arith.constant 0 : index
    %203 = vector.load %arg6[%c1_91, %c0_92, %c0_93] : memref<2x64x64xbf16, #tpu.memory_space<vmem>>, vector<1x64x64xbf16>
    %204 = vector.shape_cast %203 : vector<1x64x64xbf16> to vector<64x64xbf16>
    %cst_94 = arith.constant dense<0.000000e+00> : vector<32x64xf32>
    %205 = tpu.matmul %202, %204, %cst_94 {dimension_numbers = #tpu.dot_dimension_numbers<[1], [0], [0], [1], [0, 0, 1, 1], [], []>} : vector<32x64xbf16>, vector<64x64xbf16>, vector<32x64xf32> -> vector<32x64xf32>
    %c1_95 = arith.constant 1 : index
    %c0_96 = arith.constant 0 : index
    %c0_97 = arith.constant 0 : index
    %206 = vector.load %arg7[%c1_95, %c0_96, %c0_97] : memref<2x1x64xf32, #tpu.memory_space<vmem>>, vector<1x1x64xf32>
    %207 = vector.shape_cast %206 : vector<1x1x64xf32> to vector<1x64xf32>
    %208 = vector.broadcast %207 : vector<1x64xf32> to vector<32x64xf32>
    %209 = arith.addf %205, %208 : vector<32x64xf32>
    %210 = arith.truncf %175 : vector<32x64xf32> to vector<32x64xbf16>
    %c1_98 = arith.constant 1 : index
    %c0_99 = arith.constant 0 : index
    %c0_100 = arith.constant 0 : index
    %211 = vector.load %arg8[%c1_98, %c0_99, %c0_100] : memref<2x64x128xbf16, #tpu.memory_space<vmem>>, vector<1x64x128xbf16>
    %212 = vector.shape_cast %211 : vector<1x64x128xbf16> to vector<64x128xbf16>
    %cst_101 = arith.constant dense<0.000000e+00> : vector<32x128xf32>
    %213 = tpu.matmul %210, %212, %cst_101 {dimension_numbers = #tpu.dot_dimension_numbers<[1], [0], [0], [1], [0, 0, 1, 1], [], []>} : vector<32x64xbf16>, vector<64x128xbf16>, vector<32x128xf32> -> vector<32x128xf32>
    %c1_102 = arith.constant 1 : index
    %c0_103 = arith.constant 0 : index
    %c0_104 = arith.constant 0 : index
    %214 = vector.load %arg9[%c1_102, %c0_103, %c0_104] : memref<2x1x128xf32, #tpu.memory_space<vmem>>, vector<1x1x128xf32>
    %215 = vector.shape_cast %214 : vector<1x1x128xf32> to vector<1x128xf32>
    %216 = vector.broadcast %215 : vector<1x128xf32> to vector<32x128xf32>
    %217 = arith.addf %213, %216 : vector<32x128xf32>
    %218 = vector.shape_cast %209 : vector<32x64xf32> to vector<2x16x64xf32>
    %219 = vector.shape_cast %217 : vector<32x128xf32> to vector<2x16x128xf32>
    %c1_105 = arith.constant 1 : index
    %c0_106 = arith.constant 0 : index
    %c0_107 = arith.constant 0 : index
    %220 = vector.load %arg10[%c1_105, %c0_106, %c0_107] : memref<2x64x64xbf16, #tpu.memory_space<vmem>>, vector<1x64x64xbf16>
    %221 = vector.shape_cast %220 : vector<1x64x64xbf16> to vector<64x64xbf16>
    %cst_108 = arith.constant 0.000000e+00 : f32
    %222 = vector.broadcast %cst_108 : f32 to vector<2x16x16xf32>
    %cst_109 = arith.constant 0.000000e+00 : f32
    %223 = vector.broadcast %cst_109 : f32 to vector<32x64xf32>
    %224 = vector.extract_strided_slice %218 {offsets = [0, 0, 0], sizes = [2, 16, 32], strides = [1, 1, 1]} : vector<2x16x64xf32> to vector<2x16x32xf32>
    %225 = vector.extract_strided_slice %219 {offsets = [0, 0, 0], sizes = [2, 16, 32], strides = [1, 1, 1]} : vector<2x16x128xf32> to vector<2x16x32xf32>
    %226 = vector.extract_strided_slice %219 {offsets = [0, 0, 64], sizes = [2, 16, 32], strides = [1, 1, 1]} : vector<2x16x128xf32> to vector<2x16x32xf32>
    %227 = arith.truncf %224 : vector<2x16x32xf32> to vector<2x16x32xbf16>
    %228 = arith.truncf %225 : vector<2x16x32xf32> to vector<2x16x32xbf16>
    "tpu.trace_start"() <{level = 10 : i32, message = "bqd,bkd->bqk"}> : () -> ()
    %cst_110 = arith.constant dense<0.000000e+00> : vector<2x16x16xf32>
    %229 = tpu.matmul %227, %228, %cst_110 {dimension_numbers = #tpu.dot_dimension_numbers<[2], [2], [1], [1], [0, 0, 0, 1, 1, 1], [0], [0]>} : vector<2x16x32xbf16>, vector<2x16x32xbf16>, vector<2x16x16xf32> -> vector<2x16x16xf32>
    %cst_111 = arith.constant -1.000000e+30 : f32
    "tpu.trace_stop"() : () -> ()
    %230 = vector.shape_cast %12 : vector<1x16x16xi1> to vector<1x16x16xi1>
    %231 = vector.broadcast %230 : vector<1x16x16xi1> to vector<2x16x16xi1>
    %232 = vector.broadcast %cst_111 : f32 to vector<2x16x16xf32>
    %233 = arith.select %231, %229, %232 : vector<2x16x16xi1>, vector<2x16x16xf32>
    %cst_112 = arith.constant dense<0xFF800000> : vector<2x16xf32>
    %234 = vector.multi_reduction <maximumf>, %233, %cst_112 [2] : vector<2x16x16xf32> to vector<2x16xf32>
    %235 = vector.shape_cast %234 : vector<2x16xf32> to vector<2x16x1xf32>
    %236 = vector.broadcast %235 : vector<2x16x1xf32> to vector<2x16x16xf32>
    %237 = arith.subf %233, %236 : vector<2x16x16xf32>
    %238 = math.exp %237 : vector<2x16x16xf32>
    %cst_113 = arith.constant dense<0.000000e+00> : vector<2x16xf32>
    %239 = vector.multi_reduction <add>, %238, %cst_113 [2] : vector<2x16x16xf32> to vector<2x16xf32>
    %240 = vector.shape_cast %239 : vector<2x16xf32> to vector<2x16x1xf32>
    %241 = tpu.reciprocal %240 {approx = true} : vector<2x16x1xf32> -> vector<2x16x1xf32>
    %242 = vector.broadcast %241 : vector<2x16x1xf32> to vector<2x16x16xf32>
    %243 = arith.mulf %238, %242 : vector<2x16x16xf32>
    %244 = arith.addf %222, %243 : vector<2x16x16xf32>
    %245 = arith.truncf %243 : vector<2x16x16xf32> to vector<2x16x16xbf16>
    %246 = arith.truncf %226 : vector<2x16x32xf32> to vector<2x16x32xbf16>
    "tpu.trace_start"() <{level = 10 : i32, message = "bqk,bkd->bqd"}> : () -> ()
    %cst_114 = arith.constant dense<0.000000e+00> : vector<2x16x32xf32>
    %247 = tpu.matmul %245, %246, %cst_114 {dimension_numbers = #tpu.dot_dimension_numbers<[2], [1], [1], [2], [0, 0, 0, 1, 1, 2], [0], [0]>} : vector<2x16x16xbf16>, vector<2x16x32xbf16>, vector<2x16x32xf32> -> vector<2x16x32xf32>
    "tpu.trace_stop"() : () -> ()
    %248 = vector.shape_cast %247 : vector<2x16x32xf32> to vector<32x32xf32>
    %249 = arith.truncf %248 : vector<32x32xf32> to vector<32x32xbf16>
    %250 = vector.extract_strided_slice %221 {offsets = [0, 0], sizes = [32, 64], strides = [1, 1]} : vector<64x64xbf16> to vector<32x64xbf16>
    %cst_115 = arith.constant dense<0.000000e+00> : vector<32x64xf32>
    %251 = tpu.matmul %249, %250, %cst_115 {dimension_numbers = #tpu.dot_dimension_numbers<[1], [0], [0], [1], [0, 0, 1, 1], [], []>} : vector<32x32xbf16>, vector<32x64xbf16>, vector<32x64xf32> -> vector<32x64xf32>
    %252 = arith.addf %223, %251 : vector<32x64xf32>
    %253 = vector.extract_strided_slice %218 {offsets = [0, 0, 32], sizes = [2, 16, 32], strides = [1, 1, 1]} : vector<2x16x64xf32> to vector<2x16x32xf32>
    %254 = vector.extract_strided_slice %219 {offsets = [0, 0, 32], sizes = [2, 16, 32], strides = [1, 1, 1]} : vector<2x16x128xf32> to vector<2x16x32xf32>
    %255 = vector.extract_strided_slice %219 {offsets = [0, 0, 96], sizes = [2, 16, 32], strides = [1, 1, 1]} : vector<2x16x128xf32> to vector<2x16x32xf32>
    %256 = arith.truncf %253 : vector<2x16x32xf32> to vector<2x16x32xbf16>
    %257 = arith.truncf %254 : vector<2x16x32xf32> to vector<2x16x32xbf16>
    "tpu.trace_start"() <{level = 10 : i32, message = "bqd,bkd->bqk"}> : () -> ()
    %cst_116 = arith.constant dense<0.000000e+00> : vector<2x16x16xf32>
    %258 = tpu.matmul %256, %257, %cst_116 {dimension_numbers = #tpu.dot_dimension_numbers<[2], [2], [1], [1], [0, 0, 0, 1, 1, 1], [0], [0]>} : vector<2x16x32xbf16>, vector<2x16x32xbf16>, vector<2x16x16xf32> -> vector<2x16x16xf32>
    %cst_117 = arith.constant -1.000000e+30 : f32
    "tpu.trace_stop"() : () -> ()
    %259 = vector.shape_cast %12 : vector<1x16x16xi1> to vector<1x16x16xi1>
    %260 = vector.broadcast %259 : vector<1x16x16xi1> to vector<2x16x16xi1>
    %261 = vector.broadcast %cst_117 : f32 to vector<2x16x16xf32>
    %262 = arith.select %260, %258, %261 : vector<2x16x16xi1>, vector<2x16x16xf32>
    %cst_118 = arith.constant dense<0xFF800000> : vector<2x16xf32>
    %263 = vector.multi_reduction <maximumf>, %262, %cst_118 [2] : vector<2x16x16xf32> to vector<2x16xf32>
    %264 = vector.shape_cast %263 : vector<2x16xf32> to vector<2x16x1xf32>
    %265 = vector.broadcast %264 : vector<2x16x1xf32> to vector<2x16x16xf32>
    %266 = arith.subf %262, %265 : vector<2x16x16xf32>
    %267 = math.exp %266 : vector<2x16x16xf32>
    %cst_119 = arith.constant dense<0.000000e+00> : vector<2x16xf32>
    %268 = vector.multi_reduction <add>, %267, %cst_119 [2] : vector<2x16x16xf32> to vector<2x16xf32>
    %269 = vector.shape_cast %268 : vector<2x16xf32> to vector<2x16x1xf32>
    %270 = tpu.reciprocal %269 {approx = true} : vector<2x16x1xf32> -> vector<2x16x1xf32>
    %271 = vector.broadcast %270 : vector<2x16x1xf32> to vector<2x16x16xf32>
    %272 = arith.mulf %267, %271 : vector<2x16x16xf32>
    %273 = arith.addf %244, %272 : vector<2x16x16xf32>
    %274 = arith.truncf %272 : vector<2x16x16xf32> to vector<2x16x16xbf16>
    %275 = arith.truncf %255 : vector<2x16x32xf32> to vector<2x16x32xbf16>
    "tpu.trace_start"() <{level = 10 : i32, message = "bqk,bkd->bqd"}> : () -> ()
    %cst_120 = arith.constant dense<0.000000e+00> : vector<2x16x32xf32>
    %276 = tpu.matmul %274, %275, %cst_120 {dimension_numbers = #tpu.dot_dimension_numbers<[2], [1], [1], [2], [0, 0, 0, 1, 1, 2], [0], [0]>} : vector<2x16x16xbf16>, vector<2x16x32xbf16>, vector<2x16x32xf32> -> vector<2x16x32xf32>
    "tpu.trace_stop"() : () -> ()
    %277 = vector.shape_cast %276 : vector<2x16x32xf32> to vector<32x32xf32>
    %278 = arith.truncf %277 : vector<32x32xf32> to vector<32x32xbf16>
    %279 = vector.extract_strided_slice %221 {offsets = [32, 0], sizes = [32, 64], strides = [1, 1]} : vector<64x64xbf16> to vector<32x64xbf16>
    %cst_121 = arith.constant dense<0.000000e+00> : vector<32x64xf32>
    %280 = tpu.matmul %278, %279, %cst_121 {dimension_numbers = #tpu.dot_dimension_numbers<[1], [0], [0], [1], [0, 0, 1, 1], [], []>} : vector<32x32xbf16>, vector<32x64xbf16>, vector<32x64xf32> -> vector<32x64xf32>
    %281 = arith.addf %252, %280 : vector<32x64xf32>
    %c1_122 = arith.constant 1 : index
    %c0_123 = arith.constant 0 : index
    %c0_124 = arith.constant 0 : index
    %282 = vector.load %arg11[%c1_122, %c0_123, %c0_124] : memref<2x1x64xf32, #tpu.memory_space<vmem>>, vector<1x1x64xf32>
    %283 = vector.shape_cast %282 : vector<1x1x64xf32> to vector<1x64xf32>
    %284 = vector.broadcast %283 : vector<1x64xf32> to vector<32x64xf32>
    %285 = arith.addf %281, %284 : vector<32x64xf32>
    %cst_125 = arith.constant 5.000000e-01 : f32
    %286 = vector.broadcast %cst_125 : f32 to vector<2x16x16xf32>
    %287 = arith.mulf %273, %286 : vector<2x16x16xf32>
    %c1_126 = arith.constant 1 : index
    %c0_127 = arith.constant 0 : index
    %c0_128 = arith.constant 0 : index
    %c0_129 = arith.constant 0 : index
    %288 = vector.load %arg21[%c1_126, %c0_127, %c0_128, %c0_129] : memref<2x2x16x16xf32, #tpu.memory_space<vmem>>, vector<1x2x16x16xf32>
    %289 = vector.shape_cast %288 : vector<1x2x16x16xf32> to vector<2x16x16xf32>
    %290 = vector.shape_cast %287 : vector<2x16x16xf32> to vector<1x2x16x16xf32>
    tpu.vector_store %arg21[%c1_126, %c0_127, %c0_128, %c0_129], %290 {strides = array<i32>} : memref<2x2x16x16xf32, #tpu.memory_space<vmem>>, vector<1x2x16x16xf32>,
    %291 = arith.addf %201, %285 : vector<32x64xf32>
    %c1_130 = arith.constant 1 : index
    %c0_131 = arith.constant 0 : index
    %c0_132 = arith.constant 0 : index
    %292 = vector.load %arg12[%c1_130, %c0_131, %c0_132] : memref<2x1x64xf32, #tpu.memory_space<vmem>>, vector<1x1x64xf32>
    %293 = vector.shape_cast %292 : vector<1x1x64xf32> to vector<1x64xf32>
    %c1_133 = arith.constant 1 : index
    %c0_134 = arith.constant 0 : index
    %c0_135 = arith.constant 0 : index
    %294 = vector.load %arg13[%c1_133, %c0_134, %c0_135] : memref<2x1x64xf32, #tpu.memory_space<vmem>>, vector<1x1x64xf32>
    %295 = vector.shape_cast %294 : vector<1x1x64xf32> to vector<1x64xf32>
    %cst_136 = arith.constant dense<0.000000e+00> : vector<32xf32>
    %296 = vector.multi_reduction <add>, %291, %cst_136 [1] : vector<32x64xf32> to vector<32xf32>
    %297 = vector.shape_cast %296 : vector<32xf32> to vector<32x1xf32>
    %cst_137 = arith.constant 6.400000e+01 : f32
    %298 = vector.broadcast %cst_137 : f32 to vector<32x1xf32>
    %299 = arith.divf %297, %298 : vector<32x1xf32>
    %300 = vector.broadcast %299 : vector<32x1xf32> to vector<32x64xf32>
    %301 = arith.subf %291, %300 : vector<32x64xf32>
    %302 = arith.mulf %301, %301 : vector<32x64xf32>
    %cst_138 = arith.constant dense<0.000000e+00> : vector<32xf32>
    %303 = vector.multi_reduction <add>, %302, %cst_138 [1] : vector<32x64xf32> to vector<32xf32>
    %304 = vector.shape_cast %303 : vector<32xf32> to vector<32x1xf32>
    %cst_139 = arith.constant 6.400000e+01 : f32
    %305 = vector.broadcast %cst_139 : f32 to vector<32x1xf32>
    %306 = arith.divf %304, %305 : vector<32x1xf32>
    %307 = vector.broadcast %299 : vector<32x1xf32> to vector<32x64xf32>
    %308 = arith.subf %291, %307 : vector<32x64xf32>
    %cst_140 = arith.constant 9.99999974E-6 : f32
    %309 = vector.broadcast %cst_140 : f32 to vector<32x1xf32>
    %310 = arith.addf %306, %309 : vector<32x1xf32>
    %311 = math.rsqrt %310 : vector<32x1xf32>
    %312 = vector.broadcast %311 : vector<32x1xf32> to vector<32x64xf32>
    %313 = arith.mulf %308, %312 : vector<32x64xf32>
    %314 = vector.broadcast %293 : vector<1x64xf32> to vector<32x64xf32>
    %315 = arith.mulf %313, %314 : vector<32x64xf32>
    %316 = vector.broadcast %295 : vector<1x64xf32> to vector<32x64xf32>
    %317 = arith.addf %315, %316 : vector<32x64xf32>
    %318 = arith.truncf %317 : vector<32x64xf32> to vector<32x64xbf16>
    %c1_141 = arith.constant 1 : index
    %c0_142 = arith.constant 0 : index
    %c0_143 = arith.constant 0 : index
    %319 = vector.load %arg14[%c1_141, %c0_142, %c0_143] : memref<2x64x64xbf16, #tpu.memory_space<vmem>>, vector<1x64x64xbf16>
    %320 = vector.shape_cast %319 : vector<1x64x64xbf16> to vector<64x64xbf16>
    %cst_144 = arith.constant dense<0.000000e+00> : vector<32x64xf32>
    %321 = tpu.matmul %318, %320, %cst_144 {dimension_numbers = #tpu.dot_dimension_numbers<[1], [0], [0], [1], [0, 0, 1, 1], [], []>} : vector<32x64xbf16>, vector<64x64xbf16>, vector<32x64xf32> -> vector<32x64xf32>
    %c1_145 = arith.constant 1 : index
    %c0_146 = arith.constant 0 : index
    %c0_147 = arith.constant 0 : index
    %322 = vector.load %arg15[%c1_145, %c0_146, %c0_147] : memref<2x1x64xf32, #tpu.memory_space<vmem>>, vector<1x1x64xf32>
    %323 = vector.shape_cast %322 : vector<1x1x64xf32> to vector<1x64xf32>
    %324 = vector.broadcast %323 : vector<1x64xf32> to vector<32x64xf32>
    %325 = arith.addf %321, %324 : vector<32x64xf32>
    %cst_148 = arith.constant 0.000000e+00 : f32
    %326 = vector.broadcast %cst_148 : f32 to vector<32x64xf32>
    %327 = arith.maximumf %325, %326 : vector<32x64xf32>
    %328 = arith.truncf %327 : vector<32x64xf32> to vector<32x64xbf16>
    %c1_149 = arith.constant 1 : index
    %c0_150 = arith.constant 0 : index
    %c0_151 = arith.constant 0 : index
    %329 = vector.load %arg16[%c1_149, %c0_150, %c0_151] : memref<2x64x64xbf16, #tpu.memory_space<vmem>>, vector<1x64x64xbf16>
    %330 = vector.shape_cast %329 : vector<1x64x64xbf16> to vector<64x64xbf16>
    %cst_152 = arith.constant dense<0.000000e+00> : vector<32x64xf32>
    %331 = tpu.matmul %328, %330, %cst_152 {dimension_numbers = #tpu.dot_dimension_numbers<[1], [0], [0], [1], [0, 0, 1, 1], [], []>} : vector<32x64xbf16>, vector<64x64xbf16>, vector<32x64xf32> -> vector<32x64xf32>
    %c1_153 = arith.constant 1 : index
    %c0_154 = arith.constant 0 : index
    %c0_155 = arith.constant 0 : index
    %332 = vector.load %arg17[%c1_153, %c0_154, %c0_155] : memref<2x1x64xf32, #tpu.memory_space<vmem>>, vector<1x1x64xf32>
    %333 = vector.shape_cast %332 : vector<1x1x64xf32> to vector<1x64xf32>
    %334 = vector.broadcast %333 : vector<1x64xf32> to vector<32x64xf32>
    %335 = arith.addf %331, %334 : vector<32x64xf32>
    %336 = arith.addf %335, %317 : vector<32x64xf32>
    %337 = vector.broadcast %0 : vector<32x1xf32> to vector<32x64xf32>
    %338 = arith.mulf %336, %337 : vector<32x64xf32>
    %c0_156 = arith.constant 0 : index
    %c0_157 = arith.constant 0 : index
    %339 = vector.load %arg18[%c0_156, %c0_157] : memref<1x64xf32, #tpu.memory_space<vmem>>, vector<1x64xf32>
    %c0_158 = arith.constant 0 : index
    %c0_159 = arith.constant 0 : index
    %340 = vector.load %arg19[%c0_158, %c0_159] : memref<1x64xf32, #tpu.memory_space<vmem>>, vector<1x64xf32>
    %cst_160 = arith.constant dense<0.000000e+00> : vector<32xf32>
    %341 = vector.multi_reduction <add>, %338, %cst_160 [1] : vector<32x64xf32> to vector<32xf32>
    %342 = vector.shape_cast %341 : vector<32xf32> to vector<32x1xf32>
    %cst_161 = arith.constant 6.400000e+01 : f32
    %343 = vector.broadcast %cst_161 : f32 to vector<32x1xf32>
    %344 = arith.divf %342, %343 : vector<32x1xf32>
    %345 = vector.broadcast %344 : vector<32x1xf32> to vector<32x64xf32>
    %346 = arith.subf %338, %345 : vector<32x64xf32>
    %347 = arith.mulf %346, %346 : vector<32x64xf32>
    %cst_162 = arith.constant dense<0.000000e+00> : vector<32xf32>
    %348 = vector.multi_reduction <add>, %347, %cst_162 [1] : vector<32x64xf32> to vector<32xf32>
    %349 = vector.shape_cast %348 : vector<32xf32> to vector<32x1xf32>
    %cst_163 = arith.constant 6.400000e+01 : f32
    %350 = vector.broadcast %cst_163 : f32 to vector<32x1xf32>
    %351 = arith.divf %349, %350 : vector<32x1xf32>
    %352 = vector.broadcast %344 : vector<32x1xf32> to vector<32x64xf32>
    %353 = arith.subf %338, %352 : vector<32x64xf32>
    %cst_164 = arith.constant 9.99999974E-6 : f32
    %354 = vector.broadcast %cst_164 : f32 to vector<32x1xf32>
    %355 = arith.addf %351, %354 : vector<32x1xf32>
    %356 = math.rsqrt %355 : vector<32x1xf32>
    %357 = vector.broadcast %356 : vector<32x1xf32> to vector<32x64xf32>
    %358 = arith.mulf %353, %357 : vector<32x64xf32>
    %359 = vector.broadcast %339 : vector<1x64xf32> to vector<32x64xf32>
    %360 = arith.mulf %358, %359 : vector<32x64xf32>
    %361 = vector.broadcast %340 : vector<1x64xf32> to vector<32x64xf32>
    %362 = arith.addf %360, %361 : vector<32x64xf32>
    %363 = vector.shape_cast %362 : vector<32x64xf32> to vector<2x16x64xf32>
    %c0_165 = arith.constant 0 : index
    %c0_166 = arith.constant 0 : index
    %c0_167 = arith.constant 0 : index
    %364 = vector.load %arg20[%c0_165, %c0_166, %c0_167] : memref<2x16x64xf32, #tpu.memory_space<vmem>>, vector<2x16x64xf32>
    tpu.vector_store %arg20[%c0_165, %c0_166, %c0_167], %363 {strides = array<i32>} : memref<2x16x64xf32, #tpu.memory_space<vmem>>, vector<2x16x64xf32>,
    return
  }
  func.func @transform_0(%arg0: i32) -> (i32, i32, i32) {
    %c0_i32 = arith.constant 0 : i32
    %c0_i32_0 = arith.constant 0 : i32
    %c0_i32_1 = arith.constant 0 : i32
    return %arg0, %c0_i32, %c0_i32_0 : i32, i32, i32
  }
  func.func @transform_1(%arg0: i32) -> (i32, i32) {
    %c0_i32 = arith.constant 0 : i32
    %c0_i32_0 = arith.constant 0 : i32
    %c0_i32_1 = arith.constant 0 : i32
    return %c0_i32, %c0_i32_0 : i32, i32
  }
  func.func @transform_2(%arg0: i32) -> (i32, i32) {
    %c0_i32 = arith.constant 0 : i32
    %c0_i32_0 = arith.constant 0 : i32
    return %arg0, %c0_i32 : i32, i32
  }
  func.func @transform_3(%arg0: i32) -> (i32, i32, i32) {
    %c0_i32 = arith.constant 0 : i32
    %c0_i32_0 = arith.constant 0 : i32
    %c0_i32_1 = arith.constant 0 : i32
    %c0_i32_2 = arith.constant 0 : i32
    return %c0_i32, %c0_i32_0, %c0_i32_1 : i32, i32, i32
  }
  func.func @transform_4(%arg0: i32) -> (i32, i32, i32) {
    %c0_i32 = arith.constant 0 : i32
    %c0_i32_0 = arith.constant 0 : i32
    %c0_i32_1 = arith.constant 0 : i32
    %c0_i32_2 = arith.constant 0 : i32
    return %c0_i32, %c0_i32_0, %c0_i32_1 : i32, i32, i32
  }
  func.func @transform_5(%arg0: i32) -> (i32, i32, i32) {
    %c0_i32 = arith.constant 0 : i32
    %c0_i32_0 = arith.constant 0 : i32
    %c0_i32_1 = arith.constant 0 : i32
    %c0_i32_2 = arith.constant 0 : i32
    return %c0_i32, %c0_i32_0, %c0_i32_1 : i32, i32, i32
  }
  func.func @transform_6(%arg0: i32) -> (i32, i32, i32) {
    %c0_i32 = arith.constant 0 : i32
    %c0_i32_0 = arith.constant 0 : i32
    %c0_i32_1 = arith.constant 0 : i32
    %c0_i32_2 = arith.constant 0 : i32
    return %c0_i32, %c0_i32_0, %c0_i32_1 : i32, i32, i32
  }
  func.func @transform_7(%arg0: i32) -> (i32, i32, i32) {
    %c0_i32 = arith.constant 0 : i32
    %c0_i32_0 = arith.constant 0 : i32
    %c0_i32_1 = arith.constant 0 : i32
    %c0_i32_2 = arith.constant 0 : i32
    return %c0_i32, %c0_i32_0, %c0_i32_1 : i32, i32, i32
  }
  func.func @transform_8(%arg0: i32) -> (i32, i32, i32) {
    %c0_i32 = arith.constant 0 : i32
    %c0_i32_0 = arith.constant 0 : i32
    %c0_i32_1 = arith.constant 0 : i32
    %c0_i32_2 = arith.constant 0 : i32
    return %c0_i32, %c0_i32_0, %c0_i32_1 : i32, i32, i32
  }
  func.func @transform_9(%arg0: i32) -> (i32, i32, i32) {
    %c0_i32 = arith.constant 0 : i32
    %c0_i32_0 = arith.constant 0 : i32
    %c0_i32_1 = arith.constant 0 : i32
    %c0_i32_2 = arith.constant 0 : i32
    return %c0_i32, %c0_i32_0, %c0_i32_1 : i32, i32, i32
  }
  func.func @transform_10(%arg0: i32) -> (i32, i32, i32) {
    %c0_i32 = arith.constant 0 : i32
    %c0_i32_0 = arith.constant 0 : i32
    %c0_i32_1 = arith.constant 0 : i32
    %c0_i32_2 = arith.constant 0 : i32
    return %c0_i32, %c0_i32_0, %c0_i32_1 : i32, i32, i32
  }
  func.func @transform_11(%arg0: i32) -> (i32, i32, i32) {
    %c0_i32 = arith.constant 0 : i32
    %c0_i32_0 = arith.constant 0 : i32
    %c0_i32_1 = arith.constant 0 : i32
    %c0_i32_2 = arith.constant 0 : i32
    return %c0_i32, %c0_i32_0, %c0_i32_1 : i32, i32, i32
  }
  func.func @transform_12(%arg0: i32) -> (i32, i32, i32) {
    %c0_i32 = arith.constant 0 : i32
    %c0_i32_0 = arith.constant 0 : i32
    %c0_i32_1 = arith.constant 0 : i32
    %c0_i32_2 = arith.constant 0 : i32
    return %c0_i32, %c0_i32_0, %c0_i32_1 : i32, i32, i32
  }
  func.func @transform_13(%arg0: i32) -> (i32, i32, i32) {
    %c0_i32 = arith.constant 0 : i32
    %c0_i32_0 = arith.constant 0 : i32
    %c0_i32_1 = arith.constant 0 : i32
    %c0_i32_2 = arith.constant 0 : i32
    return %c0_i32, %c0_i32_0, %c0_i32_1 : i32, i32, i32
  }
  func.func @transform_14(%arg0: i32) -> (i32, i32, i32) {
    %c0_i32 = arith.constant 0 : i32
    %c0_i32_0 = arith.constant 0 : i32
    %c0_i32_1 = arith.constant 0 : i32
    %c0_i32_2 = arith.constant 0 : i32
    return %c0_i32, %c0_i32_0, %c0_i32_1 : i32, i32, i32
  }
  func.func @transform_15(%arg0: i32) -> (i32, i32, i32) {
    %c0_i32 = arith.constant 0 : i32
    %c0_i32_0 = arith.constant 0 : i32
    %c0_i32_1 = arith.constant 0 : i32
    %c0_i32_2 = arith.constant 0 : i32
    return %c0_i32, %c0_i32_0, %c0_i32_1 : i32, i32, i32
  }
  func.func @transform_16(%arg0: i32) -> (i32, i32, i32) {
    %c0_i32 = arith.constant 0 : i32
    %c0_i32_0 = arith.constant 0 : i32
    %c0_i32_1 = arith.constant 0 : i32
    %c0_i32_2 = arith.constant 0 : i32
    return %c0_i32, %c0_i32_0, %c0_i32_1 : i32, i32, i32
  }
  func.func @transform_17(%arg0: i32) -> (i32, i32) {
    %c0_i32 = arith.constant 0 : i32
    %c0_i32_0 = arith.constant 0 : i32
    %c0_i32_1 = arith.constant 0 : i32
    return %c0_i32, %c0_i32_0 : i32, i32
  }
  func.func @transform_18(%arg0: i32) -> (i32, i32) {
    %c0_i32 = arith.constant 0 : i32
    %c0_i32_0 = arith.constant 0 : i32
    %c0_i32_1 = arith.constant 0 : i32
    return %c0_i32, %c0_i32_0 : i32, i32
  }
  func.func @transform_19(%arg0: i32) -> (i32, i32, i32) {
    %c0_i32 = arith.constant 0 : i32
    %c0_i32_0 = arith.constant 0 : i32
    %c0_i32_1 = arith.constant 0 : i32
    return %arg0, %c0_i32, %c0_i32_0 : i32, i32, i32
  }
  func.func @transform_20(%arg0: i32) -> (i32, i32, i32, i32) {
    %c0_i32 = arith.constant 0 : i32
    %c0_i32_0 = arith.constant 0 : i32
    %c0_i32_1 = arith.constant 0 : i32
    %c0_i32_2 = arith.constant 0 : i32
    return %c0_i32, %arg0, %c0_i32_0, %c0_i32_1 : i32, i32, i32, i32
  }
}

</mosaic_0001>

<bundles_post_ra>
// kernel: tpu_custom_call.1
= control target key start
LH: loop header
LB: loop body
LE: loop exit
PB: predicated region body
PF: predicated region fallthrough
CT: control target
= control target key end

     0   :  { %s4483_s0 = inlined_call_operand.hbm [shape: f32[2,16,64], index: 0, kind: input, shape index: {}]   ;;  %s4484_s1 = inlined_call_operand.hbm [shape: f32[16,64], index: 1, kind: input, shape index: {}]   ;;  %s4485_s2 = inlined_call_operand.vmem [shape: f32[32,1], index: 2, kind: input, shape index: {}]   ;;  %s4486_s3 = inlined_call_operand.vmem [shape: f32[2,1,64], index: 3, kind: input, shape index: {}]   ;;  %s4487_s4 = inlined_call_operand.hbm [shape: f32[2,1,64], index: 4, kind: input, shape index: {}]   ;;  %s4488_s5 = inlined_call_operand.hbm [shape: bf16[2,64,64], index: 5, kind: input, shape index: {}]   ;;  %s4489_s6 = inlined_call_operand.hbm [shape: f32[2,1,64], index: 6, kind: input, shape index: {}]   ;;  %s4490_s7 = inlined_call_operand.hbm [shape: bf16[2,64,128], index: 7, kind: input, shape index: {}]   ;;  %s4491_s8 = inlined_call_operand.hbm [shape: f32[2,1,128], index: 8, kind: input, shape index: {}]   ;;  %s4492_s9 = inlined_call_operand.vmem [shape: bf16[2,64,64], index: 9, kind: input, shape index: {}]   ;;  %s4493_s10 = inlined_call_operand.vmem [shape: f32[2,1,64], index: 10, kind: input, shape index: {}]   ;;  %s4494_s11 = inlined_call_operand.vmem [shape: f32[2,1,64], index: 11, kind: input, shape index: {}]   ;;  %s4495_s12 = inlined_call_operand.vmem [shape: f32[2,1,64], index: 12, kind: input, shape index: {}]   ;;  %s4496_s13 = inlined_call_operand.hbm [shape: bf16[2,64,64], index: 13, kind: input, shape index: {}]   ;;  %s4497_s14 = inlined_call_operand.vmem [shape: f32[2,1,64], index: 14, kind: input, shape index: {}]   ;;  %s4498_s15 = inlined_call_operand.hbm [shape: bf16[2,64,64], index: 15, kind: input, shape index: {}]   ;;  %s4499_s16 = inlined_call_operand.vmem [shape: f32[2,1,64], index: 16, kind: input, shape index: {}]   ;;  %s4500_s17 = inlined_call_operand.vmem [shape: f32[1,64], index: 17, kind: input, shape index: {}]   ;;  %s4501_s18 = inlined_call_operand.vmem [shape: f32[1,64], index: 18, kind: input, shape index: {}]   ;;  %s4502_s19 = inlined_call_operand.hbm [shape: f32[2,16,64], index: 19, kind: output, shape index: {0}]   ;;  %s4503_s20 = inlined_call_operand.hbm [shape: f32[2,2,16,16], index: 20, kind: output, shape index: {1}]  }
   0x1   :  { %4517 = sst [smem:[#allocation27_spill]] %s4483_s0 }
   0x2   :  { %4518 = sst [smem:[#allocation28_spill]] %s4484_s1 }
   0x3   :  { %4519 = sst [smem:[#allocation29_spill]] %s4485_s2 }
   0x4   :  { %4520 = sst [smem:[#allocation30_spill]] %s4486_s3 }
   0x5   :  { %4521 = sst [smem:[#allocation31_spill]] %s4487_s4 }
   0x6   :  { %4522 = sst [smem:[#allocation32_spill]] %s4502_s19 }
   0x7   :  { %26 = vsyncpa [#allocation3], 0 }
   0x8   :  { %27 = vsyncpa [#allocation6], 0 }
   0x9   :  { %28 = vsyncpa [#allocation9], 0 }
   0xa   :  { %29 = vsyncpa [#allocation12], 0 }
   0xb   :  { %30 = vsyncpa [#allocation15], 0 }
   0xc   :  { %31 = vsyncpa [#allocation4], 0 }
   0xd   :  { %32 = vsyncpa [#allocation19], 0  ;;  %s3664_s1 = smov [#allocation5]   ;;  %s3665_s23 = smov [#allocation8]  }
   0xe   :  { %s50_s22 = sshll.u32 %s3664_s1, 4  ;;  %s78_s24 = sshll.u32 %s3665_s23, 4  ;;  %s51_s22 = int_to_ptr.vmem [resolvable:$true] %s50_s22  ;;  %s3791_s24 = int_to_ptr.vmem [resolvable:$true] %s78_s24 }
   0xf   :  { %s4523_s3 = sld [smem:[#allocation28_spill]] }
  0x15   :  { %s3408_s26 = scalar_lea.hbm %s4523_s3, 256 }
  0x16   :  { %p3409_p0 = scmp.ne.s32.totalorder %s4523_s3, %s3408_s26  ;;  %p3412_p1 = scmp.lt.u32.totalorder %s3408_s26, %s4523_s3 }
  0x18   :  { %p3414_p2 = pnand %p3412_p1, %p3409_p0 }
  0x1a   :  { %3417 = shalt.err (!%p3414_p2)
}
  0x1b   :  { %s3418_s30 = scalar_lea.vmem %s51_s22, 256  ;;  %p3423_p4 = scmp.lt.s32.totalorder %s51_s22, %s51_s22 }
  0x1c   :  { %p3419_p3 = scmp.ne.s32.totalorder %s51_s22, %s3418_s30  ;;  %p3424_p5 = scmp.lt.s32.totalorder %s3418_s30, %s3418_s30 }
  0x1e   :  { %p3425_p6 = por %p3424_p5, %p3423_p4 }
  0x20   :  { %p3426_p7 = pnand %p3425_p6, %p3419_p3 }
  0x22   :  { %3429 = shalt.err (!%p3426_p7)
}
  0x23   :  { %s4509_s0 = smov 128   ;;  %s4511_s21 = smov 8  }
  0x24   :  { %56 = dma.hbm_to_vmem [thread:$0]  %s4523_s3, 256, %s51_s22, [#allocation6], %s4509_s0, %s4509_s0, %s4511_s21  }
  0x25   :  { %s3430_s26 = scalar_lea.hbm %s4488_s5, 1024 }
  0x26   :  { %p3431_p8 = scmp.ne.s32.totalorder %s4488_s5, %s3430_s26  ;;  %p3434_p9 = scmp.lt.u32.totalorder %s3430_s26, %s4488_s5 }
  0x28   :  { %p3436_p10 = pnand %p3434_p9, %p3431_p8 }
  0x2a   :  { %3439 = shalt.err (!%p3436_p10)
}
  0x2b   :  { %s3440_s30 = scalar_lea.vmem %s3791_s24, 1024  ;;  %p3445_p12 = scmp.lt.s32.totalorder %s3791_s24, %s3791_s24 }
  0x2c   :  { %p3441_p11 = scmp.ne.s32.totalorder %s3791_s24, %s3440_s30  ;;  %p3446_p13 = scmp.lt.s32.totalorder %s3440_s30, %s3440_s30 }
  0x2e   :  { %p3447_p0 = por %p3446_p13, %p3445_p12 }
  0x30   :  { %p3448_p1 = pnand %p3447_p0, %p3441_p11 }
  0x32   :  { %3451 = shalt.err (!%p3448_p1)
}
  0x33   :  { %s4514_s22 = smov 64   ;;  %s4516_s3 = smov 4  }
  0x34   :  { %84 = dma.hbm_to_vmem [thread:$0]  %s4488_s5, 1024, %s3791_s24, [#allocation9], %s4514_s22, %s4514_s22, %s4516_s3  }
  0x35   :  { %s3670_s2 = smov [#allocation11]   ;;  %s3671_s26 = smov [#allocation14]  }
  0x36   :  { %s102_s25 = sshll.u32 %s3670_s2, 4  ;;  %s134_s27 = sshll.u32 %s3671_s26, 4  ;;  %s103_s25 = int_to_ptr.vmem [resolvable:$true] %s102_s25  ;;  %s3828_s27 = int_to_ptr.vmem [resolvable:$true] %s134_s27 }
  0x37   :  { %s3452_s29 = scalar_lea.hbm %s4490_s7, 1024 }
  0x38   :  { %p3453_p2 = scmp.ne.s32.totalorder %s4490_s7, %s3452_s29  ;;  %p3456_p3 = scmp.lt.u32.totalorder %s3452_s29, %s4490_s7 }
  0x3a   :  { %p3458_p4 = pnand %p3456_p3, %p3453_p2 }
  0x3c   :  { %3461 = shalt.err (!%p3458_p4)
}
  0x3d   :  { %s3462_s5 = scalar_lea.vmem %s103_s25, 1024  ;;  %p3467_p6 = scmp.lt.s32.totalorder %s103_s25, %s103_s25 }
  0x3e   :  { %p3463_p5 = scmp.ne.s32.totalorder %s103_s25, %s3462_s5  ;;  %p3468_p7 = scmp.lt.s32.totalorder %s3462_s5, %s3462_s5 }
  0x40   :  { %p3469_p8 = por %p3468_p7, %p3467_p6 }
  0x42   :  { %p3470_p9 = pnand %p3469_p8, %p3463_p5 }
  0x44   :  { %3473 = shalt.err (!%p3470_p9)
}
  0x45   :  { %108 = dma.hbm_to_vmem [thread:$0]  %s4490_s7, 1024, %s103_s25, [#allocation12], %s4514_s22, %s4514_s22, %s4516_s3  }
  0x46   :  { %s3474_s19 = scalar_lea.hbm %s4496_s13, 1024 }
  0x47   :  { %p3475_p10 = scmp.ne.s32.totalorder %s4496_s13, %s3474_s19  ;;  %p3478_p11 = scmp.lt.u32.totalorder %s3474_s19, %s4496_s13 }
  0x49   :  { %p3480_p12 = pnand %p3478_p11, %p3475_p10 }
  0x4b   :  { %3483 = shalt.err (!%p3480_p12)
}
  0x4c   :  { %s3484_s4 = scalar_lea.vmem %s3828_s27, 1024  ;;  %p3489_p0 = scmp.lt.s32.totalorder %s3828_s27, %s3828_s27 }
  0x4d   :  { %p3485_p13 = scmp.ne.s32.totalorder %s3828_s27, %s3484_s4  ;;  %p3490_p1 = scmp.lt.s32.totalorder %s3484_s4, %s3484_s4 }
  0x4f   :  { %p3491_p2 = por %p3490_p1, %p3489_p0 }
  0x51   :  { %p3492_p3 = pnand %p3491_p2, %p3485_p13 }
  0x53   :  { %3495 = shalt.err (!%p3492_p3)
}
  0x54   :  { %140 = dma.hbm_to_vmem [thread:$0]  %s4496_s13, 1024, %s3828_s27, [#allocation15], %s4514_s22, %s4514_s22, %s4516_s3  }
  0x55   :  { %s3672_s29 = smov [#allocation2]   ;;  %s3673_s5 = smov [#allocation7]  }
  0x56   :  { %s38_s30 = sshll.u32 %s3672_s29, 4  ;;  %s66_s24 = sshll.u32 %s3673_s5, 4  ;;  %s39_s30 = int_to_ptr.vmem [resolvable:$true] %s38_s30  ;;  %s3865_s24 = int_to_ptr.vmem [resolvable:$true] %s66_s24 }
  0x57   :  { %s4524_s23 = sld [smem:[#allocation27_spill]] }
  0x5d   :  { %s3496_s19 = scalar_lea.hbm %s4524_s23, 512 }
  0x5e   :  { %p3497_p4 = scmp.ne.s32.totalorder %s4524_s23, %s3496_s19  ;;  %p3500_p5 = scmp.lt.u32.totalorder %s3496_s19, %s4524_s23 }
  0x60   :  { %p3502_p6 = pnand %p3500_p5, %p3497_p4 }
  0x62   :  { %3505 = shalt.err (!%p3502_p6)
}
  0x63   :  { %s3506_s13 = scalar_lea.vmem %s39_s30, 512  ;;  %p3511_p8 = scmp.lt.s32.totalorder %s39_s30, %s39_s30 }
  0x64   :  { %p3507_p7 = scmp.ne.s32.totalorder %s39_s30, %s3506_s13  ;;  %p3512_p9 = scmp.lt.s32.totalorder %s3506_s13, %s3506_s13 }
  0x66   :  { %p3513_p10 = por %p3512_p9, %p3511_p8 }
  0x68   :  { %p3514_p11 = pnand %p3513_p10, %p3507_p7 }
  0x6a   :  { %3517 = shalt.err (!%p3514_p11)
}
  0x6b   :  { %s4525_s27 = smov 8   ;;  %s4526_s4 = smov 128  }
  0x6c   :  { %44 = dma.hbm_to_vmem [thread:$0]  %s4524_s23, 512, %s39_s30, [#allocation3], %s4526_s4, %s4526_s4, %s4525_s27  }
  0x6d   :  { %s4527_s1 = sld [smem:[#allocation31_spill]] }
  0x73   :  { %s3518_s0 = scalar_lea.hbm %s4527_s1, 32 }
  0x74   :  { %p3519_p12 = scmp.ne.s32.totalorder %s4527_s1, %s3518_s0  ;;  %p3522_p13 = scmp.lt.u32.totalorder %s3518_s0, %s4527_s1 }
  0x76   :  { %p3524_p0 = pnand %p3522_p13, %p3519_p12 }
  0x78   :  { %3527 = shalt.err (!%p3524_p0)
}
  0x79   :  { %s3528_s28 = scalar_lea.vmem %s3865_s24, 32  ;;  %p3533_p2 = scmp.lt.s32.totalorder %s3865_s24, %s3865_s24 }
  0x7a   :  { %p3529_p1 = scmp.ne.s32.totalorder %s3865_s24, %s3528_s28  ;;  %p3534_p3 = scmp.lt.s32.totalorder %s3528_s28, %s3528_s28 }
  0x7c   :  { %p3535_p4 = por %p3534_p3, %p3533_p2 }
  0x7e   :  { %p3536_p5 = pnand %p3535_p4, %p3529_p1 }
  0x80   :  { %3539 = shalt.err (!%p3536_p5)
}
  0x81   :  { %s3674_s30 = smov 16   ;;  %s3675_s23 = smov 1  }
  0x82   :  { %72 = dma.hbm_to_vmem [thread:$0]  %s4527_s1, 32, %s3865_s24, [#allocation6], %s3674_s30, %s3674_s30, %s3675_s23  }
  0x83   :  { %s3676_s25 = smov [#allocation10]   ;;  %s3677_s5 = smov [#allocation13]  }
  0x84   :  { %s90_s29 = sshll.u32 %s3676_s25, 4  ;;  %s114_s0 = sshll.u32 %s3677_s5, 4  ;;  %s91_s29 = int_to_ptr.vmem [resolvable:$true] %s90_s29  ;;  %s3902_s0 = int_to_ptr.vmem [resolvable:$true] %s114_s0 }
  0x85   :  { %s3540_s2 = scalar_lea.hbm %s4489_s6, 32 }
  0x86   :  { %p3541_p6 = scmp.ne.s32.totalorder %s4489_s6, %s3540_s2  ;;  %p3544_p7 = scmp.lt.u32.totalorder %s3540_s2, %s4489_s6 }
  0x88   :  { %p3546_p8 = pnand %p3544_p7, %p3541_p6 }
  0x8a   :  { %3549 = shalt.err (!%p3546_p8)
}
  0x8b   :  { %s3550_s24 = scalar_lea.vmem %s91_s29, 32  ;;  %p3555_p10 = scmp.lt.s32.totalorder %s91_s29, %s91_s29 }
  0x8c   :  { %p3551_p9 = scmp.ne.s32.totalorder %s91_s29, %s3550_s24  ;;  %p3556_p11 = scmp.lt.s32.totalorder %s3550_s24, %s3550_s24 }
  0x8e   :  { %p3557_p12 = por %p3556_p11, %p3555_p10 }
  0x90   :  { %p3558_p13 = pnand %p3557_p12, %p3551_p9 }
  0x92   :  { %3561 = shalt.err (!%p3558_p13)
}
  0x93   :  { %96 = dma.hbm_to_vmem [thread:$0]  %s4489_s6, 32, %s91_s29, [#allocation9], %s3674_s30, %s3674_s30, %s3675_s23  }
  0x94   :  { %s3562_s22 = scalar_lea.hbm %s4491_s8, 32 }
  0x95   :  { %p3563_p0 = scmp.ne.s32.totalorder %s4491_s8, %s3562_s22  ;;  %p3566_p1 = scmp.lt.u32.totalorder %s3562_s22, %s4491_s8 }
  0x97   :  { %p3568_p2 = pnand %p3566_p1, %p3563_p0 }
  0x99   :  { %3571 = shalt.err (!%p3568_p2)
}
  0x9a   :  { %s3572_s2 = scalar_lea.vmem %s3902_s0, 32  ;;  %p3577_p4 = scmp.lt.s32.totalorder %s3902_s0, %s3902_s0 }
  0x9b   :  { %p3573_p3 = scmp.ne.s32.totalorder %s3902_s0, %s3572_s2  ;;  %p3578_p5 = scmp.lt.s32.totalorder %s3572_s2, %s3572_s2 }
  0x9d   :  { %p3579_p6 = por %p3578_p5, %p3577_p4 }
  0x9f   :  { %p3580_p7 = pnand %p3579_p6, %p3573_p3 }
  0xa1   :  { %3583 = shalt.err (!%p3580_p7)
}
  0xa2   :  { %120 = dma.hbm_to_vmem [thread:$0]  %s4491_s8, 32, %s3902_s0, [#allocation12], %s3674_s30, %s3674_s30, %s3675_s23  }
  0xa3   :  { %s3678_s26 = smov [#allocation16]   ;;  %s3584_s13 = scalar_lea.hbm %s4498_s15, 1024 }
  0xa4   :  { %s148_s28 = sshll.u32 %s3678_s26, 4  ;;  %p3585_p8 = scmp.ne.s32.totalorder %s4498_s15, %s3584_s13  ;;  %s149_s28 = int_to_ptr.vmem [resolvable:$true] %s148_s28 }
  0xa5   :  { %p3588_p9 = scmp.lt.u32.totalorder %s3584_s13, %s4498_s15 }
  0xa7   :  { %p3590_p10 = pnand %p3588_p9, %p3585_p8 }
  0xa9   :  { %3593 = shalt.err (!%p3590_p10)
}
  0xaa   :  { %s3594_s5 = scalar_lea.vmem %s149_s28, 1024  ;;  %p3599_p12 = scmp.lt.s32.totalorder %s149_s28, %s149_s28 }
  0xab   :  { %p3595_p11 = scmp.ne.s32.totalorder %s149_s28, %s3594_s5  ;;  %p3600_p13 = scmp.lt.s32.totalorder %s3594_s5, %s3594_s5 }
  0xad   :  { %p3601_p0 = por %p3600_p13, %p3599_p12 }
  0xaf   :  { %p3602_p1 = pnand %p3601_p0, %p3595_p11 }
  0xb1   :  { %3605 = shalt.err (!%p3602_p1)
}
  0xb2   :  { %s4528_s8 = smov 4   ;;  %s4529_s30 = smov 64  }
  0xb3   :  { %154 = dma.hbm_to_vmem [thread:$0]  %s4498_s15, 1024, %s149_s28, [#allocation15], %s4529_s30, %s4529_s30, %s4528_s8  }
  0xb4   :  { %3650 = dma.done.wait [#allocation3], 512  }
  0xb5   :  { %3651 = vsyncadd [#allocation3], 4294966784 }
  0xb6   :  { %3652 = dma.done.wait [#allocation6], 288  }
  0xb7   :  { %3653 = vsyncadd [#allocation6], 4294967008 }
  0xb8   :  { %3654 = dma.done.wait [#allocation9], 1056  }
  0xb9   :  { %3655 = vsyncadd [#allocation9], 4294966240 }
  0xba   :  { %3656 = dma.done.wait [#allocation12], 1056  }
  0xbb   :  { %3657 = vsyncadd [#allocation12], 4294966240 }
  0xbc   :  { %3658 = dma.done.wait [#allocation15], 2048  }
  0xbd   :  { %3659 = vsyncadd [#allocation15], 4294965248  ;;  %v3679_v0 = vmov 0   ;;  %s4530_s2 = sld [smem:[#allocation29_spill]]  ;;  %v3264_v5 = vld [vmem:[#allocation11] sm:$0xff]   ;;  %v3265_v6 = vld [vmem:[#allocation11 + $0x8] sm:$0xff]  }
  0xbe   :  { %3263 = vset.pattern.permute.xlu1 %v3679_v0  ;;  %3262 = vset.pattern.permute.xlu0 %v3679_v0  ;;  %v3266_v7 = vld [vmem:[#allocation11 + $0x10] sm:$0xff]   ;;  %v3267_v8 = vld [vmem:[#allocation11 + $0x18] sm:$0xff]   ;;  %v196_v14 = vld [vmem:[#allocation2 + $0x18] sm:$0xff]  ;;  %vm236_vm0 = vcmask 523264   ;;  %v3680_v33 = vmov 0.0   ;;  %vm514_vm1 = vcmask 261120  }
  0xbf   :  { %3020 = vmatprep.subr.bf16.mxu1 %v3264_v5  ;;  %v195_v9 = vld [vmem:[#allocation2 + $0x10] sm:$0xff]  ;;  %v197_v10 = vld [vmem:[#allocation5] sm:$0xff]  ;;  %v198_v15 = vld [vmem:[#allocation5 + $0x8] sm:$0xff]  ;;  %s4531_s7 = sld [smem:[#allocation30_spill]]  ;;  %vm3681_vm2 = vmmov 0   ;;  %vm617_vm4 = vcmask 130048  }
  0xc0   :  { %3021 = vmatpush3.bf16.msra.mxu1 %v3264_v5  ;;  %v193_v11 = vld [vmem:[#allocation2] sm:$0xff]  ;;  %v201_v12 = vadd.f32 %v197_v10, %v195_v9  ;;  %v194_v16 = vld [vmem:[#allocation2 + $0x8] sm:$0xff]  ;;  %v202_v21 = vadd.f32 %v198_v15, %v196_v14  ;;  %v3268_v54 = vld [vmem:[#allocation8] sm:$0xff]   ;;  %s3682_s25 = smov 96   ;;  %s3683_s22 = smov 32  }
  0xc1   :  { %3022 = vmatprep.subr.bf16.mxu1 %v3265_v6  ;;  %v199_v13 = vadd.f32 %v197_v10, %v193_v11  ;;  %v200_v22 = vadd.f32 %v198_v15, %v194_v16  ;;  %3008 = vmatprep.subr.bf16.mxu0 %v3268_v54  ;;  %v3269_v55 = vld [vmem:[#allocation8 + $0x8] sm:$0xff]   ;;  %v3270_v56 = vld [vmem:[#allocation8 + $0x10] sm:$0xff]   ;;  %v3271_v57 = vld [vmem:[#allocation8 + $0x18] sm:$0xff]  }
  0xc2   :  { %3009 = vmatpush3.bf16.msra.mxu0 %v3268_v54  ;;  %v2807_v58 = vld [vmem:[#allocation13] ss:$0 sm:$0xff] }
  0xc3   :  { %v191_v1 = vld [vmem:[%s4530_s2 + $0x10] sm:$0xff]  ;;  %v189_v2 = vld [vmem:[%s4530_s2] sm:$0xff]  ;;  %v192_v3 = vld [vmem:[%s4530_s2 + $0x18] sm:$0xff]  ;;  %3010 = vmatprep.subr.bf16.mxu0 %v3269_v55 }
  0xc4   :  { %215 = vperm.xlu1 %3263, %v191_v1   ;;  %205 = vperm.xlu0 %3262, %v189_v2   ;;  %v190_v4 = vld [vmem:[%s4530_s2 + $0x8] sm:$0xff] }
  0xc5   :  { %3023 = vmatpush3.bf16.msra.mxu1 %v3265_v6 }
  0xc6   :  { %3024 = vmatprep.subr.bf16.mxu1 %v3266_v7  ;;  %3011 = vmatpush3.bf16.msra.mxu0 %v3269_v55  ;;  %v227_v55 = vlaneseq }
  0xc7   :  { %3012 = vmatprep.subr.bf16.mxu0 %v3270_v56 }
  0xc8   :  { %220 = vperm.xlu1 %3263, %v192_v3   ;;  %210 = vperm.xlu0 %3262, %v190_v4  }
  0xc9   :  { %3025 = vmatpush3.bf16.msra.mxu1 %v3266_v7 }
  0xca   :  { %3026 = vmatprep.subr.bf16.mxu1 %v3267_v8  ;;  %3013 = vmatpush3.bf16.msra.mxu0 %v3270_v56  ;;  %v228_v56 = vshrl.u32 %v227_v55, 7 }
  0xcb   :  { %3014 = vmatprep.subr.bf16.mxu0 %v3271_v57 }
  0xcd   :  { %3027 = vmatpush3.bf16.msra.mxu1 %v3267_v8 }
  0xce   :  { %3032 = vmatprep.subr.bf16.mxu1 %v3680_v33  ;;  %3015 = vmatpush3.bf16.msra.mxu0 %v3271_v57  ;;  %v231_v57 = vand.u32 127, %v227_v55 }
  0xcf   :  { %3044 = vmatprep.subr.bf16.mxu0 %v3680_v33 }
  0xd0   :  { %vm4053_vm3 = vcmp.le.s32.totalorder %v231_v57, %v228_v56 }
 0x143   :  { %v3966_v17 = vpop.permute.xlu1 %215  ;;  %v3968_v18 = vpop.permute.xlu0 %205 }
 0x144   :  { %v225_v19 = vmul.f32 %v3966_v17, %v201_v12  ;;  %v223_v20 = vmul.f32 %v3968_v18, %v199_v13 }
 0x146   :  { %v237_v23 = vsel %vm236_vm0, %v223_v20, 0.0  ;;  %v243_v28 = vsel %vm236_vm0, %v225_v19, 0.0 }
 0x147   :  { %v3973_v24 = vpop.permute.xlu1 %220  ;;  %238 = vadd.xlane.f32.xlu0 %v237_v23  ;;  %v3975_v25 = vpop.permute.xlu0 %210 }
 0x148   :  { %v226_v26 = vmul.f32 %v3973_v24, %v202_v21  ;;  %v224_v27 = vmul.f32 %v3975_v25, %v200_v22  ;;  %v2798_v22 = vld [vmem:[%s4531_s7] ss:$0 sm:$0xff] }
 0x14a   :  { %v240_v29 = vsel %vm236_vm0, %v224_v27, 0.0  ;;  %v406_v30 = vpack.c.bf16 %v224_v27, %v223_v20  ;;  %v407_v31 = vpack.c.bf16 %v226_v26, %v225_v19  ;;  %v246_v32 = vsel %vm236_vm0, %v226_v26, 0.0 }
 0x14b   :  { %244 = vadd.xlane.f32.xlu0 %v243_v28  ;;  %241 = vadd.xlane.f32.xlu1 %v240_v29 }
 0x14c   :  { %3028 = vmatprep.mubr.msk.bf16.mxu1 %vm236_vm0, %v406_v30  ;;  %v2799_v30 = vld [vmem:[#allocation7] ss:$0 sm:$0xff] }
 0x14d   :  { %3029 = vmatmul.mubr.msk.bf16.vlgmr.msra.gmra.mrb[0].mxu1 %vm236_vm0, %v407_v31 }
 0x14e   :  { %3034 = vmatprep.mubr.msk.bf16.mxu1 %vm3681_vm2, %v3680_v33 }
 0x14f   :  { %247 = vadd.xlane.f32.xlu0 %v246_v32 }
 0x1d4   :  { %v239_v34 = vpop.xlane.xlu0 %238 }
 0x1d5   :  { %v250_v35 = vmul.f32 0.015625, %v239_v34 }
 0x1d7   :  { %v3985_v36 = vsub.f32 %v223_v20, %v250_v35 }
 0x1d8   :  { %v242_v37 = vpop.xlane.xlu1 %241  ;;  %v245_v38 = vpop.xlane.xlu0 %244 }
 0x1d9   :  { %v251_v39 = vmul.f32 0.015625, %v242_v37  ;;  %v252_v40 = vmul.f32 0.015625, %v245_v38  ;;  %v258_v41 = vmul.f32 %v3985_v36, %v3985_v36 }
 0x1db   :  { %v3989_v42 = vsub.f32 %v224_v27, %v251_v39  ;;  %v3991_v43 = vsub.f32 %v225_v19, %v252_v40  ;;  %v262_v44 = vsel %vm236_vm0, %v258_v41, 0.0 }
 0x1dc   :  { %263 = vadd.xlane.f32.xlu1 %v262_v44  ;;  %v248_v45 = vpop.xlane.xlu0 %247  ;;  %v2800_v44 = vld [vmem:[#allocation10] ss:$0 sm:$0xff] }
 0x1dd   :  { %v253_v46 = vmul.f32 0.015625, %v248_v45  ;;  %v259_v47 = vmul.f32 %v3989_v42, %v3989_v42  ;;  %v260_v48 = vmul.f32 %v3991_v43, %v3991_v43 }
 0x1df   :  { %v3998_v49 = vsub.f32 %v226_v26, %v253_v46  ;;  %v265_v50 = vsel %vm236_vm0, %v259_v47, 0.0  ;;  %v268_v51 = vsel %vm236_vm0, %v260_v48, 0.0 }
 0x1e0   :  { %266 = vadd.xlane.f32.xlu0 %v265_v50  ;;  %269 = vadd.xlane.f32.xlu1 %v268_v51 }
 0x1e1   :  { %v261_v52 = vmul.f32 %v3998_v49, %v3998_v49 }
 0x1e3   :  { %v271_v53 = vsel %vm236_vm0, %v261_v52, 0.0 }
 0x1e4   :  { %272 = vadd.xlane.f32.xlu0 %v271_v53 }
 0x220   :  { %v3030_v59 = vpop.f32.mrb[0].mxu1 }
 0x221   :  { %v496_v60 = vadd.f32 %v3030_v59, %v2807_v58  ;;  %v487_v61 = vpop.f32.mrb[1].mxu1 }
 0x222   :  { %v3031_v62 = vpop.f32.mrb[2].mxu1  ;;  %v488_v1 = vadd.f32 %v2807_v58, %v487_v61 }
 0x223   :  { %v499_v63 = vadd.f32 %v3031_v62, %v2807_v58  ;;  %v490_v0 = vpop.f32.mrb[3].mxu1 }
 0x224   :  { %v491_v2 = vadd.f32 %v2807_v58, %v490_v0  ;;  %v229_v58 = vadd.s32 8, %v228_v56 }
 0x225   :  { %v4006_v3 = vpack.c.bf16 %v499_v63, %v496_v60 }
 0x226   :  { %v4008_v4 = vpack.c.bf16 %v491_v2, %v488_v1  ;;  %vm4057_vm5 = vcmp.le.s32.totalorder %v231_v57, %v229_v58 }
 0x227   :  { %v566_v54 = vsel %vm514_vm1, %v4006_v3, 0 }
 0x228   :  { %v519_v5 = vsel %vm514_vm1, %v4008_v4, 0 }
 0x229   :  { %3033 = vmatpush3.bf16.xpose.msra.mxu1 %v519_v5 }
 0x22a   :  { %3038 = vmatprep.subr.bf16.mxu1 %v3680_v33 }
 0x269   :  { %v264_v6 = vpop.xlane.xlu1 %263 }
 0x26a   :  { %v274_v7 = vmul.f32 0.015625, %v264_v6 }
 0x26c   :  { %v278_v8 = vadd.f32 1e-05, %v274_v7 }
 0x26d   :  { %v270_v9 = vpop.xlane.xlu1 %269  ;;  %v267_v10 = vpop.xlane.xlu0 %266 }
 0x26e   :  { %3304 = vrsqrt.f32 %v278_v8  ;;  %v276_v11 = vmul.f32 0.015625, %v270_v9  ;;  %v275_v12 = vmul.f32 0.015625, %v267_v10 }
 0x270   :  { %v280_v13 = vadd.f32 1e-05, %v276_v11  ;;  %v279_v14 = vadd.f32 1e-05, %v275_v12 }
 0x271   :  { %v273_v15 = vpop.xlane.xlu0 %272 }
 0x272   :  { %3306 = vrsqrt.f32 %v280_v13  ;;  %v277_v16 = vmul.f32 0.015625, %v273_v15 }
 0x273   :  { %3308 = vrsqrt.f32 %v279_v14 }
 0x274   :  { %v281_v19 = vadd.f32 1e-05, %v277_v16 }
 0x276   :  { %3310 = vrsqrt.f32 %v281_v19 }
 0x278   :  { %v3305_v20 = vpop.eup %3304 }
 0x279   :  { %v286_v21 = vmul.f32 %v3305_v20, %v3985_v36 }
 0x27b   :  { %v296_v29 = vmul.f32 %v2798_v22, %v286_v21 }
 0x27c   :  { %v3307_v23 = vpop.eup %3306 }
 0x27d   :  { %v3309_v26 = vpop.eup %3308  ;;  %v288_v27 = vmul.f32 %v3307_v23, %v3991_v43  ;;  %v4020_v37 = vadd.f32 %v2799_v30, %v296_v29 }
 0x27e   :  { %v287_v28 = vmul.f32 %v3309_v26, %v3989_v42 }
 0x27f   :  { %v298_v35 = vmul.f32 %v2798_v22, %v288_v27 }
 0x280   :  { %v3311_v31 = vpop.eup %3310  ;;  %v297_v32 = vmul.f32 %v2798_v22, %v287_v28 }
 0x281   :  { %v289_v34 = vmul.f32 %v3311_v31, %v3998_v49  ;;  %v4026_v40 = vadd.f32 %v2799_v30, %v298_v35 }
 0x282   :  { %v4022_v36 = vadd.f32 %v2799_v30, %v297_v32 }
 0x283   :  { %v299_v38 = vmul.f32 %v2798_v22, %v289_v34 }
 0x284   :  { %v310_v39 = vpack.c.bf16 %v4022_v36, %v4020_v37 }
 0x285   :  { %v4028_v41 = vadd.f32 %v2799_v30, %v299_v38 }
 0x286   :  { %3016 = vmatprep.mubr.msk.bf16.mxu0 %vm236_vm0, %v310_v39 }
 0x287   :  { %v311_v42 = vpack.c.bf16 %v4028_v41, %v4026_v40 }
 0x289   :  { %3017 = vmatmul.mubr.msk.bf16.vlgmr.msra.gmra.mrb[0].mxu0 %vm236_vm0, %v311_v42 }
 0x28a   :  { %3046 = vmatprep.mubr.msk.bf16.mxu0 %vm3681_vm2, %v3680_v33 }
 0x35c   :  { %v3018_v43 = vpop.f32.mrb[0].mxu0 }
 0x35d   :  { %v391_v45 = vpop.f32.mrb[1].mxu0  ;;  %v400_v47 = vadd.f32 %v3018_v43, %v2800_v44 }
 0x35e   :  { %v3019_v46 = vpop.f32.mrb[2].mxu0  ;;  %v392_v50 = vadd.f32 %v2800_v44, %v391_v45 }
 0x35f   :  { %v403_v48 = vadd.f32 %v3019_v46, %v2800_v44  ;;  %v394_v49 = vpop.f32.mrb[3].mxu0 }
 0x360   :  { %v395_v51 = vadd.f32 %v2800_v44, %v394_v49 }
 0x361   :  { %v4038_v52 = vpack.c.bf16 %v403_v48, %v400_v47 }
 0x362   :  { %v4040_v53 = vpack.c.bf16 %v395_v51, %v392_v50 }
 0x364   :  { %3035 = vmatmul.mubr.msk.bf16.vlgmr.msra.gmra.mrb[4].mxu1 %vm514_vm1, %v4040_v53 }
 0x365   :  { %3039 = vmatpush3.bf16.xpose.msra.mxu1 %v566_v54  ;;  %3040 = vmatprep.mubr.msk.bf16.mxu1 %vm3681_vm2, %v3680_v33 }
 0x366   :  { %3050 = vmatprep.subr.bf16.mxu1 %v3680_v33 }
 0x36c   :  { %3041 = vmatmul.mubr.msk.bf16.vlgmr.msra.gmra.mrb[8].mxu1 %vm514_vm1, %v4038_v52 }
 0x36d   :  { %3052 = vmatprep.mubr.msk.bf16.mxu1 %vm3681_vm2, %v3680_v33 }
 0x437   :  { %v555_v60 = vpop.f32.mrb[4].mxu1 }
 0x438   :  { %v613_v62 = vsel %vm4053_vm3, %v555_v60, -1e+30  ;;  %v3036_v63 = vpop.f32.mrb[5].mxu1 }
 0x439   :  { %v558_v0 = vpop.f32.mrb[6].mxu1  ;;  %v618_v1 = vsel %vm617_vm4, %v613_v62, -inf }
 0x43a   :  { %v614_v2 = vsel %vm4057_vm5, %v558_v0, -1e+30  ;;  %619 = vmax.xlane.f32.xlu1 %v618_v1  ;;  %v3037_v5 = vpop.f32.mrb[7].mxu1 }
 0x43b   :  { %v621_v6 = vsel %vm617_vm4, %v614_v2, -inf }
 0x43c   :  { %622 = vmax.xlane.f32.xlu0 %v621_v6 }
 0x43f   :  { %v602_v7 = vpop.f32.mrb[8].mxu1 }
 0x440   :  { %v615_v8 = vsel %vm4053_vm3, %v602_v7, -1e+30  ;;  %v3042_v9 = vpop.f32.mrb[9].mxu1 }
 0x441   :  { %v605_v10 = vpop.f32.mrb[10].mxu1  ;;  %v624_v11 = vsel %vm617_vm4, %v615_v8, -inf }
 0x442   :  { %v616_v12 = vsel %vm4057_vm5, %v605_v10, -1e+30  ;;  %625 = vmax.xlane.f32.xlu1 %v624_v11  ;;  %v3043_v13 = vpop.f32.mrb[11].mxu1 }
 0x443   :  { %v627_v14 = vsel %vm617_vm4, %v616_v12, -inf }
 0x444   :  { %628 = vmax.xlane.f32.xlu0 %v627_v14 }
 0x453   :  { %669 = vrot.lane.b32.xlu1 %v4008_v4, %s4529_s30 }
 0x4c7   :  { %v620_v15 = vpop.xlane.xlu1 %619 }
 0x4c8   :  { %v630_v16 = vsub.f32 %v613_v62, %v620_v15 }
 0x4c9   :  { %v623_v19 = vpop.xlane.xlu0 %622 }
 0x4ca   :  { %v634_v20 = vmul.f32 1.442695, %v630_v16  ;;  %v631_v21 = vsub.f32 %v614_v2, %v623_v19 }
 0x4cc   :  { %3312 = vpow2.f32 %v634_v20  ;;  %v636_v22 = vmul.f32 1.442695, %v631_v21 }
 0x4ce   :  { %3314 = vpow2.f32 %v636_v22 }
 0x4cf   :  { %v626_v23 = vpop.xlane.xlu1 %625 }
 0x4d0   :  { %v632_v26 = vsub.f32 %v615_v8, %v626_v23 }
 0x4d1   :  { %v629_v27 = vpop.xlane.xlu0 %628 }
 0x4d2   :  { %v638_v28 = vmul.f32 1.442695, %v632_v26  ;;  %v633_v29 = vsub.f32 %v616_v12, %v629_v27 }
 0x4d3   :  { %v670_v30 = vpop.permute.xlu1 %669 }
 0x4d4   :  { %3316 = vpow2.f32 %v638_v28  ;;  %v640_v31 = vmul.f32 1.442695, %v633_v29  ;;  %3045 = vmatpush3.bf16.msra.mxu0 %v670_v30 }
 0x4d5   :  { %3056 = vmatprep.subr.bf16.mxu0 %v3680_v33 }
 0x4d6   :  { %v3313_v32 = vpop.eup %3312  ;;  %3318 = vpow2.f32 %v640_v31 }
 0x4d7   :  { %v642_v34 = vsel %vm617_vm4, %v3313_v32, 0.0 }
 0x4d8   :  { %v3315_v35 = vpop.eup %3314  ;;  %643 = vadd.xlane.f32.xlu1 %v642_v34 }
 0x4d9   :  { %v645_v38 = vsel %vm617_vm4, %v3315_v35, 0.0 }
 0x4da   :  { %646 = vadd.xlane.f32.xlu0 %v645_v38 }
 0x4de   :  { %v3317_v39 = vpop.eup %3316 }
 0x4df   :  { %v648_v42 = vsel %vm617_vm4, %v3317_v39, 0.0 }
 0x4e0   :  { %v3319_v43 = vpop.eup %3318  ;;  %649 = vadd.xlane.f32.xlu1 %v648_v42 }
 0x4e1   :  { %v651_v44 = vsel %vm617_vm4, %v3319_v43, 0.0 }
 0x4e2   :  { %652 = vadd.xlane.f32.xlu0 %v651_v44 }
 0x4f1   :  { %769 = vrot.lane.b32.xlu1 %v4008_v4, %s3682_s25 }
 0x4f5   :  { %821 = vrot.lane.b32.xlu1 %v4006_v3, %s3682_s25 }
 0x4f8   :  { %717 = vrot.lane.b32.xlu0 %v4006_v3, %s4529_s30 }
 0x4f9   :  { %819 = vrot.lane.b32.xlu1 %v4038_v52, %s3682_s25 }
 0x4fc   :  { %767 = vrot.lane.b32.xlu0 %v4040_v53, %s3682_s25 }
 0x565   :  { %v644_v45 = vpop.xlane.xlu1 %643 }
 0x566   :  { %3320 = vrcp.f32 %v644_v45 }
 0x567   :  { %v647_v46 = vpop.xlane.xlu0 %646 }
 0x568   :  { %3322 = vrcp.f32 %v647_v46 }
 0x56d   :  { %v650_v47 = vpop.xlane.xlu1 %649 }
 0x56e   :  { %3324 = vrcp.f32 %v650_v47 }
 0x56f   :  { %v653_v48 = vpop.xlane.xlu0 %652 }
 0x570   :  { %v3321_v49 = vpop.eup %3320  ;;  %3326 = vrcp.f32 %v653_v48 }
 0x571   :  { %v4090_v51 = vmul.f32 %v3321_v49, %v3313_v32  ;;  %v770_v56 = vpop.permute.xlu1 %769 }
 0x572   :  { %v3323_v50 = vpop.eup %3322  ;;  %v775_v53 = vsel %vm514_vm1, %v770_v56, 0 }
 0x573   :  { %v4092_v54 = vmul.f32 %v3323_v50, %v3315_v35  ;;  %v718_v55 = vpop.permute.xlu0 %717 }
 0x574   :  { %3051 = vmatpush3.bf16.msra.mxu1 %v718_v55 }
 0x575   :  { %v666_v52 = vpack.c.bf16 %v4092_v54, %v4090_v51  ;;  %3062 = vmatprep.subr.bf16.mxu1 %v3680_v33  ;;  %v822_v63 = vpop.permute.xlu1 %821 }
 0x576   :  { %v827_v2 = vsel %vm514_vm1, %v822_v63, 0 }
 0x577   :  { %3047 = vmatmul.mubr.msk.bf16.vlgmr.msra.gmra.mrb[4].mxu0 %vm617_vm4, %v666_v52  ;;  %v768_v1 = vpop.permute.xlu0 %767 }
 0x578   :  { %v3325_v57 = vpop.eup %3324  ;;  %3057 = vmatpush3.bf16.xpose.msra.mxu0 %v775_v53  ;;  %3058 = vmatprep.mubr.msk.bf16.mxu0 %vm3681_vm2, %v3680_v33 }
 0x579   :  { %3068 = vmatprep.subr.bf16.mxu0 %v3680_v33  ;;  %v4102_v60 = vmul.f32 %v3325_v57, %v3317_v39  ;;  %v820_v5 = vpop.permute.xlu1 %819 }
 0x57a   :  { %v3327_v58 = vpop.eup %3326 }
 0x57b   :  { %v4104_v62 = vmul.f32 %v3327_v58, %v3319_v43 }
 0x57d   :  { %v667_v0 = vpack.c.bf16 %v4104_v62, %v4102_v60 }
 0x57f   :  { %3053 = vmatmul.mubr.msk.bf16.vlgmr.msra.gmra.mrb[12].mxu1 %vm617_vm4, %v667_v0  ;;  %3059 = vmatmul.mubr.msk.bf16.vlgmr.msra.gmra.mrb[8].mxu0 %vm514_vm1, %v768_v1 }
 0x580   :  { %3063 = vmatpush3.bf16.xpose.msra.mxu1 %v827_v2  ;;  %3064 = vmatprep.mubr.msk.bf16.mxu1 %vm3681_vm2, %v3680_v33 }
 0x581   :  { %3074 = vmatprep.subr.bf16.mxu1 %v3680_v33  ;;  %3070 = vmatprep.mubr.msk.bf16.mxu0 %vm3681_vm2, %v3680_v33 }
 0x587   :  { %3065 = vmatmul.mubr.msk.bf16.vlgmr.msra.gmra.mrb[16].mxu1 %vm514_vm1, %v820_v5 }
 0x588   :  { %3076 = vmatprep.mubr.msk.bf16.mxu1 %vm3681_vm2, %v3680_v33 }
 0x64a   :  { %v4119_v6 = vpop.f32.mrb[4].mxu0 }
 0x64b   :  { %v3048_v7 = vpop.f32.mrb[5].mxu0 }
 0x64c   :  { %v4121_v8 = vpop.f32.mrb[6].mxu0 }
 0x64d   :  { %v764_v9 = vpack.c.bf16 %v4121_v8, %v4119_v6  ;;  %v3049_v10 = vpop.f32.mrb[7].mxu0 }
 0x652   :  { %v4125_v11 = vpop.f32.mrb[12].mxu1  ;;  %v811_v12 = vpop.f32.mrb[8].mxu0 }
 0x653   :  { %v870_v13 = vsel %vm4053_vm3, %v811_v12, -1e+30  ;;  %v3054_v14 = vpop.f32.mrb[13].mxu1  ;;  %v3060_v15 = vpop.f32.mrb[9].mxu0 }
 0x654   :  { %v4129_v16 = vpop.f32.mrb[14].mxu1  ;;  %v814_v19 = vpop.f32.mrb[10].mxu0  ;;  %v874_v20 = vsel %vm617_vm4, %v870_v13, -inf }
 0x655   :  { %v765_v21 = vpack.c.bf16 %v4129_v16, %v4125_v11  ;;  %v871_v22 = vsel %vm4057_vm5, %v814_v19, -1e+30  ;;  %875 = vmax.xlane.f32.xlu0 %v874_v20  ;;  %v3055_v23 = vpop.f32.mrb[15].mxu1  ;;  %v3061_v26 = vpop.f32.mrb[11].mxu0 }
 0x656   :  { %v877_v27 = vsel %vm617_vm4, %v871_v22, -inf }
 0x657   :  { %878 = vmax.xlane.f32.xlu1 %v877_v27 }
 0x65a   :  { %v863_v28 = vpop.f32.mrb[16].mxu1 }
 0x65b   :  { %v872_v29 = vsel %vm4053_vm3, %v863_v28, -1e+30  ;;  %v3066_v30 = vpop.f32.mrb[17].mxu1 }
 0x65c   :  { %v866_v31 = vpop.f32.mrb[18].mxu1  ;;  %v880_v32 = vsel %vm617_vm4, %v872_v29, -inf }
 0x65d   :  { %v873_v34 = vsel %vm4057_vm5, %v866_v31, -1e+30  ;;  %881 = vmax.xlane.f32.xlu0 %v880_v32  ;;  %v3067_v35 = vpop.f32.mrb[19].mxu1 }
 0x65e   :  { %v883_v38 = vsel %vm617_vm4, %v873_v34, -inf }
 0x661   :  { %884 = vmax.xlane.f32.xlu0 %v883_v38  ;;  %v3272_v38 = vld [vmem:[%s4492_s9 + $0x10] sm:$0xff]  }
 0x6e2   :  { %v876_v39 = vpop.xlane.xlu0 %875 }
 0x6e3   :  { %v886_v42 = vsub.f32 %v870_v13, %v876_v39 }
 0x6e4   :  { %v879_v43 = vpop.xlane.xlu1 %878 }
 0x6e5   :  { %v890_v44 = vmul.f32 1.442695, %v886_v42  ;;  %v887_v45 = vsub.f32 %v871_v22, %v879_v43 }
 0x6e7   :  { %3328 = vpow2.f32 %v890_v44  ;;  %v892_v46 = vmul.f32 1.442695, %v887_v45 }
 0x6e9   :  { %3330 = vpow2.f32 %v892_v46 }
 0x6ea   :  { %v882_v47 = vpop.xlane.xlu0 %881 }
 0x6eb   :  { %v888_v48 = vsub.f32 %v872_v29, %v882_v47 }
 0x6ed   :  { %v894_v49 = vmul.f32 1.442695, %v888_v48 }
 0x6ee   :  { %v885_v50 = vpop.xlane.xlu0 %884 }
 0x6ef   :  { %3332 = vpow2.f32 %v894_v49  ;;  %v889_v55 = vsub.f32 %v873_v34, %v885_v50 }
 0x6f1   :  { %v3329_v56 = vpop.eup %3328  ;;  %v896_v52 = vmul.f32 1.442695, %v889_v55  ;;  %v3275_v55 = vld [vmem:[%s4492_s9 + $0x8] sm:$0xff]  }
 0x6f2   :  { %v898_v53 = vsel %vm617_vm4, %v3329_v56, 0.0 }
 0x6f3   :  { %v3331_v57 = vpop.eup %3330  ;;  %3334 = vpow2.f32 %v896_v52  ;;  %899 = vadd.xlane.f32.xlu1 %v898_v53 }
 0x6f4   :  { %v901_v58 = vsel %vm617_vm4, %v3331_v57, 0.0 }
 0x6f5   :  { %902 = vadd.xlane.f32.xlu0 %v901_v58 }
 0x6f9   :  { %v3333_v63 = vpop.eup %3332 }
 0x6fa   :  { %v904_v0 = vsel %vm617_vm4, %v3333_v63, 0.0 }
 0x6fb   :  { %905 = vadd.xlane.f32.xlu1 %v904_v0 }
 0x6fd   :  { %v3335_v1 = vpop.eup %3334 }
 0x6fe   :  { %v907_v2 = vsel %vm617_vm4, %v3335_v1, 0.0 }
 0x6ff   :  { %908 = vadd.xlane.f32.xlu0 %v907_v2 }
 0x70c   :  { %924 = vrot.lane.b32.xlu1 %v4008_v4, %s3683_s22 }
 0x715   :  { %971 = vrot.lane.b32.xlu0 %v4006_v3, %s3683_s22 }
 0x780   :  { %v900_v5 = vpop.xlane.xlu1 %899 }
 0x781   :  { %3336 = vrcp.f32 %v900_v5 }
 0x782   :  { %v903_v7 = vpop.xlane.xlu0 %902 }
 0x783   :  { %3338 = vrcp.f32 %v903_v7 }
 0x788   :  { %v906_v10 = vpop.xlane.xlu1 %905 }
 0x789   :  { %3340 = vrcp.f32 %v906_v10 }
 0x78b   :  { %v3337_v12 = vpop.eup %3336 }
 0x78c   :  { %v914_v13 = vmul.f32 %v3337_v12, %v3329_v56  ;;  %v925_v14 = vpop.permute.xlu1 %924  ;;  %v909_v15 = vpop.xlane.xlu0 %908  ;;  %v2830_v56 = vld [vmem:[%s4493_s10] ss:$0 sm:$0xff] }
 0x78d   :  { %v3339_v19 = vpop.eup %3338  ;;  %3342 = vrcp.f32 %v909_v15  ;;  %3069 = vmatpush3.bf16.msra.mxu0 %v925_v14 }
 0x78e   :  { %v918_v20 = vadd.f32 %v914_v13, %v4090_v51  ;;  %v915_v22 = vmul.f32 %v3339_v19, %v3331_v57  ;;  %3080 = vmatprep.subr.bf16.mxu0 %v3272_v38 }
 0x790   :  { %v1165_v4 = vmul.f32 0.5, %v918_v20  ;;  %v919_v23 = vadd.f32 %v915_v22, %v4092_v54  ;;  %v972_v3 = vpop.permute.xlu0 %971  ;;  %v922_v26 = vpack.c.bf16 %v915_v22, %v914_v13 }
 0x791   :  { %3075 = vmatpush3.bf16.msra.mxu1 %v972_v3 }
 0x792   :  { %1169 = vst.msk [vmem:[#allocation18] sm:$0xff] %vm617_vm4, %v1165_v4  ;;  %v1166_v27 = vmul.f32 0.5, %v919_v23  ;;  %3071 = vmatmul.mubr.msk.bf16.vlgmr.msra.gmra.mrb[12].mxu0 %vm617_vm4, %v922_v26 }
 0x793   :  { %v3341_v28 = vpop.eup %3340  ;;  %3081 = vmatpush3.bf16.msra.mxu0 %v3272_v38 }
 0x794   :  { %1170 = vst.msk [vmem:[#allocation18 + $0x8] sm:$0xff] %vm617_vm4, %v1166_v27  ;;  %v916_v29 = vmul.f32 %v3341_v28, %v3333_v63 }
 0x796   :  { %v920_v30 = vadd.f32 %v916_v29, %v4102_v60  ;;  %v3273_v60 = vld [vmem:[%s4492_s9 + $0x18] sm:$0xff]  }
 0x797   :  { %v3343_v31 = vpop.eup %3342  ;;  %3082 = vmatprep.subr.bf16.mxu0 %v3273_v60 }
 0x798   :  { %v1167_v51 = vmul.f32 0.5, %v920_v30  ;;  %v917_v32 = vmul.f32 %v3343_v31, %v3335_v1  ;;  %3083 = vmatpush3.bf16.msra.mxu0 %v3273_v60  ;;  %v3276_v31 = vld [vmem:[#allocation14] sm:$0xff]  }
 0x799   :  { %3096 = vmatprep.subr.bf16.mxu1 %v3276_v31 }
 0x79a   :  { %1171 = vst.msk [vmem:[#allocation18 + $0x10] sm:$0xff] %vm617_vm4, %v1167_v51  ;;  %v921_v54 = vadd.f32 %v917_v32, %v4104_v62  ;;  %v923_v34 = vpack.c.bf16 %v917_v32, %v916_v29  ;;  %v3274_v62 = vld [vmem:[%s4492_s9] sm:$0xff]  }
 0x79b   :  { %3088 = vmatprep.subr.bf16.mxu0 %v3274_v62  ;;  %v3277_v51 = vld [vmem:[#allocation14 + $0x8] sm:$0xff]   ;;  %v3278_v32 = vld [vmem:[#allocation14 + $0x10] sm:$0xff]  }
 0x79c   :  { %v1168_v35 = vmul.f32 0.5, %v921_v54  ;;  %3077 = vmatmul.mubr.msk.bf16.vlgmr.msra.gmra.mrb[20].mxu1 %vm617_vm4, %v923_v34  ;;  %v3279_v54 = vld [vmem:[#allocation14 + $0x18] sm:$0xff]   ;;  %v3280_v34 = vld [vmem:[#allocation16] sm:$0xff]  }
 0x79d   :  { %3097 = vmatpush3.bf16.msra.mxu1 %v3276_v31  ;;  %v3286_v31 = vld [vmem:[#allocation11 + $0x30] sm:$0xff]  }
 0x79e   :  { %1172 = vst.msk [vmem:[#allocation18 + $0x18] sm:$0xff] %vm617_vm4, %v1168_v35  ;;  %3098 = vmatprep.subr.bf16.mxu1 %v3277_v51  ;;  %v3281_v35 = vld [vmem:[#allocation16 + $0x8] sm:$0xff]  }
 0x7a1   :  { %3099 = vmatpush3.bf16.msra.mxu1 %v3277_v51  ;;  %v3287_v51 = vld [vmem:[#allocation11 + $0x38] sm:$0xff]  }
 0x7a2   :  { %3100 = vmatprep.subr.bf16.mxu1 %v3278_v32 }
 0x7a5   :  { %3101 = vmatpush3.bf16.msra.mxu1 %v3278_v32  ;;  %v2840_v32 = vld [vmem:[%s4499_s16] ss:$0 sm:$0xff] }
 0x7a6   :  { %3102 = vmatprep.subr.bf16.mxu1 %v3279_v54 }
 0x7a9   :  { %3103 = vmatpush3.bf16.msra.mxu1 %v3279_v54 }
 0x865   :  { %v964_v39 = vpop.f32.mrb[12].mxu0 }
 0x866   :  { %v3072_v42 = vpop.f32.mrb[13].mxu0 }
 0x867   :  { %v967_v43 = vpop.f32.mrb[14].mxu0 }
 0x868   :  { %v1018_v44 = vpack.c.bf16 %v967_v43, %v964_v39  ;;  %v3073_v45 = vpop.f32.mrb[15].mxu0 }
 0x86a   :  { %3084 = vmatprep.mubr.msk.bf16.mxu0 %vm514_vm1, %v1018_v44 }
 0x86f   :  { %v1011_v46 = vpop.f32.mrb[20].mxu1 }
 0x870   :  { %v3078_v47 = vpop.f32.mrb[21].mxu1 }
 0x871   :  { %v1014_v48 = vpop.f32.mrb[22].mxu1 }
 0x872   :  { %v1019_v49 = vpack.c.bf16 %v1014_v48, %v1011_v46  ;;  %v3079_v50 = vpop.f32.mrb[23].mxu1 }
 0x874   :  { %3085 = vmatmul.mubr.msk.bf16.vlgmr.msra.gmra.mrb[16].mxu0 %vm514_vm1, %v1019_v49 }
 0x875   :  { %3089 = vmatpush3.bf16.msra.mxu0 %v3274_v62  ;;  %3092 = vmatprep.mubr.msk.bf16.mxu0 %vm514_vm1, %v764_v9 }
 0x876   :  { %3090 = vmatprep.subr.bf16.mxu0 %v3275_v55 }
 0x879   :  { %3091 = vmatpush3.bf16.msra.mxu0 %v3275_v55  ;;  %v2831_v55 = vld [vmem:[%s4494_s11] ss:$0 sm:$0xff] }
 0x87a   :  { %3108 = vmatprep.subr.bf16.mxu0 %v3280_v34 }
 0x880   :  { %3093 = vmatmul.mubr.msk.bf16.vlgmr.msra.gmra.mrb[16].mxu0 %vm514_vm1, %v765_v21 }
 0x881   :  { %3109 = vmatpush3.bf16.msra.mxu0 %v3280_v34 }
 0x882   :  { %3110 = vmatprep.subr.bf16.mxu0 %v3281_v35 }
 0x885   :  { %3111 = vmatpush3.bf16.msra.mxu0 %v3281_v35 }
 0x953   :  { %v3094_v52 = vpop.f32.mrb[16].mxu0 }
 0x954   :  { %v1139_v53 = vpop.f32.mrb[17].mxu0  ;;  %v1163_v57 = vadd.f32 %v3094_v52, %v2830_v56 }
 0x955   :  { %v1161_v58 = vadd.f32 %v2830_v56, %v1139_v53  ;;  %v3095_v63 = vpop.f32.mrb[18].mxu0 }
 0x956   :  { %v1142_v0 = vpop.f32.mrb[19].mxu0  ;;  %v1164_v6 = vadd.f32 %v3095_v63, %v2830_v56  ;;  %v1175_v16 = vadd.f32 %v1163_v57, %v4026_v40  ;;  %v2832_v63 = vld [vmem:[%s4495_s12] ss:$0 sm:$0xff] }
 0x957   :  { %v1162_v8 = vadd.f32 %v2830_v56, %v1142_v0  ;;  %v1173_v9 = vadd.f32 %v1161_v58, %v4020_v37 }
 0x958   :  { %v1176_v2 = vadd.f32 %v1164_v6, %v4028_v41  ;;  %v1185_v5 = vsel %vm236_vm0, %v1175_v16, 0.0 }
 0x959   :  { %v1179_v1 = vsel %vm236_vm0, %v1173_v9, 0.0  ;;  %v1174_v11 = vadd.f32 %v1162_v8, %v4022_v36 }
 0x95a   :  { %1180 = vadd.xlane.f32.xlu1 %v1179_v1  ;;  %v1188_v7 = vsel %vm236_vm0, %v1176_v2, 0.0 }
 0x95b   :  { %v1182_v21 = vsel %vm236_vm0, %v1174_v11, 0.0 }
 0x95c   :  { %1183 = vadd.xlane.f32.xlu0 %v1182_v21 }
 0x95e   :  { %1186 = vadd.xlane.f32.xlu1 %v1185_v5 }
 0x960   :  { %1189 = vadd.xlane.f32.xlu0 %v1188_v7 }
 0x9e7   :  { %v1181_v10 = vpop.xlane.xlu1 %1180 }
 0x9e8   :  { %v1191_v37 = vmul.f32 0.015625, %v1181_v10 }
 0x9e9   :  { %v1184_v12 = vpop.xlane.xlu0 %1183 }
 0x9ea   :  { %v1195_v13 = vsub.f32 %v1173_v9, %v1191_v37  ;;  %v1192_v14 = vmul.f32 0.015625, %v1184_v12  ;;  %v3282_v37 = vld [vmem:[#allocation16 + $0x10] sm:$0xff]   ;;  %v3283_v12 = vld [vmem:[#allocation16 + $0x18] sm:$0xff]  }
 0x9eb   :  { %v1187_v36 = vpop.xlane.xlu1 %1186  ;;  %3112 = vmatprep.subr.bf16.mxu0 %v3282_v37 }
 0x9ec   :  { %v1196_v15 = vsub.f32 %v1174_v11, %v1192_v14  ;;  %v1193_v40 = vmul.f32 0.015625, %v1187_v36  ;;  %v1199_v19 = vmul.f32 %v1195_v13, %v1195_v13  ;;  %3113 = vmatpush3.bf16.msra.mxu0 %v3282_v37  ;;  %v2833_v14 = vld [vmem:[%s4497_s14] ss:$0 sm:$0xff] }
 0x9ed   :  { %v1190_v20 = vpop.xlane.xlu0 %1189  ;;  %3114 = vmatprep.subr.bf16.mxu0 %v3283_v12 }
 0x9ee   :  { %v1197_v22 = vsub.f32 %v1175_v16, %v1193_v40  ;;  %v1194_v4 = vmul.f32 0.015625, %v1190_v20  ;;  %v1203_v41 = vsel %vm236_vm0, %v1199_v19, 0.0  ;;  %v1200_v23 = vmul.f32 %v1196_v15, %v1196_v15 }
 0x9ef   :  { %1204 = vadd.xlane.f32.xlu1 %v1203_v41 }
 0x9f0   :  { %v1198_v3 = vsub.f32 %v1176_v2, %v1194_v4  ;;  %v1206_v26 = vsel %vm236_vm0, %v1200_v23, 0.0  ;;  %v1201_v27 = vmul.f32 %v1197_v22, %v1197_v22  ;;  %3115 = vmatpush3.bf16.msra.mxu0 %v3283_v12 }
 0x9f1   :  { %1207 = vadd.xlane.f32.xlu0 %v1206_v26 }
 0x9f2   :  { %v1209_v28 = vsel %vm236_vm0, %v1201_v27, 0.0  ;;  %v1202_v29 = vmul.f32 %v1198_v3, %v1198_v3 }
 0x9f3   :  { %1210 = vadd.xlane.f32.xlu1 %v1209_v28 }
 0x9f4   :  { %v1212_v30 = vsel %vm236_vm0, %v1202_v29, 0.0 }
 0x9f5   :  { %1213 = vadd.xlane.f32.xlu0 %v1212_v30  ;;  %v3285_v30 = vld [vmem:[#allocation11 + $0x28] sm:$0xff]  }
 0xa7c   :  { %v1205_v38 = vpop.xlane.xlu1 %1204 }
 0xa7d   :  { %v1215_v60 = vmul.f32 0.015625, %v1205_v38 }
 0xa7e   :  { %v1208_v62 = vpop.xlane.xlu0 %1207 }
 0xa7f   :  { %v1219_v39 = vadd.f32 1e-05, %v1215_v60  ;;  %v1216_v42 = vmul.f32 0.015625, %v1208_v62 }
 0xa80   :  { %v1211_v43 = vpop.xlane.xlu1 %1210 }
 0xa81   :  { %3344 = vrsqrt.f32 %v1219_v39  ;;  %v1220_v44 = vadd.f32 1e-05, %v1216_v42  ;;  %v1217_v45 = vmul.f32 0.015625, %v1211_v43 }
 0xa82   :  { %v1214_v46 = vpop.xlane.xlu0 %1213 }
 0xa83   :  { %3346 = vrsqrt.f32 %v1220_v44  ;;  %v1221_v47 = vadd.f32 1e-05, %v1217_v45  ;;  %v1218_v48 = vmul.f32 0.015625, %v1214_v46 }
 0xa85   :  { %3348 = vrsqrt.f32 %v1221_v47  ;;  %v1222_v49 = vadd.f32 1e-05, %v1218_v48 }
 0xa87   :  { %3350 = vrsqrt.f32 %v1222_v49 }
 0xa8b   :  { %v3345_v50 = vpop.eup %3344 }
 0xa8c   :  { %v1227_v56 = vmul.f32 %v3345_v50, %v1195_v13  ;;  %v3284_v13 = vld [vmem:[#allocation11 + $0x20] sm:$0xff]  }
 0xa8d   :  { %v3347_v52 = vpop.eup %3346  ;;  %3132 = vmatprep.subr.bf16.mxu0 %v3284_v13 }
 0xa8e   :  { %v1228_v53 = vmul.f32 %v3347_v52, %v1196_v15  ;;  %v1237_v57 = vmul.f32 %v2831_v55, %v1227_v56 }
 0xa8f   :  { %v3349_v58 = vpop.eup %3348 }
 0xa90   :  { %v1229_v0 = vmul.f32 %v3349_v58, %v1197_v22  ;;  %v1238_v6 = vmul.f32 %v2831_v55, %v1228_v53  ;;  %v1247_v11 = vadd.f32 %v2832_v63, %v1237_v57 }
 0xa91   :  { %v3351_v8 = vpop.eup %3350 }
 0xa92   :  { %v1239_v9 = vmul.f32 %v2831_v55, %v1229_v0  ;;  %v1230_v1 = vmul.f32 %v3351_v8, %v1198_v3  ;;  %v1248_v16 = vadd.f32 %v2832_v63, %v1238_v6 }
 0xa94   :  { %v1240_v21 = vmul.f32 %v2831_v55, %v1230_v1  ;;  %v1251_v2 = vpack.c.bf16 %v1248_v16, %v1247_v11  ;;  %v1249_v5 = vadd.f32 %v2832_v63, %v1239_v9 }
 0xa96   :  { %3104 = vmatprep.mubr.msk.bf16.mxu1 %vm236_vm0, %v1251_v2  ;;  %v1250_v7 = vadd.f32 %v2832_v63, %v1240_v21 }
 0xa98   :  { %v1252_v10 = vpack.c.bf16 %v1250_v7, %v1249_v5 }
 0xa9a   :  { %3105 = vmatmul.mubr.msk.bf16.vlgmr.msra.gmra.mrb[24].mxu1 %vm236_vm0, %v1252_v10 }
 0xb6d   :  { %v3106_v36 = vpop.f32.mrb[24].mxu1 }
 0xb6e   :  { %v1341_v15 = vadd.f32 %v3106_v36, %v2833_v14  ;;  %v1332_v40 = vpop.f32.mrb[25].mxu1 }
 0xb6f   :  { %v1333_v19 = vadd.f32 %v2833_v14, %v1332_v40  ;;  %v3107_v20 = vpop.f32.mrb[26].mxu1 }
 0xb70   :  { %v1344_v22 = vadd.f32 %v3107_v20, %v2833_v14  ;;  %v1335_v4 = vpop.f32.mrb[27].mxu1  ;;  %v1349_v23 = vmax.f32 %v1341_v15, 0.0  ;;  %v3289_v20 = vld [vmem:[#allocation8 + $0x28] sm:$0xff]  }
 0xb71   :  { %v1336_v41 = vadd.f32 %v2833_v14, %v1335_v4  ;;  %v1347_v26 = vmax.f32 %v1333_v19, 0.0  ;;  %v3288_v19 = vld [vmem:[#allocation8 + $0x20] sm:$0xff]   ;;  %v3291_v4 = vld [vmem:[#allocation8 + $0x38] sm:$0xff]  }
 0xb72   :  { %v1350_v3 = vmax.f32 %v1344_v22, 0.0  ;;  %3120 = vmatprep.subr.bf16.mxu1 %v3288_v19  ;;  %v3290_v22 = vld [vmem:[#allocation8 + $0x30] sm:$0xff]  }
 0xb73   :  { %v1348_v27 = vmax.f32 %v1336_v41, 0.0  ;;  %3121 = vmatpush3.bf16.msra.mxu1 %v3288_v19  ;;  %v2857_v41 = vld [vmem:[#allocation13 + $0x1] ss:$0 sm:$0xff] }
 0xb74   :  { %v1352_v28 = vpack.c.bf16 %v1350_v3, %v1349_v23  ;;  %3122 = vmatprep.subr.bf16.mxu1 %v3289_v20 }
 0xb75   :  { %v1351_v29 = vpack.c.bf16 %v1348_v27, %v1347_v26 }
 0xb77   :  { %3116 = vmatprep.mubr.msk.bf16.mxu0 %vm236_vm0, %v1351_v29  ;;  %3123 = vmatpush3.bf16.msra.mxu1 %v3289_v20 }
 0xb78   :  { %3117 = vmatmul.mubr.msk.bf16.vlgmr.msra.gmra.mrb[20].mxu0 %vm236_vm0, %v1352_v28  ;;  %3124 = vmatprep.subr.bf16.mxu1 %v3290_v22 }
 0xb79   :  { %3133 = vmatpush3.bf16.msra.mxu0 %v3284_v13 }
 0xb7a   :  { %3134 = vmatprep.subr.bf16.mxu0 %v3285_v30 }
 0xb7b   :  { %3125 = vmatpush3.bf16.msra.mxu1 %v3290_v22 }
 0xb7c   :  { %3126 = vmatprep.subr.bf16.mxu1 %v3291_v4 }
 0xb7d   :  { %3135 = vmatpush3.bf16.msra.mxu0 %v3285_v30 }
 0xb7e   :  { %3136 = vmatprep.subr.bf16.mxu0 %v3286_v31 }
 0xb7f   :  { %3127 = vmatpush3.bf16.msra.mxu1 %v3291_v4 }
 0xb80   :  { %3144 = vmatprep.subr.bf16.mxu1 %v3680_v33 }
 0xb81   :  { %3137 = vmatpush3.bf16.msra.mxu0 %v3286_v31 }
 0xb82   :  { %3138 = vmatprep.subr.bf16.mxu0 %v3287_v51 }
 0xb85   :  { %3139 = vmatpush3.bf16.msra.mxu0 %v3287_v51 }
 0xb86   :  { %3156 = vmatprep.subr.bf16.mxu0 %v3680_v33 }
 0xc4b   :  { %v3118_v54 = vpop.f32.mrb[20].mxu0 }
 0xc4c   :  { %v1441_v34 = vadd.f32 %v3118_v54, %v2840_v32  ;;  %v1432_v35 = vpop.f32.mrb[21].mxu0 }
 0xc4d   :  { %v1433_v38 = vadd.f32 %v2840_v32, %v1432_v35  ;;  %v3119_v60 = vpop.f32.mrb[22].mxu0 }
 0xc4e   :  { %v1444_v62 = vadd.f32 %v3119_v60, %v2840_v32  ;;  %v1435_v39 = vpop.f32.mrb[23].mxu0  ;;  %v1449_v42 = vadd.f32 %v1441_v34, %v1249_v5 }
 0xc4f   :  { %v1447_v43 = vadd.f32 %v1433_v38, %v1247_v11  ;;  %v1436_v44 = vadd.f32 %v2840_v32, %v1435_v39 }
 0xc50   :  { %v1450_v45 = vadd.f32 %v1444_v62, %v1250_v7  ;;  %v1453_v49 = vmul.f32 %v1449_v42, %v3966_v17 }
 0xc51   :  { %v1451_v46 = vmul.f32 %v1447_v43, %v3968_v18  ;;  %v1448_v47 = vadd.f32 %v1436_v44, %v1248_v16 }
 0xc52   :  { %v1454_v48 = vmul.f32 %v1450_v45, %v3973_v24  ;;  %v1465_v57 = vsel %vm236_vm0, %v1453_v49, 0.0 }
 0xc53   :  { %v1452_v50 = vmul.f32 %v1448_v47, %v3975_v25  ;;  %v1459_v55 = vsel %vm236_vm0, %v1451_v46, 0.0 }
 0xc54   :  { %1460 = vadd.xlane.f32.xlu1 %v1459_v55  ;;  %v1630_v53 = vpack.c.bf16 %v1454_v48, %v1453_v49  ;;  %v1468_v58 = vsel %vm236_vm0, %v1454_v48, 0.0 }
 0xc55   :  { %v1462_v56 = vsel %vm236_vm0, %v1452_v50, 0.0  ;;  %v1629_v52 = vpack.c.bf16 %v1452_v50, %v1451_v46 }
 0xc56   :  { %1463 = vadd.xlane.f32.xlu0 %v1462_v56 }
 0xc57   :  { %3140 = vmatprep.mubr.msk.bf16.mxu0 %vm236_vm0, %v1629_v52 }
 0xc58   :  { %3141 = vmatmul.mubr.msk.bf16.vlgmr.msra.gmra.mrb[24].mxu0 %vm236_vm0, %v1630_v53  ;;  %1466 = vadd.xlane.f32.xlu1 %v1465_v57  ;;  %v2849_v53 = vld [vmem:[#allocation7 + $0x1] ss:$0 sm:$0xff] }
 0xc59   :  { %3158 = vmatprep.mubr.msk.bf16.mxu0 %vm3681_vm2, %v3680_v33 }
 0xc5a   :  { %1469 = vadd.xlane.f32.xlu0 %v1468_v58 }
 0xce1   :  { %v1461_v63 = vpop.xlane.xlu1 %1460 }
 0xce2   :  { %v1471_v0 = vmul.f32 0.015625, %v1461_v63 }
 0xce3   :  { %v1464_v6 = vpop.xlane.xlu0 %1463 }
 0xce4   :  { %v4227_v8 = vsub.f32 %v1451_v46, %v1471_v0  ;;  %v1472_v9 = vmul.f32 0.015625, %v1464_v6 }
 0xce5   :  { %v1467_v1 = vpop.xlane.xlu1 %1466 }
 0xce6   :  { %v1476_v11 = vsub.f32 %v1452_v50, %v1472_v9  ;;  %v1473_v16 = vmul.f32 0.015625, %v1467_v1  ;;  %v1479_v21 = vmul.f32 %v4227_v8, %v4227_v8 }
 0xce7   :  { %v1470_v2 = vpop.xlane.xlu0 %1469 }
 0xce8   :  { %v1477_v5 = vsub.f32 %v1453_v49, %v1473_v16  ;;  %v1474_v7 = vmul.f32 0.015625, %v1470_v2  ;;  %v1483_v10 = vsel %vm236_vm0, %v1479_v21, 0.0  ;;  %v1480_v37 = vmul.f32 %v1476_v11, %v1476_v11 }
 0xce9   :  { %1484 = vadd.xlane.f32.xlu1 %v1483_v10  ;;  %v2850_v10 = vld [vmem:[#allocation10 + $0x1] ss:$0 sm:$0xff] }
 0xcea   :  { %v1478_v12 = vsub.f32 %v1454_v48, %v1474_v7  ;;  %v1486_v13 = vsel %vm236_vm0, %v1480_v37, 0.0  ;;  %v1481_v14 = vmul.f32 %v1477_v5, %v1477_v5  ;;  %v2848_v48 = vld [vmem:[%s4531_s7 + $0x1] ss:$0 sm:$0xff] }
 0xceb   :  { %1487 = vadd.xlane.f32.xlu0 %v1486_v13 }
 0xcec   :  { %v1489_v36 = vsel %vm236_vm0, %v1481_v14, 0.0  ;;  %v1482_v15 = vmul.f32 %v1478_v12, %v1478_v12 }
 0xced   :  { %1490 = vadd.xlane.f32.xlu1 %v1489_v36 }
 0xcee   :  { %v1492_v40 = vsel %vm236_vm0, %v1482_v15, 0.0 }
 0xcef   :  { %1493 = vadd.xlane.f32.xlu0 %v1492_v40 }
 0xd2b   :  { %v3142_v23 = vpop.f32.mrb[24].mxu0 }
 0xd2c   :  { %v1721_v3 = vadd.f32 %v3142_v23, %v2857_v41  ;;  %v1712_v26 = vpop.f32.mrb[25].mxu0 }
 0xd2d   :  { %v3143_v27 = vpop.f32.mrb[26].mxu0  ;;  %v1713_v30 = vadd.f32 %v2857_v41, %v1712_v26 }
 0xd2e   :  { %v1724_v28 = vadd.f32 %v3143_v27, %v2857_v41  ;;  %v1715_v29 = vpop.f32.mrb[27].mxu0 }
 0xd2f   :  { %v1716_v31 = vadd.f32 %v2857_v41, %v1715_v29 }
 0xd30   :  { %v4236_v51 = vpack.c.bf16 %v1724_v28, %v1721_v3 }
 0xd31   :  { %v4238_v32 = vpack.c.bf16 %v1716_v31, %v1713_v30 }
 0xd32   :  { %v1791_v22 = vsel %vm514_vm1, %v4236_v51, 0 }
 0xd76   :  { %v1485_v54 = vpop.xlane.xlu1 %1484 }
 0xd77   :  { %v1495_v34 = vmul.f32 0.015625, %v1485_v54 }
 0xd78   :  { %v1488_v35 = vpop.xlane.xlu0 %1487 }
 0xd79   :  { %v1499_v38 = vadd.f32 1e-05, %v1495_v34  ;;  %v1496_v60 = vmul.f32 0.015625, %v1488_v35 }
 0xd7a   :  { %v1491_v62 = vpop.xlane.xlu1 %1490 }
 0xd7b   :  { %3352 = vrsqrt.f32 %v1499_v38  ;;  %v1500_v39 = vadd.f32 1e-05, %v1496_v60  ;;  %v1497_v42 = vmul.f32 0.015625, %v1491_v62 }
 0xd7c   :  { %v1494_v43 = vpop.xlane.xlu0 %1493 }
 0xd7d   :  { %3354 = vrsqrt.f32 %v1500_v39  ;;  %v1501_v44 = vadd.f32 1e-05, %v1497_v42  ;;  %v1498_v45 = vmul.f32 0.015625, %v1494_v43 }
 0xd7f   :  { %3356 = vrsqrt.f32 %v1501_v44  ;;  %v1502_v46 = vadd.f32 1e-05, %v1498_v45 }
 0xd81   :  { %3358 = vrsqrt.f32 %v1502_v46 }
 0xd85   :  { %v3353_v47 = vpop.eup %3352 }
 0xd86   :  { %v1507_v49 = vmul.f32 %v3353_v47, %v4227_v8 }
 0xd87   :  { %v3355_v50 = vpop.eup %3354 }
 0xd88   :  { %v1508_v55 = vmul.f32 %v3355_v50, %v1476_v11  ;;  %v1517_v56 = vmul.f32 %v2848_v48, %v1507_v49 }
 0xd89   :  { %v3357_v52 = vpop.eup %3356 }
 0xd8a   :  { %v1509_v57 = vmul.f32 %v3357_v52, %v1477_v5  ;;  %v1518_v58 = vmul.f32 %v2848_v48, %v1508_v55  ;;  %v4244_v9 = vadd.f32 %v2849_v53, %v1517_v56  ;;  %v1744_v5 = vsel %vm514_vm1, %v4238_v32, 0 }
 0xd8b   :  { %v3359_v63 = vpop.eup %3358 }
 0xd8c   :  { %v1519_v0 = vmul.f32 %v2848_v48, %v1509_v57  ;;  %v1510_v6 = vmul.f32 %v3359_v63, %v1478_v12  ;;  %v4246_v1 = vadd.f32 %v2849_v53, %v1518_v58 }
 0xd8e   :  { %v1520_v16 = vmul.f32 %v2848_v48, %v1510_v6  ;;  %v1531_v21 = vpack.c.bf16 %v4246_v1, %v4244_v9  ;;  %v4251_v8 = vadd.f32 %v2849_v53, %v1519_v0 }
 0xd90   :  { %3128 = vmatprep.mubr.msk.bf16.mxu1 %vm236_vm0, %v1531_v21  ;;  %v4253_v11 = vadd.f32 %v2849_v53, %v1520_v16 }
 0xd92   :  { %v1532_v2 = vpack.c.bf16 %v4253_v11, %v4251_v8 }
 0xd94   :  { %3129 = vmatmul.mubr.msk.bf16.vlgmr.msra.gmra.mrb[28].mxu1 %vm236_vm0, %v1532_v2 }
 0xd95   :  { %3145 = vmatpush3.bf16.xpose.msra.mxu1 %v1744_v5  ;;  %3146 = vmatprep.mubr.msk.bf16.mxu1 %vm3681_vm2, %v3680_v33 }
 0xd96   :  { %3150 = vmatprep.subr.bf16.mxu1 %v3680_v33 }
 0xe67   :  { %v3130_v7 = vpop.f32.mrb[28].mxu1 }
 0xe68   :  { %v1614_v37 = vpop.f32.mrb[29].mxu1  ;;  %v1623_v13 = vadd.f32 %v3130_v7, %v2850_v10 }
 0xe69   :  { %v3131_v12 = vpop.f32.mrb[30].mxu1  ;;  %v1615_v15 = vadd.f32 %v2850_v10, %v1614_v37 }
 0xe6a   :  { %v1626_v14 = vadd.f32 %v3131_v12, %v2850_v10  ;;  %v1617_v36 = vpop.f32.mrb[31].mxu1 }
 0xe6b   :  { %v1618_v40 = vadd.f32 %v2850_v10, %v1617_v36 }
 0xe6c   :  { %v4263_v19 = vpack.c.bf16 %v1626_v14, %v1623_v13 }
 0xe6d   :  { %v4265_v20 = vpack.c.bf16 %v1618_v40, %v1615_v15 }
 0xe6f   :  { %3147 = vmatmul.mubr.msk.bf16.vlgmr.msra.gmra.mrb[32].mxu1 %vm514_vm1, %v4265_v20 }
 0xe70   :  { %3151 = vmatpush3.bf16.xpose.msra.mxu1 %v1791_v22  ;;  %3152 = vmatprep.mubr.msk.bf16.mxu1 %vm3681_vm2, %v3680_v33 }
 0xe71   :  { %3162 = vmatprep.subr.bf16.mxu1 %v3680_v33 }
 0xe77   :  { %3153 = vmatmul.mubr.msk.bf16.vlgmr.msra.gmra.mrb[36].mxu1 %vm514_vm1, %v4263_v19 }
 0xe78   :  { %3164 = vmatprep.mubr.msk.bf16.mxu1 %vm3681_vm2, %v3680_v33 }
 0xf42   :  { %v1780_v4 = vpop.f32.mrb[32].mxu1 }
 0xf43   :  { %v1834_v41 = vsel %vm4053_vm3, %v1780_v4, -1e+30  ;;  %v3148_v23 = vpop.f32.mrb[33].mxu1 }
 0xf44   :  { %v1783_v3 = vpop.f32.mrb[34].mxu1  ;;  %v1838_v26 = vsel %vm617_vm4, %v1834_v41, -inf }
 0xf45   :  { %v1835_v27 = vsel %vm4057_vm5, %v1783_v3, -1e+30  ;;  %1839 = vmax.xlane.f32.xlu1 %v1838_v26  ;;  %v3149_v28 = vpop.f32.mrb[35].mxu1 }
 0xf46   :  { %v1841_v29 = vsel %vm617_vm4, %v1835_v27, -inf }
 0xf47   :  { %1842 = vmax.xlane.f32.xlu0 %v1841_v29 }
 0xf4a   :  { %v1827_v30 = vpop.f32.mrb[36].mxu1 }
 0xf4b   :  { %v1836_v31 = vsel %vm4053_vm3, %v1827_v30, -1e+30  ;;  %v3154_v54 = vpop.f32.mrb[37].mxu1 }
 0xf4c   :  { %v1830_v34 = vpop.f32.mrb[38].mxu1  ;;  %v1844_v35 = vsel %vm617_vm4, %v1836_v31, -inf }
 0xf4d   :  { %v1837_v38 = vsel %vm4057_vm5, %v1830_v34, -1e+30  ;;  %1845 = vmax.xlane.f32.xlu1 %v1844_v35  ;;  %v3155_v60 = vpop.f32.mrb[39].mxu1 }
 0xf4e   :  { %v1847_v62 = vsel %vm617_vm4, %v1837_v38, -inf }
 0xf4f   :  { %1848 = vmax.xlane.f32.xlu0 %v1847_v62 }
 0xf5e   :  { %1889 = vrot.lane.b32.xlu1 %v4238_v32, %s4529_s30 }
 0xfd2   :  { %v1840_v39 = vpop.xlane.xlu1 %1839 }
 0xfd3   :  { %v1850_v42 = vsub.f32 %v1834_v41, %v1840_v39 }
 0xfd4   :  { %v1843_v43 = vpop.xlane.xlu0 %1842 }
 0xfd5   :  { %v1854_v44 = vmul.f32 1.442695, %v1850_v42  ;;  %v1851_v45 = vsub.f32 %v1835_v27, %v1843_v43 }
 0xfd7   :  { %3360 = vpow2.f32 %v1854_v44  ;;  %v1856_v46 = vmul.f32 1.442695, %v1851_v45 }
 0xfd9   :  { %3362 = vpow2.f32 %v1856_v46 }
 0xfda   :  { %v1846_v47 = vpop.xlane.xlu1 %1845 }
 0xfdb   :  { %v1852_v48 = vsub.f32 %v1836_v31, %v1846_v47 }
 0xfdc   :  { %v1849_v49 = vpop.xlane.xlu0 %1848 }
 0xfdd   :  { %v1858_v50 = vmul.f32 1.442695, %v1852_v48  ;;  %v1853_v55 = vsub.f32 %v1837_v38, %v1849_v49 }
 0xfde   :  { %v1890_v56 = vpop.permute.xlu1 %1889 }
 0xfdf   :  { %3364 = vpow2.f32 %v1858_v50  ;;  %v1860_v52 = vmul.f32 1.442695, %v1853_v55  ;;  %3157 = vmatpush3.bf16.msra.mxu0 %v1890_v56 }
 0xfe0   :  { %3168 = vmatprep.subr.bf16.mxu0 %v3680_v33 }
 0xfe1   :  { %v3361_v53 = vpop.eup %3360  ;;  %3366 = vpow2.f32 %v1860_v52 }
 0xfe2   :  { %v1862_v57 = vsel %vm617_vm4, %v3361_v53, 0.0 }
 0xfe3   :  { %v3363_v58 = vpop.eup %3362  ;;  %1863 = vadd.xlane.f32.xlu1 %v1862_v57 }
 0xfe4   :  { %v1865_v63 = vsel %vm617_vm4, %v3363_v58, 0.0 }
 0xfe5   :  { %1866 = vadd.xlane.f32.xlu0 %v1865_v63 }
 0xfe9   :  { %v3365_v0 = vpop.eup %3364 }
 0xfea   :  { %v1868_v6 = vsel %vm617_vm4, %v3365_v0, 0.0 }
 0xfeb   :  { %v3367_v16 = vpop.eup %3366  ;;  %1869 = vadd.xlane.f32.xlu1 %v1868_v6 }
 0xfec   :  { %v1871_v21 = vsel %vm617_vm4, %v3367_v16, 0.0 }
 0xfed   :  { %1872 = vadd.xlane.f32.xlu0 %v1871_v21 }
 0xffc   :  { %1989 = vrot.lane.b32.xlu1 %v4238_v32, %s3682_s25 }
0x1000   :  { %2041 = vrot.lane.b32.xlu1 %v4236_v51, %s3682_s25 }
0x1003   :  { %1937 = vrot.lane.b32.xlu0 %v4236_v51, %s4529_s30 }
0x1004   :  { %2039 = vrot.lane.b32.xlu1 %v4263_v19, %s3682_s25 }
0x1007   :  { %1987 = vrot.lane.b32.xlu0 %v4265_v20, %s3682_s25 }
0x1070   :  { %v1864_v2 = vpop.xlane.xlu1 %1863 }
0x1071   :  { %3368 = vrcp.f32 %v1864_v2 }
0x1072   :  { %v1867_v5 = vpop.xlane.xlu0 %1866 }
0x1073   :  { %3370 = vrcp.f32 %v1867_v5 }
0x1078   :  { %v1870_v7 = vpop.xlane.xlu1 %1869 }
0x1079   :  { %3372 = vrcp.f32 %v1870_v7 }
0x107a   :  { %v1873_v10 = vpop.xlane.xlu0 %1872 }
0x107b   :  { %v3369_v37 = vpop.eup %3368  ;;  %3374 = vrcp.f32 %v1873_v10 }
0x107c   :  { %v4307_v13 = vmul.f32 %v3369_v37, %v3361_v53  ;;  %v1990_v15 = vpop.permute.xlu1 %1989 }
0x107d   :  { %v3371_v12 = vpop.eup %3370  ;;  %v1995_v19 = vsel %vm514_vm1, %v1990_v15, 0 }
0x107e   :  { %v4309_v14 = vmul.f32 %v3371_v12, %v3363_v58  ;;  %v1938_v36 = vpop.permute.xlu0 %1937 }
0x107f   :  { %3163 = vmatpush3.bf16.msra.mxu1 %v1938_v36 }
0x1080   :  { %v1886_v40 = vpack.c.bf16 %v4309_v14, %v4307_v13  ;;  %3174 = vmatprep.subr.bf16.mxu1 %v3680_v33  ;;  %v2042_v23 = vpop.permute.xlu1 %2041 }
0x1081   :  { %v2047_v27 = vsel %vm514_vm1, %v2042_v23, 0 }
0x1082   :  { %3159 = vmatmul.mubr.msk.bf16.vlgmr.msra.gmra.mrb[28].mxu0 %vm617_vm4, %v1886_v40  ;;  %v1988_v26 = vpop.permute.xlu0 %1987 }
0x1083   :  { %v3373_v20 = vpop.eup %3372  ;;  %3169 = vmatpush3.bf16.xpose.msra.mxu0 %v1995_v19  ;;  %3170 = vmatprep.mubr.msk.bf16.mxu0 %vm3681_vm2, %v3680_v33 }
0x1084   :  { %3180 = vmatprep.subr.bf16.mxu0 %v3680_v33  ;;  %v4319_v4 = vmul.f32 %v3373_v20, %v3365_v0  ;;  %v2040_v28 = vpop.permute.xlu1 %2039 }
0x1085   :  { %v3375_v22 = vpop.eup %3374 }
0x1086   :  { %v4321_v41 = vmul.f32 %v3375_v22, %v3367_v16 }
0x1088   :  { %v1887_v3 = vpack.c.bf16 %v4321_v41, %v4319_v4 }
0x108a   :  { %3165 = vmatmul.mubr.msk.bf16.vlgmr.msra.gmra.mrb[40].mxu1 %vm617_vm4, %v1887_v3  ;;  %3171 = vmatmul.mubr.msk.bf16.vlgmr.msra.gmra.mrb[32].mxu0 %vm514_vm1, %v1988_v26 }
0x108b   :  { %3175 = vmatpush3.bf16.xpose.msra.mxu1 %v2047_v27  ;;  %3176 = vmatprep.mubr.msk.bf16.mxu1 %vm3681_vm2, %v3680_v33 }
0x108c   :  { %3186 = vmatprep.subr.bf16.mxu1 %v3680_v33  ;;  %3182 = vmatprep.mubr.msk.bf16.mxu0 %vm3681_vm2, %v3680_v33 }
0x1092   :  { %3177 = vmatmul.mubr.msk.bf16.vlgmr.msra.gmra.mrb[44].mxu1 %vm514_vm1, %v2040_v28 }
0x1093   :  { %3188 = vmatprep.mubr.msk.bf16.mxu1 %vm3681_vm2, %v3680_v33 }
0x1155   :  { %v4336_v29 = vpop.f32.mrb[28].mxu0 }
0x1156   :  { %v3160_v30 = vpop.f32.mrb[29].mxu0 }
0x1157   :  { %v4338_v31 = vpop.f32.mrb[30].mxu0 }
0x1158   :  { %v1984_v54 = vpack.c.bf16 %v4338_v31, %v4336_v29  ;;  %v3161_v34 = vpop.f32.mrb[31].mxu0 }
0x115d   :  { %v4342_v35 = vpop.f32.mrb[40].mxu1  ;;  %v2031_v38 = vpop.f32.mrb[32].mxu0 }
0x115e   :  { %v2090_v60 = vsel %vm4053_vm3, %v2031_v38, -1e+30  ;;  %v3166_v62 = vpop.f32.mrb[41].mxu1  ;;  %v3172_v39 = vpop.f32.mrb[33].mxu0 }
0x115f   :  { %v4346_v42 = vpop.f32.mrb[42].mxu1  ;;  %v2034_v33 = vpop.f32.mrb[34].mxu0  ;;  %v2094_v43 = vsel %vm617_vm4, %v2090_v60, -inf }
0x1160   :  { %v1985_v44 = vpack.c.bf16 %v4346_v42, %v4342_v35  ;;  %v2091_v45 = vsel %vm4057_vm5, %v2034_v33, -1e+30  ;;  %2095 = vmax.xlane.f32.xlu0 %v2094_v43  ;;  %v3167_v46 = vpop.f32.mrb[43].mxu1  ;;  %v3173_v47 = vpop.f32.mrb[35].mxu0 }
0x1161   :  { %v2097_v48 = vsel %vm617_vm4, %v2091_v45, -inf }
0x1162   :  { %2098 = vmax.xlane.f32.xlu1 %v2097_v48 }
0x1165   :  { %v2083_v49 = vpop.f32.mrb[44].mxu1 }
0x1166   :  { %v2092_v50 = vsel %vm4053_vm3, %v2083_v49, -1e+30  ;;  %v3178_v55 = vpop.f32.mrb[45].mxu1 }
0x1167   :  { %v2086_v56 = vpop.f32.mrb[46].mxu1  ;;  %v2100_v52 = vsel %vm617_vm4, %v2092_v50, -inf }
0x1168   :  { %v2093_v53 = vsel %vm4057_vm5, %v2086_v56, -1e+30  ;;  %2101 = vmax.xlane.f32.xlu0 %v2100_v52  ;;  %v3179_v57 = vpop.f32.mrb[47].mxu1  ;;  %v3292_v52 = vld [vmem:[%s4492_s9 + $0x30] sm:$0xff]  }
0x1169   :  { %v2103_v58 = vsel %vm617_vm4, %v2093_v53, -inf }
0x116c   :  { %2104 = vmax.xlane.f32.xlu0 %v2103_v58 }
0x11ed   :  { %v2096_v63 = vpop.xlane.xlu0 %2095 }
0x11ee   :  { %v2106_v0 = vsub.f32 %v2090_v60, %v2096_v63 }
0x11ef   :  { %v2099_v6 = vpop.xlane.xlu1 %2098 }
0x11f0   :  { %v2110_v16 = vmul.f32 1.442695, %v2106_v0  ;;  %v2107_v21 = vsub.f32 %v2091_v45, %v2099_v6 }
0x11f2   :  { %3376 = vpow2.f32 %v2110_v16  ;;  %v2112_v59 = vmul.f32 1.442695, %v2107_v21 }
0x11f4   :  { %3378 = vpow2.f32 %v2112_v59 }
0x11f5   :  { %v2102_v2 = vpop.xlane.xlu0 %2101 }
0x11f6   :  { %v2108_v5 = vsub.f32 %v2092_v50, %v2102_v2 }
0x11f8   :  { %v2114_v7 = vmul.f32 1.442695, %v2108_v5  ;;  %v3295_v5 = vld [vmem:[%s4492_s9 + $0x28] sm:$0xff]  }
0x11f9   :  { %v2105_v10 = vpop.xlane.xlu0 %2104 }
0x11fa   :  { %3380 = vpow2.f32 %v2114_v7  ;;  %v2109_v61 = vsub.f32 %v2093_v53, %v2105_v10  ;;  %v2889_v7 = vld [vmem:[%s4493_s10 + $0x1] ss:$0 sm:$0xff] }
0x11fc   :  { %v3377_v37 = vpop.eup %3376  ;;  %v2116_v12 = vmul.f32 1.442695, %v2109_v61 }
0x11fd   :  { %v2118_v36 = vsel %vm617_vm4, %v3377_v37, 0.0 }
0x11fe   :  { %v3379_v15 = vpop.eup %3378  ;;  %3382 = vpow2.f32 %v2116_v12  ;;  %2119 = vadd.xlane.f32.xlu1 %v2118_v36 }
0x11ff   :  { %v2121_v40 = vsel %vm617_vm4, %v3379_v15, 0.0 }
0x1200   :  { %2122 = vadd.xlane.f32.xlu0 %v2121_v40 }
0x1204   :  { %v3381_v19 = vpop.eup %3380 }
0x1205   :  { %v2124_v20 = vsel %vm617_vm4, %v3381_v19, 0.0 }
0x1206   :  { %2125 = vadd.xlane.f32.xlu1 %v2124_v20 }
0x1208   :  { %v3383_v22 = vpop.eup %3382 }
0x1209   :  { %v2127_v23 = vsel %vm617_vm4, %v3383_v22, 0.0 }
0x120a   :  { %2128 = vadd.xlane.f32.xlu0 %v2127_v23 }
0x1217   :  { %2144 = vrot.lane.b32.xlu1 %v4238_v32, %s3683_s22 }
0x1220   :  { %2191 = vrot.lane.b32.xlu0 %v4236_v51, %s3683_s22 }
0x128b   :  { %v2120_v3 = vpop.xlane.xlu1 %2119 }
0x128c   :  { %3384 = vrcp.f32 %v2120_v3 }
0x128d   :  { %v2123_v26 = vpop.xlane.xlu0 %2122 }
0x128e   :  { %3386 = vrcp.f32 %v2123_v26 }
0x1293   :  { %v2126_v27 = vpop.xlane.xlu1 %2125 }
0x1294   :  { %3388 = vrcp.f32 %v2126_v27 }
0x1296   :  { %v3385_v28 = vpop.eup %3384 }
0x1297   :  { %v2134_v30 = vmul.f32 %v3385_v28, %v3377_v37  ;;  %v2145_v34 = vpop.permute.xlu1 %2144  ;;  %v2129_v38 = vpop.xlane.xlu0 %2128 }
0x1298   :  { %v3387_v60 = vpop.eup %3386  ;;  %3390 = vrcp.f32 %v2129_v38  ;;  %3181 = vmatpush3.bf16.msra.mxu0 %v2145_v34 }
0x1299   :  { %v2138_v62 = vadd.f32 %v2134_v30, %v4307_v13  ;;  %v2135_v39 = vmul.f32 %v3387_v60, %v3379_v15  ;;  %3192 = vmatprep.subr.bf16.mxu0 %v3292_v52 }
0x129b   :  { %v2386_v32 = vmul.f32 0.5, %v2138_v62  ;;  %v2139_v33 = vadd.f32 %v2135_v39, %v4309_v14  ;;  %v2192_v51 = vpop.permute.xlu0 %2191  ;;  %v2142_v43 = vpack.c.bf16 %v2135_v39, %v2134_v30 }
0x129c   :  { %3187 = vmatpush3.bf16.msra.mxu1 %v2192_v51 }
0x129d   :  { %2391 = vst.msk [vmem:[#allocation18 + $0x20] sm:$0xff] %vm617_vm4, %v2386_v32  ;;  %v2387_v45 = vmul.f32 0.5, %v2139_v33  ;;  %3183 = vmatmul.mubr.msk.bf16.vlgmr.msra.gmra.mrb[36].mxu0 %vm617_vm4, %v2142_v43 }
0x129e   :  { %v3389_v46 = vpop.eup %3388  ;;  %3193 = vmatpush3.bf16.msra.mxu0 %v3292_v52 }
0x129f   :  { %2392 = vst.msk [vmem:[#allocation18 + $0x28] sm:$0xff] %vm617_vm4, %v2387_v45  ;;  %v2136_v47 = vmul.f32 %v3389_v46, %v3381_v19  ;;  %v3296_v46 = vld [vmem:[#allocation14 + $0x20] sm:$0xff]  }
0x12a0   :  { %3208 = vmatprep.subr.bf16.mxu1 %v3296_v46 }
0x12a1   :  { %v2140_v48 = vadd.f32 %v2136_v47, %v4319_v4  ;;  %v3293_v4 = vld [vmem:[%s4492_s9 + $0x38] sm:$0xff]  }
0x12a2   :  { %v3391_v49 = vpop.eup %3390  ;;  %3194 = vmatprep.subr.bf16.mxu0 %v3293_v4 }
0x12a3   :  { %v2388_v13 = vmul.f32 0.5, %v2140_v48  ;;  %v2137_v50 = vmul.f32 %v3391_v49, %v3383_v22  ;;  %3195 = vmatpush3.bf16.msra.mxu0 %v3293_v4  ;;  %v3298_v48 = vld [vmem:[#allocation14 + $0x30] sm:$0xff]   ;;  %v3299_v49 = vld [vmem:[#allocation14 + $0x38] sm:$0xff]  }
0x12a5   :  { %2393 = vst.msk [vmem:[#allocation18 + $0x30] sm:$0xff] %vm617_vm4, %v2388_v13  ;;  %v2141_v14 = vadd.f32 %v2137_v50, %v4321_v41  ;;  %v2143_v55 = vpack.c.bf16 %v2137_v50, %v2136_v47  ;;  %v3294_v41 = vld [vmem:[%s4492_s9 + $0x20] sm:$0xff]   ;;  %v3300_v13 = vld [vmem:[#allocation16 + $0x20] sm:$0xff]  }
0x12a6   :  { %3200 = vmatprep.subr.bf16.mxu0 %v3294_v41  ;;  %v3297_v47 = vld [vmem:[#allocation14 + $0x28] sm:$0xff]  }
0x12a7   :  { %v2389_v56 = vmul.f32 0.5, %v2141_v14  ;;  %3189 = vmatmul.mubr.msk.bf16.vlgmr.msra.gmra.mrb[48].mxu1 %vm617_vm4, %v2143_v55  ;;  %v3301_v50 = vld [vmem:[#allocation16 + $0x28] sm:$0xff]  }
0x12a8   :  { %3209 = vmatpush3.bf16.msra.mxu1 %v3296_v46 }
0x12a9   :  { %2394 = vst.msk [vmem:[#allocation18 + $0x38] sm:$0xff] %vm617_vm4, %v2389_v56  ;;  %3210 = vmatprep.subr.bf16.mxu1 %v3297_v47 }
0x12ac   :  { %3211 = vmatpush3.bf16.msra.mxu1 %v3297_v47 }
0x12ad   :  { %3212 = vmatprep.subr.bf16.mxu1 %v3298_v48 }
0x12b0   :  { %3213 = vmatpush3.bf16.msra.mxu1 %v3298_v48 }
0x12b1   :  { %3214 = vmatprep.subr.bf16.mxu1 %v3299_v49 }
0x12b4   :  { %3215 = vmatpush3.bf16.msra.mxu1 %v3299_v49 }
0x1370   :  { %v2184_v53 = vpop.f32.mrb[36].mxu0 }
0x1371   :  { %v3184_v57 = vpop.f32.mrb[37].mxu0 }
0x1372   :  { %v2187_v58 = vpop.f32.mrb[38].mxu0 }
0x1373   :  { %v2238_v63 = vpack.c.bf16 %v2187_v58, %v2184_v53  ;;  %v3185_v0 = vpop.f32.mrb[39].mxu0 }
0x1375   :  { %3196 = vmatprep.mubr.msk.bf16.mxu0 %vm514_vm1, %v2238_v63 }
0x137a   :  { %v2231_v6 = vpop.f32.mrb[48].mxu1 }
0x137b   :  { %v3190_v16 = vpop.f32.mrb[49].mxu1 }
0x137c   :  { %v2234_v21 = vpop.f32.mrb[50].mxu1 }
0x137d   :  { %v2239_v59 = vpack.c.bf16 %v2234_v21, %v2231_v6  ;;  %v3191_v2 = vpop.f32.mrb[51].mxu1  ;;  %v2892_v21 = vld [vmem:[%s4494_s11 + $0x1] ss:$0 sm:$0xff] }
0x137f   :  { %3197 = vmatmul.mubr.msk.bf16.vlgmr.msra.gmra.mrb[40].mxu0 %vm514_vm1, %v2239_v59 }
0x1380   :  { %3201 = vmatpush3.bf16.msra.mxu0 %v3294_v41  ;;  %3204 = vmatprep.mubr.msk.bf16.mxu0 %vm514_vm1, %v1984_v54 }
0x1381   :  { %3202 = vmatprep.subr.bf16.mxu0 %v3295_v5 }
0x1384   :  { %3203 = vmatpush3.bf16.msra.mxu0 %v3295_v5 }
0x1385   :  { %3220 = vmatprep.subr.bf16.mxu0 %v3300_v13 }
0x138b   :  { %3205 = vmatmul.mubr.msk.bf16.vlgmr.msra.gmra.mrb[40].mxu0 %vm514_vm1, %v1985_v44 }
0x138c   :  { %3221 = vmatpush3.bf16.msra.mxu0 %v3300_v13 }
0x138d   :  { %3222 = vmatprep.subr.bf16.mxu0 %v3301_v50 }
0x1390   :  { %3223 = vmatpush3.bf16.msra.mxu0 %v3301_v50 }
0x145e   :  { %v3206_v10 = vpop.f32.mrb[40].mxu0 }
0x145f   :  { %v2359_v61 = vpop.f32.mrb[41].mxu0  ;;  %v2384_v37 = vadd.f32 %v3206_v10, %v2889_v7 }
0x1460   :  { %v2382_v12 = vadd.f32 %v2889_v7, %v2359_v61  ;;  %v3207_v36 = vpop.f32.mrb[42].mxu0  ;;  %v2893_v61 = vld [vmem:[%s4495_s12 + $0x1] ss:$0 sm:$0xff] }
0x1461   :  { %v2362_v15 = vpop.f32.mrb[43].mxu0  ;;  %v2385_v29 = vadd.f32 %v3207_v36, %v2889_v7  ;;  %v2397_v42 = vadd.f32 %v2384_v37, %v4251_v8 }
0x1462   :  { %v2383_v31 = vadd.f32 %v2889_v7, %v2362_v15  ;;  %v2395_v54 = vadd.f32 %v2382_v12, %v4244_v9 }
0x1463   :  { %v2398_v19 = vadd.f32 %v2385_v29, %v4253_v11  ;;  %v2409_v20 = vsel %vm236_vm0, %v2397_v42, 0.0 }
0x1464   :  { %v2403_v40 = vsel %vm236_vm0, %v2395_v54, 0.0  ;;  %v2396_v35 = vadd.f32 %v2383_v31, %v4246_v1 }
0x1465   :  { %2404 = vadd.xlane.f32.xlu1 %v2403_v40  ;;  %v2412_v22 = vsel %vm236_vm0, %v2398_v19, 0.0 }
0x1466   :  { %v2406_v44 = vsel %vm236_vm0, %v2396_v35, 0.0 }
0x1467   :  { %2407 = vadd.xlane.f32.xlu0 %v2406_v44 }
0x1469   :  { %2410 = vadd.xlane.f32.xlu1 %v2409_v20  ;;  %v3302_v20 = vld [vmem:[#allocation16 + $0x30] sm:$0xff]  }
0x146a   :  { %3224 = vmatprep.subr.bf16.mxu0 %v3302_v20 }
0x146b   :  { %2413 = vadd.xlane.f32.xlu0 %v2412_v22  ;;  %3225 = vmatpush3.bf16.msra.mxu0 %v3302_v20  ;;  %v3303_v22 = vld [vmem:[#allocation16 + $0x38] sm:$0xff]  }
0x146c   :  { %3226 = vmatprep.subr.bf16.mxu0 %v3303_v22 }
0x146f   :  { %3227 = vmatpush3.bf16.msra.mxu0 %v3303_v22 }
0x14f2   :  { %v2405_v23 = vpop.xlane.xlu1 %2404 }
0x14f3   :  { %v2415_v9 = vmul.f32 0.015625, %v2405_v23  ;;  %v2895_v23 = vld [vmem:[%s4497_s14 + $0x1] ss:$0 sm:$0xff] }
0x14f4   :  { %v2408_v3 = vpop.xlane.xlu0 %2407 }
0x14f5   :  { %v2419_v26 = vsub.f32 %v2395_v54, %v2415_v9  ;;  %v2416_v27 = vmul.f32 0.015625, %v2408_v3 }
0x14f6   :  { %v2411_v1 = vpop.xlane.xlu1 %2410 }
0x14f7   :  { %v2420_v28 = vsub.f32 %v2396_v35, %v2416_v27  ;;  %v2417_v8 = vmul.f32 0.015625, %v2411_v1  ;;  %v2423_v30 = vmul.f32 %v2419_v26, %v2419_v26 }
0x14f8   :  { %v2414_v34 = vpop.xlane.xlu0 %2413 }
0x14f9   :  { %v2421_v38 = vsub.f32 %v2397_v42, %v2417_v8  ;;  %v2418_v60 = vmul.f32 0.015625, %v2414_v34  ;;  %v2427_v11 = vsel %vm236_vm0, %v2423_v30, 0.0  ;;  %v2424_v62 = vmul.f32 %v2420_v28, %v2420_v28 }
0x14fa   :  { %2428 = vadd.xlane.f32.xlu1 %v2427_v11 }
0x14fb   :  { %v2422_v39 = vsub.f32 %v2398_v19, %v2418_v60  ;;  %v2430_v32 = vsel %vm236_vm0, %v2424_v62, 0.0  ;;  %v2425_v33 = vmul.f32 %v2421_v38, %v2421_v38 }
0x14fc   :  { %2431 = vadd.xlane.f32.xlu0 %v2430_v32  ;;  %v2903_v32 = vld [vmem:[%s4499_s16 + $0x1] ss:$0 sm:$0xff]  ;;  %s3684_s16 = smov [#allocation18]  }
0x14fd   :  { %v2433_v51 = vsel %vm236_vm0, %v2425_v33, 0.0  ;;  %v2426_v43 = vmul.f32 %v2422_v39, %v2422_v39  ;;  %s2778_s24 = sshll.u32 %s3684_s16, 4  ;;  %s2779_s24 = int_to_ptr.vmem [resolvable:$true] %s2778_s24 }
0x14fe   :  { %2434 = vadd.xlane.f32.xlu1 %v2433_v51  ;;  %s3606_s1 = scalar_lea.vmem %s2779_s24, 1024  ;;  %p3611_p3 = scmp.lt.s32.totalorder %s2779_s24, %s2779_s24 }
0x14ff   :  { %v2436_v45 = vsel %vm236_vm0, %v2426_v43, 0.0  ;;  %p3607_p2 = scmp.ne.s32.totalorder %s2779_s24, %s3606_s1  ;;  %p3612_p4 = scmp.lt.s32.totalorder %s3606_s1, %s3606_s1 }
0x1500   :  { %2437 = vadd.xlane.f32.xlu0 %v2436_v45 }
0x1501   :  { %p3613_p5 = por %p3612_p4, %p3611_p3 }
0x1503   :  { %p3614_p6 = pnand %p3613_p5, %p3607_p2 }
0x1587   :  { %v2429_v14 = vpop.xlane.xlu1 %2428 }
0x1588   :  { %v2439_v55 = vmul.f32 0.015625, %v2429_v14 }
0x1589   :  { %v2432_v56 = vpop.xlane.xlu0 %2431 }
0x158a   :  { %v2443_v52 = vadd.f32 1e-05, %v2439_v55  ;;  %v2440_v4 = vmul.f32 0.015625, %v2432_v56 }
0x158b   :  { %v2435_v41 = vpop.xlane.xlu1 %2434 }
0x158c   :  { %3392 = vrsqrt.f32 %v2443_v52  ;;  %v2444_v53 = vadd.f32 1e-05, %v2440_v4  ;;  %v2441_v57 = vmul.f32 0.015625, %v2435_v41 }
0x158d   :  { %v2438_v58 = vpop.xlane.xlu0 %2437 }
0x158e   :  { %3394 = vrsqrt.f32 %v2444_v53  ;;  %v2445_v63 = vadd.f32 1e-05, %v2441_v57  ;;  %v2442_v0 = vmul.f32 0.015625, %v2438_v58 }
0x1590   :  { %3396 = vrsqrt.f32 %v2445_v63  ;;  %v2446_v6 = vadd.f32 1e-05, %v2442_v0 }
0x1592   :  { %3398 = vrsqrt.f32 %v2446_v6 }
0x1596   :  { %v3393_v16 = vpop.eup %3392 }
0x1597   :  { %v2451_v59 = vmul.f32 %v3393_v16, %v2419_v26 }
0x1598   :  { %v3395_v2 = vpop.eup %3394 }
0x1599   :  { %v2452_v5 = vmul.f32 %v3395_v2, %v2420_v28  ;;  %v2461_v7 = vmul.f32 %v2892_v21, %v2451_v59 }
0x159a   :  { %v3397_v10 = vpop.eup %3396 }
0x159b   :  { %v2453_v37 = vmul.f32 %v3397_v10, %v2421_v38  ;;  %v2462_v12 = vmul.f32 %v2892_v21, %v2452_v5  ;;  %v2471_v31 = vadd.f32 %v2893_v61, %v2461_v7 }
0x159c   :  { %v3399_v36 = vpop.eup %3398 }
0x159d   :  { %v2463_v15 = vmul.f32 %v2892_v21, %v2453_v37  ;;  %v2454_v29 = vmul.f32 %v3399_v36, %v2422_v39  ;;  %v2472_v54 = vadd.f32 %v2893_v61, %v2462_v12 }
0x159f   :  { %v2464_v40 = vmul.f32 %v2892_v21, %v2454_v29  ;;  %v2475_v35 = vpack.c.bf16 %v2472_v54, %v2471_v31  ;;  %v2473_v42 = vadd.f32 %v2893_v61, %v2463_v15 }
0x15a1   :  { %3216 = vmatprep.mubr.msk.bf16.mxu1 %vm236_vm0, %v2475_v35  ;;  %v2474_v44 = vadd.f32 %v2893_v61, %v2464_v40 }
0x15a3   :  { %v2476_v19 = vpack.c.bf16 %v2474_v44, %v2473_v42 }
0x15a5   :  { %3217 = vmatmul.mubr.msk.bf16.vlgmr.msra.gmra.mrb[52].mxu1 %vm236_vm0, %v2476_v19 }
0x1678   :  { %v3218_v9 = vpop.f32.mrb[52].mxu1 }
0x1679   :  { %v2567_v3 = vadd.f32 %v3218_v9, %v2895_v23  ;;  %v2558_v26 = vpop.f32.mrb[53].mxu1 }
0x167a   :  { %v2559_v27 = vadd.f32 %v2895_v23, %v2558_v26  ;;  %v3219_v1 = vpop.f32.mrb[54].mxu1 }
0x167b   :  { %v2570_v28 = vadd.f32 %v3219_v1, %v2895_v23  ;;  %v2561_v8 = vpop.f32.mrb[55].mxu1  ;;  %v2575_v34 = vmax.f32 %v2567_v3, 0.0 }
0x167c   :  { %v2562_v30 = vadd.f32 %v2895_v23, %v2561_v8  ;;  %v2573_v60 = vmax.f32 %v2559_v27, 0.0 }
0x167d   :  { %v2576_v38 = vmax.f32 %v2570_v28, 0.0 }
0x167e   :  { %v2574_v11 = vmax.f32 %v2562_v30, 0.0 }
0x167f   :  { %v2578_v62 = vpack.c.bf16 %v2576_v38, %v2575_v34 }
0x1680   :  { %v2577_v39 = vpack.c.bf16 %v2574_v11, %v2573_v60 }
0x1682   :  { %3228 = vmatprep.mubr.msk.bf16.mxu0 %vm236_vm0, %v2577_v39 }
0x1683   :  { %3229 = vmatmul.mubr.msk.bf16.vlgmr.msra.gmra.mrb[44].mxu0 %vm236_vm0, %v2578_v62 }
0x1756   :  { %v3230_v33 = vpop.f32.mrb[44].mxu0 }
0x1757   :  { %v2669_v51 = vadd.f32 %v3230_v33, %v2903_v32  ;;  %v2660_v43 = vpop.f32.mrb[45].mxu0 }
0x1758   :  { %v2661_v45 = vadd.f32 %v2903_v32, %v2660_v43  ;;  %v3231_v46 = vpop.f32.mrb[46].mxu0 }
0x1759   :  { %v2672_v47 = vadd.f32 %v3231_v46, %v2903_v32  ;;  %v2663_v48 = vpop.f32.mrb[47].mxu0  ;;  %v2677_v49 = vadd.f32 %v2669_v51, %v2473_v42 }
0x175a   :  { %v2675_v13 = vadd.f32 %v2661_v45, %v2471_v31  ;;  %v2664_v50 = vadd.f32 %v2903_v32, %v2663_v48 }
0x175b   :  { %v2678_v14 = vadd.f32 %v2672_v47, %v2474_v44  ;;  %v2681_v41 = vmul.f32 %v2677_v49, %v3966_v17 }
0x175c   :  { %v2676_v55 = vadd.f32 %v2664_v50, %v2472_v54  ;;  %v2679_v56 = vmul.f32 %v2675_v13, %v3968_v18 }
0x175d   :  { %v2682_v57 = vmul.f32 %v2678_v14, %v3973_v24  ;;  %v2691_v58 = vsel %vm236_vm0, %v2681_v41, 0.0 }
0x175e   :  { %v2685_v52 = vsel %vm236_vm0, %v2679_v56, 0.0  ;;  %v2680_v4 = vmul.f32 %v2676_v55, %v3975_v25 }
0x175f   :  { %2686 = vadd.xlane.f32.xlu1 %v2685_v52  ;;  %v2694_v63 = vsel %vm236_vm0, %v2682_v57, 0.0 }
0x1760   :  { %v2688_v53 = vsel %vm236_vm0, %v2680_v4, 0.0 }
0x1761   :  { %2689 = vadd.xlane.f32.xlu0 %v2688_v53 }
0x1763   :  { %2692 = vadd.xlane.f32.xlu1 %v2691_v58 }
0x1765   :  { %2695 = vadd.xlane.f32.xlu0 %v2694_v63 }
0x17ec   :  { %v2687_v0 = vpop.xlane.xlu1 %2686 }
0x17ed   :  { %v2697_v18 = vmul.f32 0.015625, %v2687_v0 }
0x17ee   :  { %v2690_v6 = vpop.xlane.xlu0 %2689 }
0x17ef   :  { %v2701_v16 = vsub.f32 %v2679_v56, %v2697_v18  ;;  %v2698_v21 = vmul.f32 0.015625, %v2690_v6 }
0x17f0   :  { %v2693_v25 = vpop.xlane.xlu1 %2692 }
0x17f1   :  { %v2702_v59 = vsub.f32 %v2680_v4, %v2698_v21  ;;  %v2699_v17 = vmul.f32 0.015625, %v2693_v25  ;;  %v2705_v2 = vmul.f32 %v2701_v16, %v2701_v16 }
0x17f2   :  { %v2696_v5 = vpop.xlane.xlu0 %2695 }
0x17f3   :  { %v2703_v7 = vsub.f32 %v2681_v41, %v2699_v17  ;;  %v2700_v10 = vmul.f32 0.015625, %v2696_v5  ;;  %v2709_v24 = vsel %vm236_vm0, %v2705_v2, 0.0  ;;  %v2706_v61 = vmul.f32 %v2702_v59, %v2702_v59 }
0x17f4   :  { %2710 = vadd.xlane.f32.xlu1 %v2709_v24 }
0x17f5   :  { %v2704_v37 = vsub.f32 %v2682_v57, %v2700_v10  ;;  %v2712_v12 = vsel %vm236_vm0, %v2706_v61, 0.0  ;;  %v2707_v36 = vmul.f32 %v2703_v7, %v2703_v7 }
0x17f6   :  { %2713 = vadd.xlane.f32.xlu0 %v2712_v12 }
0x17f7   :  { %v2715_v15 = vsel %vm236_vm0, %v2707_v36, 0.0  ;;  %v2708_v29 = vmul.f32 %v2704_v37, %v2704_v37 }
0x17f8   :  { %2716 = vadd.xlane.f32.xlu1 %v2715_v15 }
0x17f9   :  { %v2718_v31 = vsel %vm236_vm0, %v2708_v29, 0.0 }
0x17fa   :  { %2719 = vadd.xlane.f32.xlu0 %v2718_v31 }
0x17fb   :  { %3617 = shalt.err (!%p3614_p6)
}
0x17fc   :  { %s3618_s5 = scalar_lea.hbm %s4503_s20, 1024 }
0x17fd   :  { %p3619_p7 = scmp.ne.s32.totalorder %s4503_s20, %s3618_s5  ;;  %p3622_p8 = scmp.lt.u32.totalorder %s3618_s5, %s4503_s20 }
0x17ff   :  { %p3624_p9 = pnand %p3622_p8, %p3619_p7 }
0x1801   :  { %3627 = shalt.err (!%p3624_p9)
}
0x1802   :  { %2784 = dma.vmem_to_hbm [thread:$0]  %s2779_s24, 1024, %s4503_s20, [#allocation19], %s4526_s4, %s4526_s4, %s4525_s27  }
0x1803   :  { %v2910_v1 = vld [vmem:[%s4500_s17] ss:$0 sm:$0xff]  ;;  %s3685_s2 = smov [#allocation17]  }
0x1804   :  { %v2911_v30 = vld [vmem:[%s4501_s18] ss:$0 sm:$0xff]  ;;  %s2766_s17 = sshll.u32 %s3685_s2, 4  ;;  %s2767_s17 = int_to_ptr.vmem [resolvable:$true] %s2766_s17 }
0x1805   :  { %s3628_s18 = scalar_lea.vmem %s2767_s17, 512  ;;  %p3633_p11 = scmp.lt.s32.totalorder %s2767_s17, %s2767_s17 }
0x1806   :  { %p3629_p10 = scmp.ne.s32.totalorder %s2767_s17, %s3628_s18  ;;  %p3634_p12 = scmp.lt.s32.totalorder %s3628_s18, %s3628_s18 }
0x1808   :  { %p3635_p13 = por %p3634_p12, %p3633_p11 }
0x180a   :  { %p3636_p0 = pnand %p3635_p13, %p3629_p10 }
0x1881   :  { %v2711_v54 = vpop.xlane.xlu1 %2710 }
0x1882   :  { %v2721_v40 = vmul.f32 0.015625, %v2711_v54 }
0x1883   :  { %v2714_v35 = vpop.xlane.xlu0 %2713 }
0x1884   :  { %v2725_v42 = vadd.f32 1e-05, %v2721_v40  ;;  %v2722_v44 = vmul.f32 0.015625, %v2714_v35 }
0x1885   :  { %v2717_v19 = vpop.xlane.xlu1 %2716 }
0x1886   :  { %3400 = vrsqrt.f32 %v2725_v42  ;;  %v2726_v20 = vadd.f32 1e-05, %v2722_v44  ;;  %v2723_v22 = vmul.f32 0.015625, %v2717_v19 }
0x1887   :  { %v2720_v23 = vpop.xlane.xlu0 %2719 }
0x1888   :  { %3402 = vrsqrt.f32 %v2726_v20  ;;  %v2727_v9 = vadd.f32 1e-05, %v2723_v22  ;;  %v2724_v3 = vmul.f32 0.015625, %v2720_v23 }
0x188a   :  { %3404 = vrsqrt.f32 %v2727_v9  ;;  %v2728_v26 = vadd.f32 1e-05, %v2724_v3 }
0x188c   :  { %3406 = vrsqrt.f32 %v2728_v26 }
0x1890   :  { %v3401_v27 = vpop.eup %3400 }
0x1891   :  { %v2733_v28 = vmul.f32 %v3401_v27, %v2701_v16 }
0x1892   :  { %v3403_v8 = vpop.eup %3402 }
0x1893   :  { %v2743_v34 = vmul.f32 %v2910_v1, %v2733_v28  ;;  %v2734_v38 = vmul.f32 %v3403_v8, %v2702_v59 }
0x1894   :  { %v3405_v60 = vpop.eup %3404 }
0x1895   :  { %v2744_v11 = vmul.f32 %v2910_v1, %v2734_v38  ;;  %v2735_v62 = vmul.f32 %v3405_v60, %v2703_v7  ;;  %v2753_v39 = vadd.f32 %v2911_v30, %v2743_v34 }
0x1896   :  { %v3407_v32 = vpop.eup %3406 }
0x1897   :  { %v2745_v33 = vmul.f32 %v2910_v1, %v2735_v62  ;;  %v2736_v51 = vmul.f32 %v3407_v32, %v2704_v37  ;;  %v2754_v43 = vadd.f32 %v2911_v30, %v2744_v11  ;;  %2757 = vst.msk [vmem:[#allocation17] sm:$0xff] %vm236_vm0, %v2753_v39 }
0x1899   :  { %v2746_v45 = vmul.f32 %v2910_v1, %v2736_v51  ;;  %v2755_v46 = vadd.f32 %v2911_v30, %v2745_v33  ;;  %2758 = vst.msk [vmem:[#allocation17 + $0x8] sm:$0xff] %vm236_vm0, %v2754_v43 }
0x189b   :  { %v2756_v47 = vadd.f32 %v2911_v30, %v2746_v45  ;;  %2759 = vst.msk [vmem:[#allocation17 + $0x10] sm:$0xff] %vm236_vm0, %v2755_v46 }
0x189d   :  { %2760 = vst.msk [vmem:[#allocation17 + $0x18] sm:$0xff] %vm236_vm0, %v2756_v47 }
0x189e   :  { %3639 = shalt.err (!%p3636_p0)
}
0x189f   :  { %s4536_s9 = sld [smem:[#allocation32_spill]] }
0x18a5   :  { %s3640_s10 = scalar_lea.hbm %s4536_s9, 512 }
0x18a6   :  { %p3641_p1 = scmp.ne.s32.totalorder %s4536_s9, %s3640_s10  ;;  %p3644_p2 = scmp.lt.u32.totalorder %s3640_s10, %s4536_s9 }
0x18a8   :  { %p3646_p3 = pnand %p3644_p2, %p3641_p1 }
0x18aa   :  { %3649 = shalt.err (!%p3646_p3)
}
0x18ab   :  { %2772 = dma.vmem_to_hbm [thread:$0]  %s2767_s17, 512, %s4536_s9, [#allocation4], %s4526_s4, %s4526_s4, %s4525_s27  }
0x18ac   :  { %3660 = dma.done.wait [#allocation4], 512  }
0x18ad   :  { %3661 = vsyncadd [#allocation4], 4294966784 }
0x18ae   :  { %3662 = dma.done.wait [#allocation19], 1024  }
0x18af   :  { %3663 = vsyncadd [#allocation19], 4294966272 }
0x18b0   :  { %2791 = vsyncpa [#allocation3], 1 }
0x18b1   :  { %2792 = vsyncpa [#allocation6], 1 }
0x18b2   :  { %2793 = vsyncpa [#allocation9], 1 }
0x18b3   :  { %2794 = vsyncpa [#allocation12], 1 }
0x18b4   :  { %2795 = vsyncpa [#allocation15], 1 }
0x18b5   :  { %2796 = vsyncpa [#allocation4], 1 }
0x18b6   :  { %2797 = vsyncpa [#allocation19], 1 }

</bundles_post_ra>
